<compile_context>
chip_gen: v7x
topology: tpu7x:2x2x1
jax: 0.10.0
libtpu: 0.0.40
codegen_flags: <defaults>
</compile_context>

<pallas_src>
import math

import jax
import jax.numpy as jnp
import numpy as np
from jax.experimental import pallas as pl

# ------------------------- model config (small, consistent with grokk) -------------
B = 2            # batch
S = 8            # sequence length (== max_length)
VOCAB = 16
OUT = 16
HEADS = 4
DM = 32          # hidden_dim
DH = 8           # attn_dim (per head)
DFF = 64         # intermediate_dim
NUM_BLOCKS = 2
BLOCK_REPEATS = 1
LN_EPS = 1e-5
N_LAYERS = NUM_BLOCKS * BLOCK_REPEATS


# ------------------------------- in-kernel helpers ----------------------------------
def _layernorm(x, g, b):
    # torch.nn.LayerNorm semantics (biased variance, eps=1e-5); g/b are (1, D)
    mean = jnp.mean(x, axis=-1, keepdims=True)
    var = jnp.mean(jnp.square(x - mean), axis=-1, keepdims=True)
    return (x - mean) * jax.lax.rsqrt(var + LN_EPS) * g + b


def _erf(x):
    # Abramowitz & Stegun 7.1.26 rational approximation (|err| <= 1.5e-7).
    # Uses only ops with guaranteed Mosaic lowerings (abs/mul/add/exp/where).
    ax = jnp.abs(x)
    t = 1.0 / (1.0 + 0.3275911 * ax)
    poly = ((((1.061405429 * t - 1.453152027) * t + 1.421413741) * t
             - 0.284496736) * t + 0.254829592) * t
    y = 1.0 - poly * jnp.exp(-ax * ax)
    return jnp.where(x >= 0, y, -y)


def _gelu_exact(x):
    # torch F.gelu default (exact erf form), via the erf approximation above
    return 0.5 * x * (1.0 + _erf(x * (1.0 / math.sqrt(2.0))))


# ------------------------------- fused forward kernel -------------------------------
def _grokk_fused_kernel(tok_ref, tok_emb_ref, pos_emb_ref,
                        ln1_g_ref, ln1_b_ref,
                        wq_ref, bq_ref, wk_ref, bk_ref, wv_ref, bv_ref,
                        wo_ref, bo_ref,
                        ln2_g_ref, ln2_b_ref,
                        w1_ref, b1_ref, w2_ref, b2_ref,
                        lnf_g_ref, lnf_b_ref, wout_ref, bout_ref,
                        preds_ref, attn_ref):
    f32 = jnp.float32
    m_rows = B * S

    # ---- embedding: gather fused as one-hot @ table, scaled by sqrt(DM), + pos ----
    tok = tok_ref[...]                                                   # (M, 1) int32
    vocab_iota = jax.lax.broadcasted_iota(jnp.int32, (m_rows, VOCAB), 1)
    onehot = jnp.where(tok == vocab_iota, 1.0, 0.0).astype(f32)          # (M, VOCAB)
    h = jnp.dot(onehot, tok_emb_ref[...], preferred_element_type=f32) * math.sqrt(DM)
    pos = pos_emb_ref[...]                                               # (S, DM)
    h = h + jnp.concatenate([pos] * B, axis=0)                           # (M, DM)

    # causal mask built once, reused for every (layer, batch, head)
    row = jax.lax.broadcasted_iota(jnp.int32, (S, S), 0)
    col = jax.lax.broadcasted_iota(jnp.int32, (S, S), 1)
    causal = col <= row
    scale = 1.0 / math.sqrt(DH)

    for blk in range(NUM_BLOCKS):
        for rep in range(BLOCK_REPEATS):
            layer = blk * BLOCK_REPEATS + rep

            # --- attention sub-block (pre-norm) ---
            a_in = _layernorm(h, ln1_g_ref[blk], ln1_b_ref[blk])
            q = jnp.dot(a_in, wq_ref[blk], preferred_element_type=f32) + bq_ref[blk]
            k = jnp.dot(a_in, wk_ref[blk], preferred_element_type=f32) + bk_ref[blk]
            v = jnp.dot(a_in, wv_ref[blk], preferred_element_type=f32) + bv_ref[blk]
            wo_blk = wo_ref[blk]                                         # (H*DH, DM)

            proj_rows = []
            for b in range(B):                 # statically unrolled (no grid overhead)
                proj_b = None
                for hh in range(HEADS):
                    r0, c0 = b * S, hh * DH
                    qh = q[r0:r0 + S, c0:c0 + DH]                        # (S, DH)
                    kh = k[r0:r0 + S, c0:c0 + DH]
                    vh = v[r0:r0 + S, c0:c0 + DH]
                    s = jax.lax.dot_general(
                        qh, kh, (((1,), (1,)), ((), ())),
                        preferred_element_type=f32) * scale              # (S, S)
                    s = jnp.where(causal, s, -1e30)
                    mx = jnp.max(s, axis=-1, keepdims=True)
                    p = jnp.exp(s - mx)
                    attn = p * pl.reciprocal(jnp.sum(p, axis=-1, keepdims=True),
                                             approx=True)
                    out_row0 = ((layer * B + b) * HEADS + hh) * S
                    attn_ref[pl.ds(out_row0, S), :] = attn.astype(attn_ref.dtype)
                    out_bh = jnp.dot(attn, vh, preferred_element_type=f32)   # (S, DH)
                    # fused head-merge + output projection: sum_h out_h @ wo[h-rows]
                    contrib = jnp.dot(out_bh, wo_blk[c0:c0 + DH, :],
                                      preferred_element_type=f32)            # (S, DM)
                    proj_b = contrib if proj_b is None else proj_b + contrib
                proj_rows.append(proj_b)
            proj = jnp.concatenate(proj_rows, axis=0) + bo_ref[blk]      # (M, DM)
            h = h + proj                                                 # dropout == id

            # --- MLP sub-block (pre-norm), GELU fused in-kernel ---
            m_in = _layernorm(h, ln2_g_ref[blk], ln2_b_ref[blk])
            h1 = jnp.dot(m_in, w1_ref[blk], preferred_element_type=f32) + b1_ref[blk]
            h1 = _gelu_exact(h1)
            h2 = jnp.dot(h1, w2_ref[blk], preferred_element_type=f32) + b2_ref[blk]
            h = h + h2

    hf = _layernorm(h, lnf_g_ref[...], lnf_b_ref[...])
    preds = jnp.dot(hf, wout_ref[...], preferred_element_type=f32) + bout_ref[...]
    preds_ref[...] = preds.astype(preds_ref.dtype)


# ------------------------------- wrapper ---------------------------------------------
def grokk_forward(params, x_tokens):
    bsz, s_len = x_tokens.shape
    tok2d = x_tokens.reshape(bsz * s_len, 1).astype(jnp.int32)
    preds, attn_flat = pl.pallas_call(
        _grokk_fused_kernel,
        out_shape=(
            jax.ShapeDtypeStruct((bsz * s_len, OUT), jnp.float32),
            jax.ShapeDtypeStruct((N_LAYERS * bsz * HEADS * s_len, s_len), jnp.float32),
        ),
    )(tok2d, params["tok_emb"], params["pos_emb"],
      params["ln1_g"], params["ln1_b"],
      params["wq"], params["bq"], params["wk"], params["bk"],
      params["wv"], params["bv"], params["wo"], params["bo"],
      params["ln2_g"], params["ln2_b"],
      params["w1"], params["b1"], params["w2"], params["b2"],
      params["lnf_g"], params["lnf_b"], params["wout"], params["bout"])
    preds = preds.reshape(bsz, s_len, OUT)
    attn_all = attn_flat.reshape(N_LAYERS, bsz, HEADS, s_len, s_len)
    return preds, tuple(attn_all[i] for i in range(N_LAYERS))


# ------------------------------- parameters ------------------------------------------
def init_params(key):
    ks = iter(jax.random.split(key, 16))

    def w(shape, scale=0.02):
        return jax.random.normal(next(ks), shape, jnp.float32) * scale

    nb = NUM_BLOCKS
    return dict(
        tok_emb=w((VOCAB, DM)),
        pos_emb=w((S, DM)),
        wout=w((DM, OUT)),
        bout=w((1, OUT)),
        ln1_g=jnp.ones((nb, 1, DM), jnp.float32), ln1_b=jnp.zeros((nb, 1, DM), jnp.float32),
        ln2_g=jnp.ones((nb, 1, DM), jnp.float32), ln2_b=jnp.zeros((nb, 1, DM), jnp.float32),
        wq=w((nb, DM, HEADS * DH)), bq=w((nb, 1, HEADS * DH)),
        wk=w((nb, DM, HEADS * DH)), bk=w((nb, 1, HEADS * DH)),
        wv=w((nb, DM, HEADS * DH)), bv=w((nb, 1, HEADS * DH)),
        wo=w((nb, HEADS * DH, DM)), bo=w((nb, 1, DM)),
        w1=w((nb, DM, DFF)), b1=w((nb, 1, DFF)),
        w2=w((nb, DFF, DM)), b2=w((nb, 1, DM)),
        lnf_g=jnp.ones((1, DM), jnp.float32), lnf_b=jnp.zeros((1, DM), jnp.float32),
    )


# ------------------------------- pure-JAX reference ----------------------------------
def _ref_forward(params, x_tokens):
    hi = jax.lax.Precision.HIGHEST

    def ln(x, g, b):
        mean = x.mean(-1, keepdims=True)
        var = jnp.square(x - mean).mean(-1, keepdims=True)
        return (x - mean) / jnp.sqrt(var + LN_EPS) * g + b

    def lin(x, w, b):
        return jnp.dot(x, w, precision=hi) + b

    bsz, s_len = x_tokens.shape
    h = params["tok_emb"][x_tokens] * jnp.sqrt(jnp.float32(DM)) + params["pos_emb"][:s_len][None]
    mask = jnp.tril(jnp.ones((s_len, s_len), bool))
    attns = []
    for blk in range(NUM_BLOCKS):
        for _ in range(BLOCK_REPEATS):
            a_in = ln(h, params["ln1_g"][blk, 0], params["ln1_b"][blk, 0])
            q = lin(a_in, params["wq"][blk], params["bq"][blk, 0]).reshape(
                bsz, s_len, HEADS, DH).transpose(0, 2, 1, 3)
            k = lin(a_in, params["wk"][blk], params["bk"][blk, 0]).reshape(
                bsz, s_len, HEADS, DH).transpose(0, 2, 1, 3)
            v = lin(a_in, params["wv"][blk], params["bv"][blk, 0]).reshape(
                bsz, s_len, HEADS, DH).transpose(0, 2, 1, 3)
            s = jnp.einsum("bhqd,bhkd->bhqk", q, k, precision=hi) / math.sqrt(DH)
            s = jnp.where(mask[None, None], s, -1e30)
            a = jax.nn.softmax(s, axis=-1)
            attns.append(a)
            o = jnp.einsum("bhqk,bhkd->bhqd", a, v, precision=hi)
            o = o.transpose(0, 2, 1, 3).reshape(bsz, s_len, HEADS * DH)
            h = h + lin(o, params["wo"][blk], params["bo"][blk, 0])
            m_in = ln(h, params["ln2_g"][blk, 0], params["ln2_b"][blk, 0])
            h = h + lin(jax.nn.gelu(lin(m_in, params["w1"][blk], params["b1"][blk, 0]),
                                    approximate=False),
                        params["w2"][blk], params["b2"][blk, 0])
    hf = ln(h, params["lnf_g"][0], params["lnf_b"][0])
    return lin(hf, params["wout"], params["bout"][0]), tuple(attns)


# ------------------------------------ main --------------------------------------------
if __name__ == "__main__":
    root = jax.random.PRNGKey(0)
    k_param, k_data = jax.random.split(root)
    params = init_params(k_param)
    x = jax.random.randint(k_data, (B, S), 0, VOCAB, dtype=jnp.int32)

    preds, attns = jax.jit(grokk_forward)(params, x)
    preds = jax.block_until_ready(preds)
    attns = jax.block_until_ready(attns)

    assert preds.shape == (B, S, OUT)
    assert len(attns) == N_LAYERS
    assert all(a.shape == (B, HEADS, S, S) for a in attns)
    assert bool(jnp.all(jnp.isfinite(preds)))

    ref_preds, ref_attns = _ref_forward(params, x)
    np.testing.assert_allclose(np.asarray(preds), np.asarray(ref_preds), atol=5e-2, rtol=5e-2)
    for a, ra in zip(attns, ref_attns):
        np.testing.assert_allclose(np.asarray(a), np.asarray(ra), atol=2e-2, rtol=0)

    # TODO(synk): get_loss() metrics (cross-entropy / MSE / attention entropy) are not
    # part of forward() and are intentionally not ported.
    print("KERNEL_OK")
</pallas_src>

<mosaic_0001>
module attributes {stable_mosaic.version = 11 : i64} {
  func.func @_grokk_fused_kernel(%arg0: memref<16x1xi32, #tpu.memory_space<vmem>>, %arg1: memref<16x32xf32, #tpu.memory_space<vmem>>, %arg2: memref<8x32xf32, #tpu.memory_space<vmem>>, %arg3: memref<2x1x32xf32, #tpu.memory_space<vmem>>, %arg4: memref<2x1x32xf32, #tpu.memory_space<vmem>>, %arg5: memref<2x32x32xf32, #tpu.memory_space<vmem>>, %arg6: memref<2x1x32xf32, #tpu.memory_space<vmem>>, %arg7: memref<2x32x32xf32, #tpu.memory_space<vmem>>, %arg8: memref<2x1x32xf32, #tpu.memory_space<vmem>>, %arg9: memref<2x32x32xf32, #tpu.memory_space<vmem>>, %arg10: memref<2x1x32xf32, #tpu.memory_space<vmem>>, %arg11: memref<2x32x32xf32, #tpu.memory_space<vmem>>, %arg12: memref<2x1x32xf32, #tpu.memory_space<vmem>>, %arg13: memref<2x1x32xf32, #tpu.memory_space<vmem>>, %arg14: memref<2x1x32xf32, #tpu.memory_space<vmem>>, %arg15: memref<2x32x64xf32, #tpu.memory_space<vmem>>, %arg16: memref<2x1x64xf32, #tpu.memory_space<vmem>>, %arg17: memref<2x64x32xf32, #tpu.memory_space<vmem>>, %arg18: memref<2x1x32xf32, #tpu.memory_space<vmem>>, %arg19: memref<1x32xf32, #tpu.memory_space<vmem>>, %arg20: memref<1x32xf32, #tpu.memory_space<vmem>>, %arg21: memref<32x16xf32, #tpu.memory_space<vmem>>, %arg22: memref<1x16xf32, #tpu.memory_space<vmem>>, %arg23: memref<16x16xf32, #tpu.memory_space<vmem>>, %arg24: memref<128x8xf32, #tpu.memory_space<vmem>>) attributes {dimension_semantics = [], scalar_prefetch = 0 : i64, scratch_operands = 0 : i64, tpu.core_type = #tpu.core_type<tc>} {
    %c0 = arith.constant 0 : index
    %c0_0 = arith.constant 0 : index
    %0 = vector.load %arg0[%c0, %c0_0] : memref<16x1xi32, #tpu.memory_space<vmem>>, vector<16x1xi32>
    %1 = tpu.iota {dimensions = array<i32: 1>} : vector<16x16xi32>
    %2 = vector.broadcast %0 : vector<16x1xi32> to vector<16x16xi32>
    %3 = arith.cmpi eq, %2, %1 : vector<16x16xi32>
    %cst = arith.constant 1.000000e+00 : f32
    %cst_1 = arith.constant 0.000000e+00 : f32
    %4 = vector.broadcast %cst : f32 to vector<16x16xf32>
    %5 = vector.broadcast %cst_1 : f32 to vector<16x16xf32>
    %6 = arith.select %3, %4, %5 : vector<16x16xi1>, vector<16x16xf32>
    %c0_2 = arith.constant 0 : index
    %c0_3 = arith.constant 0 : index
    %7 = vector.load %arg1[%c0_2, %c0_3] : memref<16x32xf32, #tpu.memory_space<vmem>>, vector<16x32xf32>
    %cst_4 = arith.constant dense<0.000000e+00> : vector<16x32xf32>
    %8 = tpu.matmul %6, %7, %cst_4 {dimension_numbers = #tpu.dot_dimension_numbers<[1], [0], [0], [1], [0, 0, 1, 1], [], []>} : vector<16x16xf32>, vector<16x32xf32>, vector<16x32xf32> -> vector<16x32xf32>
    %cst_5 = arith.constant 5.65685415 : f32
    %9 = vector.broadcast %cst_5 : f32 to vector<16x32xf32>
    %10 = arith.mulf %8, %9 : vector<16x32xf32>
    %c0_6 = arith.constant 0 : index
    %c0_7 = arith.constant 0 : index
    %11 = vector.load %arg2[%c0_6, %c0_7] : memref<8x32xf32, #tpu.memory_space<vmem>>, vector<8x32xf32>
    %12 = tpu.concatenate %11, %11 in 0 : vector<8x32xf32>, vector<8x32xf32> -> vector<16x32xf32>
    %13 = arith.addf %10, %12 : vector<16x32xf32>
    %14 = tpu.iota {dimensions = array<i32: 0>} : vector<8x8xi32>
    %15 = tpu.iota {dimensions = array<i32: 1>} : vector<8x8xi32>
    %16 = arith.cmpi sle, %15, %14 : vector<8x8xi32>
    %c0_8 = arith.constant 0 : index
    %c0_9 = arith.constant 0 : index
    %c0_10 = arith.constant 0 : index
    %17 = vector.load %arg3[%c0_8, %c0_9, %c0_10] : memref<2x1x32xf32, #tpu.memory_space<vmem>>, vector<1x1x32xf32>
    %18 = vector.shape_cast %17 : vector<1x1x32xf32> to vector<1x32xf32>
    %c0_11 = arith.constant 0 : index
    %c0_12 = arith.constant 0 : index
    %c0_13 = arith.constant 0 : index
    %19 = vector.load %arg4[%c0_11, %c0_12, %c0_13] : memref<2x1x32xf32, #tpu.memory_space<vmem>>, vector<1x1x32xf32>
    %20 = vector.shape_cast %19 : vector<1x1x32xf32> to vector<1x32xf32>
    %cst_14 = arith.constant dense<0.000000e+00> : vector<16xf32>
    %21 = vector.multi_reduction <add>, %13, %cst_14 [1] : vector<16x32xf32> to vector<16xf32>
    %22 = vector.shape_cast %21 : vector<16xf32> to vector<16x1xf32>
    %cst_15 = arith.constant 3.200000e+01 : f32
    %23 = vector.broadcast %cst_15 : f32 to vector<16x1xf32>
    %24 = arith.divf %22, %23 : vector<16x1xf32>
    %25 = vector.broadcast %24 : vector<16x1xf32> to vector<16x32xf32>
    %26 = arith.subf %13, %25 : vector<16x32xf32>
    %27 = arith.mulf %26, %26 : vector<16x32xf32>
    %cst_16 = arith.constant dense<0.000000e+00> : vector<16xf32>
    %28 = vector.multi_reduction <add>, %27, %cst_16 [1] : vector<16x32xf32> to vector<16xf32>
    %29 = vector.shape_cast %28 : vector<16xf32> to vector<16x1xf32>
    %cst_17 = arith.constant 3.200000e+01 : f32
    %30 = vector.broadcast %cst_17 : f32 to vector<16x1xf32>
    %31 = arith.divf %29, %30 : vector<16x1xf32>
    %32 = vector.broadcast %24 : vector<16x1xf32> to vector<16x32xf32>
    %33 = arith.subf %13, %32 : vector<16x32xf32>
    %cst_18 = arith.constant 9.99999974E-6 : f32
    %34 = vector.broadcast %cst_18 : f32 to vector<16x1xf32>
    %35 = arith.addf %31, %34 : vector<16x1xf32>
    %36 = math.rsqrt %35 : vector<16x1xf32>
    %37 = vector.broadcast %36 : vector<16x1xf32> to vector<16x32xf32>
    %38 = arith.mulf %33, %37 : vector<16x32xf32>
    %39 = vector.broadcast %18 : vector<1x32xf32> to vector<16x32xf32>
    %40 = arith.mulf %38, %39 : vector<16x32xf32>
    %41 = vector.broadcast %20 : vector<1x32xf32> to vector<16x32xf32>
    %42 = arith.addf %40, %41 : vector<16x32xf32>
    %c0_19 = arith.constant 0 : index
    %c0_20 = arith.constant 0 : index
    %c0_21 = arith.constant 0 : index
    %43 = vector.load %arg5[%c0_19, %c0_20, %c0_21] : memref<2x32x32xf32, #tpu.memory_space<vmem>>, vector<1x32x32xf32>
    %44 = vector.shape_cast %43 : vector<1x32x32xf32> to vector<32x32xf32>
    %cst_22 = arith.constant dense<0.000000e+00> : vector<16x32xf32>
    %45 = tpu.matmul %42, %44, %cst_22 {dimension_numbers = #tpu.dot_dimension_numbers<[1], [0], [0], [1], [0, 0, 1, 1], [], []>} : vector<16x32xf32>, vector<32x32xf32>, vector<16x32xf32> -> vector<16x32xf32>
    %c0_23 = arith.constant 0 : index
    %c0_24 = arith.constant 0 : index
    %c0_25 = arith.constant 0 : index
    %46 = vector.load %arg6[%c0_23, %c0_24, %c0_25] : memref<2x1x32xf32, #tpu.memory_space<vmem>>, vector<1x1x32xf32>
    %47 = vector.shape_cast %46 : vector<1x1x32xf32> to vector<1x32xf32>
    %48 = vector.broadcast %47 : vector<1x32xf32> to vector<16x32xf32>
    %49 = arith.addf %45, %48 : vector<16x32xf32>
    %c0_26 = arith.constant 0 : index
    %c0_27 = arith.constant 0 : index
    %c0_28 = arith.constant 0 : index
    %50 = vector.load %arg7[%c0_26, %c0_27, %c0_28] : memref<2x32x32xf32, #tpu.memory_space<vmem>>, vector<1x32x32xf32>
    %51 = vector.shape_cast %50 : vector<1x32x32xf32> to vector<32x32xf32>
    %cst_29 = arith.constant dense<0.000000e+00> : vector<16x32xf32>
    %52 = tpu.matmul %42, %51, %cst_29 {dimension_numbers = #tpu.dot_dimension_numbers<[1], [0], [0], [1], [0, 0, 1, 1], [], []>} : vector<16x32xf32>, vector<32x32xf32>, vector<16x32xf32> -> vector<16x32xf32>
    %c0_30 = arith.constant 0 : index
    %c0_31 = arith.constant 0 : index
    %c0_32 = arith.constant 0 : index
    %53 = vector.load %arg8[%c0_30, %c0_31, %c0_32] : memref<2x1x32xf32, #tpu.memory_space<vmem>>, vector<1x1x32xf32>
    %54 = vector.shape_cast %53 : vector<1x1x32xf32> to vector<1x32xf32>
    %55 = vector.broadcast %54 : vector<1x32xf32> to vector<16x32xf32>
    %56 = arith.addf %52, %55 : vector<16x32xf32>
    %c0_33 = arith.constant 0 : index
    %c0_34 = arith.constant 0 : index
    %c0_35 = arith.constant 0 : index
    %57 = vector.load %arg9[%c0_33, %c0_34, %c0_35] : memref<2x32x32xf32, #tpu.memory_space<vmem>>, vector<1x32x32xf32>
    %58 = vector.shape_cast %57 : vector<1x32x32xf32> to vector<32x32xf32>
    %cst_36 = arith.constant dense<0.000000e+00> : vector<16x32xf32>
    %59 = tpu.matmul %42, %58, %cst_36 {dimension_numbers = #tpu.dot_dimension_numbers<[1], [0], [0], [1], [0, 0, 1, 1], [], []>} : vector<16x32xf32>, vector<32x32xf32>, vector<16x32xf32> -> vector<16x32xf32>
    %c0_37 = arith.constant 0 : index
    %c0_38 = arith.constant 0 : index
    %c0_39 = arith.constant 0 : index
    %60 = vector.load %arg10[%c0_37, %c0_38, %c0_39] : memref<2x1x32xf32, #tpu.memory_space<vmem>>, vector<1x1x32xf32>
    %61 = vector.shape_cast %60 : vector<1x1x32xf32> to vector<1x32xf32>
    %62 = vector.broadcast %61 : vector<1x32xf32> to vector<16x32xf32>
    %63 = arith.addf %59, %62 : vector<16x32xf32>
    %c0_40 = arith.constant 0 : index
    %c0_41 = arith.constant 0 : index
    %c0_42 = arith.constant 0 : index
    %64 = vector.load %arg11[%c0_40, %c0_41, %c0_42] : memref<2x32x32xf32, #tpu.memory_space<vmem>>, vector<1x32x32xf32>
    %65 = vector.shape_cast %64 : vector<1x32x32xf32> to vector<32x32xf32>
    %66 = vector.extract_strided_slice %49 {offsets = [0, 0], sizes = [8, 8], strides = [1, 1]} : vector<16x32xf32> to vector<8x8xf32>
    %67 = vector.extract_strided_slice %56 {offsets = [0, 0], sizes = [8, 8], strides = [1, 1]} : vector<16x32xf32> to vector<8x8xf32>
    %68 = vector.extract_strided_slice %63 {offsets = [0, 0], sizes = [8, 8], strides = [1, 1]} : vector<16x32xf32> to vector<8x8xf32>
    %cst_43 = arith.constant dense<0.000000e+00> : vector<8x8xf32>
    %69 = tpu.matmul %66, %67, %cst_43 {dimension_numbers = #tpu.dot_dimension_numbers<[1], [1], [0], [0], [0, 0, 1, 0], [], []>} : vector<8x8xf32>, vector<8x8xf32>, vector<8x8xf32> -> vector<8x8xf32>
    %cst_44 = arith.constant 0.353553385 : f32
    %70 = vector.broadcast %cst_44 : f32 to vector<8x8xf32>
    %71 = arith.mulf %69, %70 : vector<8x8xf32>
    %cst_45 = arith.constant -1.000000e+30 : f32
    %72 = vector.broadcast %cst_45 : f32 to vector<8x8xf32>
    %73 = arith.select %16, %71, %72 : vector<8x8xi1>, vector<8x8xf32>
    %cst_46 = arith.constant dense<0xFF800000> : vector<8xf32>
    %74 = vector.multi_reduction <maximumf>, %73, %cst_46 [1] : vector<8x8xf32> to vector<8xf32>
    %75 = vector.shape_cast %74 : vector<8xf32> to vector<8x1xf32>
    %76 = vector.broadcast %75 : vector<8x1xf32> to vector<8x8xf32>
    %77 = arith.subf %73, %76 : vector<8x8xf32>
    %78 = math.exp %77 : vector<8x8xf32>
    %cst_47 = arith.constant dense<0.000000e+00> : vector<8xf32>
    %79 = vector.multi_reduction <add>, %78, %cst_47 [1] : vector<8x8xf32> to vector<8xf32>
    %80 = vector.shape_cast %79 : vector<8xf32> to vector<8x1xf32>
    %81 = tpu.reciprocal %80 {approx = true} : vector<8x1xf32> -> vector<8x1xf32>
    %82 = vector.broadcast %81 : vector<8x1xf32> to vector<8x8xf32>
    %83 = arith.mulf %78, %82 : vector<8x8xf32>
    %c0_48 = arith.constant 0 : index
    %c0_49 = arith.constant 0 : index
    %84 = vector.load %arg24[%c0_48, %c0_49] : memref<128x8xf32, #tpu.memory_space<vmem>>, vector<8x8xf32>
    tpu.vector_store %arg24[%c0_48, %c0_49], %83 {strides = array<i32>} : memref<128x8xf32, #tpu.memory_space<vmem>>, vector<8x8xf32>,
    %cst_50 = arith.constant dense<0.000000e+00> : vector<8x8xf32>
    %85 = tpu.matmul %83, %68, %cst_50 {dimension_numbers = #tpu.dot_dimension_numbers<[1], [0], [0], [1], [0, 0, 1, 1], [], []>} : vector<8x8xf32>, vector<8x8xf32>, vector<8x8xf32> -> vector<8x8xf32>
    %86 = vector.extract_strided_slice %65 {offsets = [0, 0], sizes = [8, 32], strides = [1, 1]} : vector<32x32xf32> to vector<8x32xf32>
    %cst_51 = arith.constant dense<0.000000e+00> : vector<8x32xf32>
    %87 = tpu.matmul %85, %86, %cst_51 {dimension_numbers = #tpu.dot_dimension_numbers<[1], [0], [0], [1], [0, 0, 1, 1], [], []>} : vector<8x8xf32>, vector<8x32xf32>, vector<8x32xf32> -> vector<8x32xf32>
    %88 = vector.extract_strided_slice %49 {offsets = [0, 8], sizes = [8, 8], strides = [1, 1]} : vector<16x32xf32> to vector<8x8xf32>
    %89 = vector.extract_strided_slice %56 {offsets = [0, 8], sizes = [8, 8], strides = [1, 1]} : vector<16x32xf32> to vector<8x8xf32>
    %90 = vector.extract_strided_slice %63 {offsets = [0, 8], sizes = [8, 8], strides = [1, 1]} : vector<16x32xf32> to vector<8x8xf32>
    %cst_52 = arith.constant dense<0.000000e+00> : vector<8x8xf32>
    %91 = tpu.matmul %88, %89, %cst_52 {dimension_numbers = #tpu.dot_dimension_numbers<[1], [1], [0], [0], [0, 0, 1, 0], [], []>} : vector<8x8xf32>, vector<8x8xf32>, vector<8x8xf32> -> vector<8x8xf32>
    %cst_53 = arith.constant 0.353553385 : f32
    %92 = vector.broadcast %cst_53 : f32 to vector<8x8xf32>
    %93 = arith.mulf %91, %92 : vector<8x8xf32>
    %cst_54 = arith.constant -1.000000e+30 : f32
    %94 = vector.broadcast %cst_54 : f32 to vector<8x8xf32>
    %95 = arith.select %16, %93, %94 : vector<8x8xi1>, vector<8x8xf32>
    %cst_55 = arith.constant dense<0xFF800000> : vector<8xf32>
    %96 = vector.multi_reduction <maximumf>, %95, %cst_55 [1] : vector<8x8xf32> to vector<8xf32>
    %97 = vector.shape_cast %96 : vector<8xf32> to vector<8x1xf32>
    %98 = vector.broadcast %97 : vector<8x1xf32> to vector<8x8xf32>
    %99 = arith.subf %95, %98 : vector<8x8xf32>
    %100 = math.exp %99 : vector<8x8xf32>
    %cst_56 = arith.constant dense<0.000000e+00> : vector<8xf32>
    %101 = vector.multi_reduction <add>, %100, %cst_56 [1] : vector<8x8xf32> to vector<8xf32>
    %102 = vector.shape_cast %101 : vector<8xf32> to vector<8x1xf32>
    %103 = tpu.reciprocal %102 {approx = true} : vector<8x1xf32> -> vector<8x1xf32>
    %104 = vector.broadcast %103 : vector<8x1xf32> to vector<8x8xf32>
    %105 = arith.mulf %100, %104 : vector<8x8xf32>
    %c8 = arith.constant 8 : index
    %c0_57 = arith.constant 0 : index
    %106 = vector.load %arg24[%c8, %c0_57] : memref<128x8xf32, #tpu.memory_space<vmem>>, vector<8x8xf32>
    tpu.vector_store %arg24[%c8, %c0_57], %105 {strides = array<i32>} : memref<128x8xf32, #tpu.memory_space<vmem>>, vector<8x8xf32>,
    %cst_58 = arith.constant dense<0.000000e+00> : vector<8x8xf32>
    %107 = tpu.matmul %105, %90, %cst_58 {dimension_numbers = #tpu.dot_dimension_numbers<[1], [0], [0], [1], [0, 0, 1, 1], [], []>} : vector<8x8xf32>, vector<8x8xf32>, vector<8x8xf32> -> vector<8x8xf32>
    %108 = vector.extract_strided_slice %65 {offsets = [8, 0], sizes = [8, 32], strides = [1, 1]} : vector<32x32xf32> to vector<8x32xf32>
    %cst_59 = arith.constant dense<0.000000e+00> : vector<8x32xf32>
    %109 = tpu.matmul %107, %108, %cst_59 {dimension_numbers = #tpu.dot_dimension_numbers<[1], [0], [0], [1], [0, 0, 1, 1], [], []>} : vector<8x8xf32>, vector<8x32xf32>, vector<8x32xf32> -> vector<8x32xf32>
    %110 = arith.addf %87, %109 : vector<8x32xf32>
    %111 = vector.extract_strided_slice %49 {offsets = [0, 16], sizes = [8, 8], strides = [1, 1]} : vector<16x32xf32> to vector<8x8xf32>
    %112 = vector.extract_strided_slice %56 {offsets = [0, 16], sizes = [8, 8], strides = [1, 1]} : vector<16x32xf32> to vector<8x8xf32>
    %113 = vector.extract_strided_slice %63 {offsets = [0, 16], sizes = [8, 8], strides = [1, 1]} : vector<16x32xf32> to vector<8x8xf32>
    %cst_60 = arith.constant dense<0.000000e+00> : vector<8x8xf32>
    %114 = tpu.matmul %111, %112, %cst_60 {dimension_numbers = #tpu.dot_dimension_numbers<[1], [1], [0], [0], [0, 0, 1, 0], [], []>} : vector<8x8xf32>, vector<8x8xf32>, vector<8x8xf32> -> vector<8x8xf32>
    %cst_61 = arith.constant 0.353553385 : f32
    %115 = vector.broadcast %cst_61 : f32 to vector<8x8xf32>
    %116 = arith.mulf %114, %115 : vector<8x8xf32>
    %cst_62 = arith.constant -1.000000e+30 : f32
    %117 = vector.broadcast %cst_62 : f32 to vector<8x8xf32>
    %118 = arith.select %16, %116, %117 : vector<8x8xi1>, vector<8x8xf32>
    %cst_63 = arith.constant dense<0xFF800000> : vector<8xf32>
    %119 = vector.multi_reduction <maximumf>, %118, %cst_63 [1] : vector<8x8xf32> to vector<8xf32>
    %120 = vector.shape_cast %119 : vector<8xf32> to vector<8x1xf32>
    %121 = vector.broadcast %120 : vector<8x1xf32> to vector<8x8xf32>
    %122 = arith.subf %118, %121 : vector<8x8xf32>
    %123 = math.exp %122 : vector<8x8xf32>
    %cst_64 = arith.constant dense<0.000000e+00> : vector<8xf32>
    %124 = vector.multi_reduction <add>, %123, %cst_64 [1] : vector<8x8xf32> to vector<8xf32>
    %125 = vector.shape_cast %124 : vector<8xf32> to vector<8x1xf32>
    %126 = tpu.reciprocal %125 {approx = true} : vector<8x1xf32> -> vector<8x1xf32>
    %127 = vector.broadcast %126 : vector<8x1xf32> to vector<8x8xf32>
    %128 = arith.mulf %123, %127 : vector<8x8xf32>
    %c16 = arith.constant 16 : index
    %c0_65 = arith.constant 0 : index
    %129 = vector.load %arg24[%c16, %c0_65] : memref<128x8xf32, #tpu.memory_space<vmem>>, vector<8x8xf32>
    tpu.vector_store %arg24[%c16, %c0_65], %128 {strides = array<i32>} : memref<128x8xf32, #tpu.memory_space<vmem>>, vector<8x8xf32>,
    %cst_66 = arith.constant dense<0.000000e+00> : vector<8x8xf32>
    %130 = tpu.matmul %128, %113, %cst_66 {dimension_numbers = #tpu.dot_dimension_numbers<[1], [0], [0], [1], [0, 0, 1, 1], [], []>} : vector<8x8xf32>, vector<8x8xf32>, vector<8x8xf32> -> vector<8x8xf32>
    %131 = vector.extract_strided_slice %65 {offsets = [16, 0], sizes = [8, 32], strides = [1, 1]} : vector<32x32xf32> to vector<8x32xf32>
    %cst_67 = arith.constant dense<0.000000e+00> : vector<8x32xf32>
    %132 = tpu.matmul %130, %131, %cst_67 {dimension_numbers = #tpu.dot_dimension_numbers<[1], [0], [0], [1], [0, 0, 1, 1], [], []>} : vector<8x8xf32>, vector<8x32xf32>, vector<8x32xf32> -> vector<8x32xf32>
    %133 = arith.addf %110, %132 : vector<8x32xf32>
    %134 = vector.extract_strided_slice %49 {offsets = [0, 24], sizes = [8, 8], strides = [1, 1]} : vector<16x32xf32> to vector<8x8xf32>
    %135 = vector.extract_strided_slice %56 {offsets = [0, 24], sizes = [8, 8], strides = [1, 1]} : vector<16x32xf32> to vector<8x8xf32>
    %136 = vector.extract_strided_slice %63 {offsets = [0, 24], sizes = [8, 8], strides = [1, 1]} : vector<16x32xf32> to vector<8x8xf32>
    %cst_68 = arith.constant dense<0.000000e+00> : vector<8x8xf32>
    %137 = tpu.matmul %134, %135, %cst_68 {dimension_numbers = #tpu.dot_dimension_numbers<[1], [1], [0], [0], [0, 0, 1, 0], [], []>} : vector<8x8xf32>, vector<8x8xf32>, vector<8x8xf32> -> vector<8x8xf32>
    %cst_69 = arith.constant 0.353553385 : f32
    %138 = vector.broadcast %cst_69 : f32 to vector<8x8xf32>
    %139 = arith.mulf %137, %138 : vector<8x8xf32>
    %cst_70 = arith.constant -1.000000e+30 : f32
    %140 = vector.broadcast %cst_70 : f32 to vector<8x8xf32>
    %141 = arith.select %16, %139, %140 : vector<8x8xi1>, vector<8x8xf32>
    %cst_71 = arith.constant dense<0xFF800000> : vector<8xf32>
    %142 = vector.multi_reduction <maximumf>, %141, %cst_71 [1] : vector<8x8xf32> to vector<8xf32>
    %143 = vector.shape_cast %142 : vector<8xf32> to vector<8x1xf32>
    %144 = vector.broadcast %143 : vector<8x1xf32> to vector<8x8xf32>
    %145 = arith.subf %141, %144 : vector<8x8xf32>
    %146 = math.exp %145 : vector<8x8xf32>
    %cst_72 = arith.constant dense<0.000000e+00> : vector<8xf32>
    %147 = vector.multi_reduction <add>, %146, %cst_72 [1] : vector<8x8xf32> to vector<8xf32>
    %148 = vector.shape_cast %147 : vector<8xf32> to vector<8x1xf32>
    %149 = tpu.reciprocal %148 {approx = true} : vector<8x1xf32> -> vector<8x1xf32>
    %150 = vector.broadcast %149 : vector<8x1xf32> to vector<8x8xf32>
    %151 = arith.mulf %146, %150 : vector<8x8xf32>
    %c24 = arith.constant 24 : index
    %c0_73 = arith.constant 0 : index
    %152 = vector.load %arg24[%c24, %c0_73] : memref<128x8xf32, #tpu.memory_space<vmem>>, vector<8x8xf32>
    tpu.vector_store %arg24[%c24, %c0_73], %151 {strides = array<i32>} : memref<128x8xf32, #tpu.memory_space<vmem>>, vector<8x8xf32>,
    %cst_74 = arith.constant dense<0.000000e+00> : vector<8x8xf32>
    %153 = tpu.matmul %151, %136, %cst_74 {dimension_numbers = #tpu.dot_dimension_numbers<[1], [0], [0], [1], [0, 0, 1, 1], [], []>} : vector<8x8xf32>, vector<8x8xf32>, vector<8x8xf32> -> vector<8x8xf32>
    %154 = vector.extract_strided_slice %65 {offsets = [24, 0], sizes = [8, 32], strides = [1, 1]} : vector<32x32xf32> to vector<8x32xf32>
    %cst_75 = arith.constant dense<0.000000e+00> : vector<8x32xf32>
    %155 = tpu.matmul %153, %154, %cst_75 {dimension_numbers = #tpu.dot_dimension_numbers<[1], [0], [0], [1], [0, 0, 1, 1], [], []>} : vector<8x8xf32>, vector<8x32xf32>, vector<8x32xf32> -> vector<8x32xf32>
    %156 = arith.addf %133, %155 : vector<8x32xf32>
    %157 = vector.extract_strided_slice %49 {offsets = [8, 0], sizes = [8, 8], strides = [1, 1]} : vector<16x32xf32> to vector<8x8xf32>
    %158 = vector.extract_strided_slice %56 {offsets = [8, 0], sizes = [8, 8], strides = [1, 1]} : vector<16x32xf32> to vector<8x8xf32>
    %159 = vector.extract_strided_slice %63 {offsets = [8, 0], sizes = [8, 8], strides = [1, 1]} : vector<16x32xf32> to vector<8x8xf32>
    %cst_76 = arith.constant dense<0.000000e+00> : vector<8x8xf32>
    %160 = tpu.matmul %157, %158, %cst_76 {dimension_numbers = #tpu.dot_dimension_numbers<[1], [1], [0], [0], [0, 0, 1, 0], [], []>} : vector<8x8xf32>, vector<8x8xf32>, vector<8x8xf32> -> vector<8x8xf32>
    %cst_77 = arith.constant 0.353553385 : f32
    %161 = vector.broadcast %cst_77 : f32 to vector<8x8xf32>
    %162 = arith.mulf %160, %161 : vector<8x8xf32>
    %cst_78 = arith.constant -1.000000e+30 : f32
    %163 = vector.broadcast %cst_78 : f32 to vector<8x8xf32>
    %164 = arith.select %16, %162, %163 : vector<8x8xi1>, vector<8x8xf32>
    %cst_79 = arith.constant dense<0xFF800000> : vector<8xf32>
    %165 = vector.multi_reduction <maximumf>, %164, %cst_79 [1] : vector<8x8xf32> to vector<8xf32>
    %166 = vector.shape_cast %165 : vector<8xf32> to vector<8x1xf32>
    %167 = vector.broadcast %166 : vector<8x1xf32> to vector<8x8xf32>
    %168 = arith.subf %164, %167 : vector<8x8xf32>
    %169 = math.exp %168 : vector<8x8xf32>
    %cst_80 = arith.constant dense<0.000000e+00> : vector<8xf32>
    %170 = vector.multi_reduction <add>, %169, %cst_80 [1] : vector<8x8xf32> to vector<8xf32>
    %171 = vector.shape_cast %170 : vector<8xf32> to vector<8x1xf32>
    %172 = tpu.reciprocal %171 {approx = true} : vector<8x1xf32> -> vector<8x1xf32>
    %173 = vector.broadcast %172 : vector<8x1xf32> to vector<8x8xf32>
    %174 = arith.mulf %169, %173 : vector<8x8xf32>
    %c32 = arith.constant 32 : index
    %c0_81 = arith.constant 0 : index
    %175 = vector.load %arg24[%c32, %c0_81] : memref<128x8xf32, #tpu.memory_space<vmem>>, vector<8x8xf32>
    tpu.vector_store %arg24[%c32, %c0_81], %174 {strides = array<i32>} : memref<128x8xf32, #tpu.memory_space<vmem>>, vector<8x8xf32>,
    %cst_82 = arith.constant dense<0.000000e+00> : vector<8x8xf32>
    %176 = tpu.matmul %174, %159, %cst_82 {dimension_numbers = #tpu.dot_dimension_numbers<[1], [0], [0], [1], [0, 0, 1, 1], [], []>} : vector<8x8xf32>, vector<8x8xf32>, vector<8x8xf32> -> vector<8x8xf32>
    %177 = vector.extract_strided_slice %65 {offsets = [0, 0], sizes = [8, 32], strides = [1, 1]} : vector<32x32xf32> to vector<8x32xf32>
    %cst_83 = arith.constant dense<0.000000e+00> : vector<8x32xf32>
    %178 = tpu.matmul %176, %177, %cst_83 {dimension_numbers = #tpu.dot_dimension_numbers<[1], [0], [0], [1], [0, 0, 1, 1], [], []>} : vector<8x8xf32>, vector<8x32xf32>, vector<8x32xf32> -> vector<8x32xf32>
    %179 = vector.extract_strided_slice %49 {offsets = [8, 8], sizes = [8, 8], strides = [1, 1]} : vector<16x32xf32> to vector<8x8xf32>
    %180 = vector.extract_strided_slice %56 {offsets = [8, 8], sizes = [8, 8], strides = [1, 1]} : vector<16x32xf32> to vector<8x8xf32>
    %181 = vector.extract_strided_slice %63 {offsets = [8, 8], sizes = [8, 8], strides = [1, 1]} : vector<16x32xf32> to vector<8x8xf32>
    %cst_84 = arith.constant dense<0.000000e+00> : vector<8x8xf32>
    %182 = tpu.matmul %179, %180, %cst_84 {dimension_numbers = #tpu.dot_dimension_numbers<[1], [1], [0], [0], [0, 0, 1, 0], [], []>} : vector<8x8xf32>, vector<8x8xf32>, vector<8x8xf32> -> vector<8x8xf32>
    %cst_85 = arith.constant 0.353553385 : f32
    %183 = vector.broadcast %cst_85 : f32 to vector<8x8xf32>
    %184 = arith.mulf %182, %183 : vector<8x8xf32>
    %cst_86 = arith.constant -1.000000e+30 : f32
    %185 = vector.broadcast %cst_86 : f32 to vector<8x8xf32>
    %186 = arith.select %16, %184, %185 : vector<8x8xi1>, vector<8x8xf32>
    %cst_87 = arith.constant dense<0xFF800000> : vector<8xf32>
    %187 = vector.multi_reduction <maximumf>, %186, %cst_87 [1] : vector<8x8xf32> to vector<8xf32>
    %188 = vector.shape_cast %187 : vector<8xf32> to vector<8x1xf32>
    %189 = vector.broadcast %188 : vector<8x1xf32> to vector<8x8xf32>
    %190 = arith.subf %186, %189 : vector<8x8xf32>
    %191 = math.exp %190 : vector<8x8xf32>
    %cst_88 = arith.constant dense<0.000000e+00> : vector<8xf32>
    %192 = vector.multi_reduction <add>, %191, %cst_88 [1] : vector<8x8xf32> to vector<8xf32>
    %193 = vector.shape_cast %192 : vector<8xf32> to vector<8x1xf32>
    %194 = tpu.reciprocal %193 {approx = true} : vector<8x1xf32> -> vector<8x1xf32>
    %195 = vector.broadcast %194 : vector<8x1xf32> to vector<8x8xf32>
    %196 = arith.mulf %191, %195 : vector<8x8xf32>
    %c40 = arith.constant 40 : index
    %c0_89 = arith.constant 0 : index
    %197 = vector.load %arg24[%c40, %c0_89] : memref<128x8xf32, #tpu.memory_space<vmem>>, vector<8x8xf32>
    tpu.vector_store %arg24[%c40, %c0_89], %196 {strides = array<i32>} : memref<128x8xf32, #tpu.memory_space<vmem>>, vector<8x8xf32>,
    %cst_90 = arith.constant dense<0.000000e+00> : vector<8x8xf32>
    %198 = tpu.matmul %196, %181, %cst_90 {dimension_numbers = #tpu.dot_dimension_numbers<[1], [0], [0], [1], [0, 0, 1, 1], [], []>} : vector<8x8xf32>, vector<8x8xf32>, vector<8x8xf32> -> vector<8x8xf32>
    %199 = vector.extract_strided_slice %65 {offsets = [8, 0], sizes = [8, 32], strides = [1, 1]} : vector<32x32xf32> to vector<8x32xf32>
    %cst_91 = arith.constant dense<0.000000e+00> : vector<8x32xf32>
    %200 = tpu.matmul %198, %199, %cst_91 {dimension_numbers = #tpu.dot_dimension_numbers<[1], [0], [0], [1], [0, 0, 1, 1], [], []>} : vector<8x8xf32>, vector<8x32xf32>, vector<8x32xf32> -> vector<8x32xf32>
    %201 = arith.addf %178, %200 : vector<8x32xf32>
    %202 = vector.extract_strided_slice %49 {offsets = [8, 16], sizes = [8, 8], strides = [1, 1]} : vector<16x32xf32> to vector<8x8xf32>
    %203 = vector.extract_strided_slice %56 {offsets = [8, 16], sizes = [8, 8], strides = [1, 1]} : vector<16x32xf32> to vector<8x8xf32>
    %204 = vector.extract_strided_slice %63 {offsets = [8, 16], sizes = [8, 8], strides = [1, 1]} : vector<16x32xf32> to vector<8x8xf32>
    %cst_92 = arith.constant dense<0.000000e+00> : vector<8x8xf32>
    %205 = tpu.matmul %202, %203, %cst_92 {dimension_numbers = #tpu.dot_dimension_numbers<[1], [1], [0], [0], [0, 0, 1, 0], [], []>} : vector<8x8xf32>, vector<8x8xf32>, vector<8x8xf32> -> vector<8x8xf32>
    %cst_93 = arith.constant 0.353553385 : f32
    %206 = vector.broadcast %cst_93 : f32 to vector<8x8xf32>
    %207 = arith.mulf %205, %206 : vector<8x8xf32>
    %cst_94 = arith.constant -1.000000e+30 : f32
    %208 = vector.broadcast %cst_94 : f32 to vector<8x8xf32>
    %209 = arith.select %16, %207, %208 : vector<8x8xi1>, vector<8x8xf32>
    %cst_95 = arith.constant dense<0xFF800000> : vector<8xf32>
    %210 = vector.multi_reduction <maximumf>, %209, %cst_95 [1] : vector<8x8xf32> to vector<8xf32>
    %211 = vector.shape_cast %210 : vector<8xf32> to vector<8x1xf32>
    %212 = vector.broadcast %211 : vector<8x1xf32> to vector<8x8xf32>
    %213 = arith.subf %209, %212 : vector<8x8xf32>
    %214 = math.exp %213 : vector<8x8xf32>
    %cst_96 = arith.constant dense<0.000000e+00> : vector<8xf32>
    %215 = vector.multi_reduction <add>, %214, %cst_96 [1] : vector<8x8xf32> to vector<8xf32>
    %216 = vector.shape_cast %215 : vector<8xf32> to vector<8x1xf32>
    %217 = tpu.reciprocal %216 {approx = true} : vector<8x1xf32> -> vector<8x1xf32>
    %218 = vector.broadcast %217 : vector<8x1xf32> to vector<8x8xf32>
    %219 = arith.mulf %214, %218 : vector<8x8xf32>
    %c48 = arith.constant 48 : index
    %c0_97 = arith.constant 0 : index
    %220 = vector.load %arg24[%c48, %c0_97] : memref<128x8xf32, #tpu.memory_space<vmem>>, vector<8x8xf32>
    tpu.vector_store %arg24[%c48, %c0_97], %219 {strides = array<i32>} : memref<128x8xf32, #tpu.memory_space<vmem>>, vector<8x8xf32>,
    %cst_98 = arith.constant dense<0.000000e+00> : vector<8x8xf32>
    %221 = tpu.matmul %219, %204, %cst_98 {dimension_numbers = #tpu.dot_dimension_numbers<[1], [0], [0], [1], [0, 0, 1, 1], [], []>} : vector<8x8xf32>, vector<8x8xf32>, vector<8x8xf32> -> vector<8x8xf32>
    %222 = vector.extract_strided_slice %65 {offsets = [16, 0], sizes = [8, 32], strides = [1, 1]} : vector<32x32xf32> to vector<8x32xf32>
    %cst_99 = arith.constant dense<0.000000e+00> : vector<8x32xf32>
    %223 = tpu.matmul %221, %222, %cst_99 {dimension_numbers = #tpu.dot_dimension_numbers<[1], [0], [0], [1], [0, 0, 1, 1], [], []>} : vector<8x8xf32>, vector<8x32xf32>, vector<8x32xf32> -> vector<8x32xf32>
    %224 = arith.addf %201, %223 : vector<8x32xf32>
    %225 = vector.extract_strided_slice %49 {offsets = [8, 24], sizes = [8, 8], strides = [1, 1]} : vector<16x32xf32> to vector<8x8xf32>
    %226 = vector.extract_strided_slice %56 {offsets = [8, 24], sizes = [8, 8], strides = [1, 1]} : vector<16x32xf32> to vector<8x8xf32>
    %227 = vector.extract_strided_slice %63 {offsets = [8, 24], sizes = [8, 8], strides = [1, 1]} : vector<16x32xf32> to vector<8x8xf32>
    %cst_100 = arith.constant dense<0.000000e+00> : vector<8x8xf32>
    %228 = tpu.matmul %225, %226, %cst_100 {dimension_numbers = #tpu.dot_dimension_numbers<[1], [1], [0], [0], [0, 0, 1, 0], [], []>} : vector<8x8xf32>, vector<8x8xf32>, vector<8x8xf32> -> vector<8x8xf32>
    %cst_101 = arith.constant 0.353553385 : f32
    %229 = vector.broadcast %cst_101 : f32 to vector<8x8xf32>
    %230 = arith.mulf %228, %229 : vector<8x8xf32>
    %cst_102 = arith.constant -1.000000e+30 : f32
    %231 = vector.broadcast %cst_102 : f32 to vector<8x8xf32>
    %232 = arith.select %16, %230, %231 : vector<8x8xi1>, vector<8x8xf32>
    %cst_103 = arith.constant dense<0xFF800000> : vector<8xf32>
    %233 = vector.multi_reduction <maximumf>, %232, %cst_103 [1] : vector<8x8xf32> to vector<8xf32>
    %234 = vector.shape_cast %233 : vector<8xf32> to vector<8x1xf32>
    %235 = vector.broadcast %234 : vector<8x1xf32> to vector<8x8xf32>
    %236 = arith.subf %232, %235 : vector<8x8xf32>
    %237 = math.exp %236 : vector<8x8xf32>
    %cst_104 = arith.constant dense<0.000000e+00> : vector<8xf32>
    %238 = vector.multi_reduction <add>, %237, %cst_104 [1] : vector<8x8xf32> to vector<8xf32>
    %239 = vector.shape_cast %238 : vector<8xf32> to vector<8x1xf32>
    %240 = tpu.reciprocal %239 {approx = true} : vector<8x1xf32> -> vector<8x1xf32>
    %241 = vector.broadcast %240 : vector<8x1xf32> to vector<8x8xf32>
    %242 = arith.mulf %237, %241 : vector<8x8xf32>
    %c56 = arith.constant 56 : index
    %c0_105 = arith.constant 0 : index
    %243 = vector.load %arg24[%c56, %c0_105] : memref<128x8xf32, #tpu.memory_space<vmem>>, vector<8x8xf32>
    tpu.vector_store %arg24[%c56, %c0_105], %242 {strides = array<i32>} : memref<128x8xf32, #tpu.memory_space<vmem>>, vector<8x8xf32>,
    %cst_106 = arith.constant dense<0.000000e+00> : vector<8x8xf32>
    %244 = tpu.matmul %242, %227, %cst_106 {dimension_numbers = #tpu.dot_dimension_numbers<[1], [0], [0], [1], [0, 0, 1, 1], [], []>} : vector<8x8xf32>, vector<8x8xf32>, vector<8x8xf32> -> vector<8x8xf32>
    %245 = vector.extract_strided_slice %65 {offsets = [24, 0], sizes = [8, 32], strides = [1, 1]} : vector<32x32xf32> to vector<8x32xf32>
    %cst_107 = arith.constant dense<0.000000e+00> : vector<8x32xf32>
    %246 = tpu.matmul %244, %245, %cst_107 {dimension_numbers = #tpu.dot_dimension_numbers<[1], [0], [0], [1], [0, 0, 1, 1], [], []>} : vector<8x8xf32>, vector<8x32xf32>, vector<8x32xf32> -> vector<8x32xf32>
    %247 = arith.addf %224, %246 : vector<8x32xf32>
    %248 = tpu.concatenate %156, %247 in 0 : vector<8x32xf32>, vector<8x32xf32> -> vector<16x32xf32>
    %c0_108 = arith.constant 0 : index
    %c0_109 = arith.constant 0 : index
    %c0_110 = arith.constant 0 : index
    %249 = vector.load %arg12[%c0_108, %c0_109, %c0_110] : memref<2x1x32xf32, #tpu.memory_space<vmem>>, vector<1x1x32xf32>
    %250 = vector.shape_cast %249 : vector<1x1x32xf32> to vector<1x32xf32>
    %251 = vector.broadcast %250 : vector<1x32xf32> to vector<16x32xf32>
    %252 = arith.addf %248, %251 : vector<16x32xf32>
    %253 = arith.addf %13, %252 : vector<16x32xf32>
    %c0_111 = arith.constant 0 : index
    %c0_112 = arith.constant 0 : index
    %c0_113 = arith.constant 0 : index
    %254 = vector.load %arg13[%c0_111, %c0_112, %c0_113] : memref<2x1x32xf32, #tpu.memory_space<vmem>>, vector<1x1x32xf32>
    %255 = vector.shape_cast %254 : vector<1x1x32xf32> to vector<1x32xf32>
    %c0_114 = arith.constant 0 : index
    %c0_115 = arith.constant 0 : index
    %c0_116 = arith.constant 0 : index
    %256 = vector.load %arg14[%c0_114, %c0_115, %c0_116] : memref<2x1x32xf32, #tpu.memory_space<vmem>>, vector<1x1x32xf32>
    %257 = vector.shape_cast %256 : vector<1x1x32xf32> to vector<1x32xf32>
    %cst_117 = arith.constant dense<0.000000e+00> : vector<16xf32>
    %258 = vector.multi_reduction <add>, %253, %cst_117 [1] : vector<16x32xf32> to vector<16xf32>
    %259 = vector.shape_cast %258 : vector<16xf32> to vector<16x1xf32>
    %cst_118 = arith.constant 3.200000e+01 : f32
    %260 = vector.broadcast %cst_118 : f32 to vector<16x1xf32>
    %261 = arith.divf %259, %260 : vector<16x1xf32>
    %262 = vector.broadcast %261 : vector<16x1xf32> to vector<16x32xf32>
    %263 = arith.subf %253, %262 : vector<16x32xf32>
    %264 = arith.mulf %263, %263 : vector<16x32xf32>
    %cst_119 = arith.constant dense<0.000000e+00> : vector<16xf32>
    %265 = vector.multi_reduction <add>, %264, %cst_119 [1] : vector<16x32xf32> to vector<16xf32>
    %266 = vector.shape_cast %265 : vector<16xf32> to vector<16x1xf32>
    %cst_120 = arith.constant 3.200000e+01 : f32
    %267 = vector.broadcast %cst_120 : f32 to vector<16x1xf32>
    %268 = arith.divf %266, %267 : vector<16x1xf32>
    %269 = vector.broadcast %261 : vector<16x1xf32> to vector<16x32xf32>
    %270 = arith.subf %253, %269 : vector<16x32xf32>
    %cst_121 = arith.constant 9.99999974E-6 : f32
    %271 = vector.broadcast %cst_121 : f32 to vector<16x1xf32>
    %272 = arith.addf %268, %271 : vector<16x1xf32>
    %273 = math.rsqrt %272 : vector<16x1xf32>
    %274 = vector.broadcast %273 : vector<16x1xf32> to vector<16x32xf32>
    %275 = arith.mulf %270, %274 : vector<16x32xf32>
    %276 = vector.broadcast %255 : vector<1x32xf32> to vector<16x32xf32>
    %277 = arith.mulf %275, %276 : vector<16x32xf32>
    %278 = vector.broadcast %257 : vector<1x32xf32> to vector<16x32xf32>
    %279 = arith.addf %277, %278 : vector<16x32xf32>
    %c0_122 = arith.constant 0 : index
    %c0_123 = arith.constant 0 : index
    %c0_124 = arith.constant 0 : index
    %280 = vector.load %arg15[%c0_122, %c0_123, %c0_124] : memref<2x32x64xf32, #tpu.memory_space<vmem>>, vector<1x32x64xf32>
    %281 = vector.shape_cast %280 : vector<1x32x64xf32> to vector<32x64xf32>
    %cst_125 = arith.constant dense<0.000000e+00> : vector<16x64xf32>
    %282 = tpu.matmul %279, %281, %cst_125 {dimension_numbers = #tpu.dot_dimension_numbers<[1], [0], [0], [1], [0, 0, 1, 1], [], []>} : vector<16x32xf32>, vector<32x64xf32>, vector<16x64xf32> -> vector<16x64xf32>
    %c0_126 = arith.constant 0 : index
    %c0_127 = arith.constant 0 : index
    %c0_128 = arith.constant 0 : index
    %283 = vector.load %arg16[%c0_126, %c0_127, %c0_128] : memref<2x1x64xf32, #tpu.memory_space<vmem>>, vector<1x1x64xf32>
    %284 = vector.shape_cast %283 : vector<1x1x64xf32> to vector<1x64xf32>
    %285 = vector.broadcast %284 : vector<1x64xf32> to vector<16x64xf32>
    %286 = arith.addf %282, %285 : vector<16x64xf32>
    %cst_129 = arith.constant 5.000000e-01 : f32
    %287 = vector.broadcast %cst_129 : f32 to vector<16x64xf32>
    %288 = arith.mulf %287, %286 : vector<16x64xf32>
    %cst_130 = arith.constant 0.707106769 : f32
    %289 = vector.broadcast %cst_130 : f32 to vector<16x64xf32>
    %290 = arith.mulf %286, %289 : vector<16x64xf32>
    %291 = math.absf %290 : vector<16x64xf32>
    %cst_131 = arith.constant 0.327591091 : f32
    %292 = vector.broadcast %cst_131 : f32 to vector<16x64xf32>
    %293 = arith.mulf %292, %291 : vector<16x64xf32>
    %cst_132 = arith.constant 1.000000e+00 : f32
    %294 = vector.broadcast %cst_132 : f32 to vector<16x64xf32>
    %295 = arith.addf %294, %293 : vector<16x64xf32>
    %cst_133 = arith.constant 1.000000e+00 : f32
    %296 = vector.broadcast %cst_133 : f32 to vector<16x64xf32>
    %297 = arith.divf %296, %295 : vector<16x64xf32>
    %cst_134 = arith.constant 1.06140542 : f32
    %298 = vector.broadcast %cst_134 : f32 to vector<16x64xf32>
    %299 = arith.mulf %298, %297 : vector<16x64xf32>
    %cst_135 = arith.constant 1.45315206 : f32
    %300 = vector.broadcast %cst_135 : f32 to vector<16x64xf32>
    %301 = arith.subf %299, %300 : vector<16x64xf32>
    %302 = arith.mulf %301, %297 : vector<16x64xf32>
    %cst_136 = arith.constant 1.42141378 : f32
    %303 = vector.broadcast %cst_136 : f32 to vector<16x64xf32>
    %304 = arith.addf %302, %303 : vector<16x64xf32>
    %305 = arith.mulf %304, %297 : vector<16x64xf32>
    %cst_137 = arith.constant 0.284496725 : f32
    %306 = vector.broadcast %cst_137 : f32 to vector<16x64xf32>
    %307 = arith.subf %305, %306 : vector<16x64xf32>
    %308 = arith.mulf %307, %297 : vector<16x64xf32>
    %cst_138 = arith.constant 0.254829586 : f32
    %309 = vector.broadcast %cst_138 : f32 to vector<16x64xf32>
    %310 = arith.addf %308, %309 : vector<16x64xf32>
    %311 = arith.mulf %310, %297 : vector<16x64xf32>
    %cst_139 = arith.constant 0.000000e+00 : f32
    %312 = vector.broadcast %cst_139 : f32 to vector<16x64xf32>
    %313 = arith.subf %312, %291 : vector<16x64xf32>
    %314 = arith.mulf %313, %291 : vector<16x64xf32>
    %315 = math.exp %314 : vector<16x64xf32>
    %316 = arith.mulf %311, %315 : vector<16x64xf32>
    %cst_140 = arith.constant 1.000000e+00 : f32
    %317 = vector.broadcast %cst_140 : f32 to vector<16x64xf32>
    %318 = arith.subf %317, %316 : vector<16x64xf32>
    %cst_141 = arith.constant 0.000000e+00 : f32
    %319 = vector.broadcast %cst_141 : f32 to vector<16x64xf32>
    %320 = arith.cmpf oge, %290, %319 : vector<16x64xf32>
    %cst_142 = arith.constant 0.000000e+00 : f32
    %321 = vector.broadcast %cst_142 : f32 to vector<16x64xf32>
    %322 = arith.subf %321, %318 : vector<16x64xf32>
    %323 = arith.select %320, %318, %322 : vector<16x64xi1>, vector<16x64xf32>
    %cst_143 = arith.constant 1.000000e+00 : f32
    %324 = vector.broadcast %cst_143 : f32 to vector<16x64xf32>
    %325 = arith.addf %324, %323 : vector<16x64xf32>
    %326 = arith.mulf %288, %325 : vector<16x64xf32>
    %c0_144 = arith.constant 0 : index
    %c0_145 = arith.constant 0 : index
    %c0_146 = arith.constant 0 : index
    %327 = vector.load %arg17[%c0_144, %c0_145, %c0_146] : memref<2x64x32xf32, #tpu.memory_space<vmem>>, vector<1x64x32xf32>
    %328 = vector.shape_cast %327 : vector<1x64x32xf32> to vector<64x32xf32>
    %cst_147 = arith.constant dense<0.000000e+00> : vector<16x32xf32>
    %329 = tpu.matmul %326, %328, %cst_147 {dimension_numbers = #tpu.dot_dimension_numbers<[1], [0], [0], [1], [0, 0, 1, 1], [], []>} : vector<16x64xf32>, vector<64x32xf32>, vector<16x32xf32> -> vector<16x32xf32>
    %c0_148 = arith.constant 0 : index
    %c0_149 = arith.constant 0 : index
    %c0_150 = arith.constant 0 : index
    %330 = vector.load %arg18[%c0_148, %c0_149, %c0_150] : memref<2x1x32xf32, #tpu.memory_space<vmem>>, vector<1x1x32xf32>
    %331 = vector.shape_cast %330 : vector<1x1x32xf32> to vector<1x32xf32>
    %332 = vector.broadcast %331 : vector<1x32xf32> to vector<16x32xf32>
    %333 = arith.addf %329, %332 : vector<16x32xf32>
    %334 = arith.addf %253, %333 : vector<16x32xf32>
    %c1 = arith.constant 1 : index
    %c0_151 = arith.constant 0 : index
    %c0_152 = arith.constant 0 : index
    %335 = vector.load %arg3[%c1, %c0_151, %c0_152] : memref<2x1x32xf32, #tpu.memory_space<vmem>>, vector<1x1x32xf32>
    %336 = vector.shape_cast %335 : vector<1x1x32xf32> to vector<1x32xf32>
    %c1_153 = arith.constant 1 : index
    %c0_154 = arith.constant 0 : index
    %c0_155 = arith.constant 0 : index
    %337 = vector.load %arg4[%c1_153, %c0_154, %c0_155] : memref<2x1x32xf32, #tpu.memory_space<vmem>>, vector<1x1x32xf32>
    %338 = vector.shape_cast %337 : vector<1x1x32xf32> to vector<1x32xf32>
    %cst_156 = arith.constant dense<0.000000e+00> : vector<16xf32>
    %339 = vector.multi_reduction <add>, %334, %cst_156 [1] : vector<16x32xf32> to vector<16xf32>
    %340 = vector.shape_cast %339 : vector<16xf32> to vector<16x1xf32>
    %cst_157 = arith.constant 3.200000e+01 : f32
    %341 = vector.broadcast %cst_157 : f32 to vector<16x1xf32>
    %342 = arith.divf %340, %341 : vector<16x1xf32>
    %343 = vector.broadcast %342 : vector<16x1xf32> to vector<16x32xf32>
    %344 = arith.subf %334, %343 : vector<16x32xf32>
    %345 = arith.mulf %344, %344 : vector<16x32xf32>
    %cst_158 = arith.constant dense<0.000000e+00> : vector<16xf32>
    %346 = vector.multi_reduction <add>, %345, %cst_158 [1] : vector<16x32xf32> to vector<16xf32>
    %347 = vector.shape_cast %346 : vector<16xf32> to vector<16x1xf32>
    %cst_159 = arith.constant 3.200000e+01 : f32
    %348 = vector.broadcast %cst_159 : f32 to vector<16x1xf32>
    %349 = arith.divf %347, %348 : vector<16x1xf32>
    %350 = vector.broadcast %342 : vector<16x1xf32> to vector<16x32xf32>
    %351 = arith.subf %334, %350 : vector<16x32xf32>
    %cst_160 = arith.constant 9.99999974E-6 : f32
    %352 = vector.broadcast %cst_160 : f32 to vector<16x1xf32>
    %353 = arith.addf %349, %352 : vector<16x1xf32>
    %354 = math.rsqrt %353 : vector<16x1xf32>
    %355 = vector.broadcast %354 : vector<16x1xf32> to vector<16x32xf32>
    %356 = arith.mulf %351, %355 : vector<16x32xf32>
    %357 = vector.broadcast %336 : vector<1x32xf32> to vector<16x32xf32>
    %358 = arith.mulf %356, %357 : vector<16x32xf32>
    %359 = vector.broadcast %338 : vector<1x32xf32> to vector<16x32xf32>
    %360 = arith.addf %358, %359 : vector<16x32xf32>
    %c1_161 = arith.constant 1 : index
    %c0_162 = arith.constant 0 : index
    %c0_163 = arith.constant 0 : index
    %361 = vector.load %arg5[%c1_161, %c0_162, %c0_163] : memref<2x32x32xf32, #tpu.memory_space<vmem>>, vector<1x32x32xf32>
    %362 = vector.shape_cast %361 : vector<1x32x32xf32> to vector<32x32xf32>
    %cst_164 = arith.constant dense<0.000000e+00> : vector<16x32xf32>
    %363 = tpu.matmul %360, %362, %cst_164 {dimension_numbers = #tpu.dot_dimension_numbers<[1], [0], [0], [1], [0, 0, 1, 1], [], []>} : vector<16x32xf32>, vector<32x32xf32>, vector<16x32xf32> -> vector<16x32xf32>
    %c1_165 = arith.constant 1 : index
    %c0_166 = arith.constant 0 : index
    %c0_167 = arith.constant 0 : index
    %364 = vector.load %arg6[%c1_165, %c0_166, %c0_167] : memref<2x1x32xf32, #tpu.memory_space<vmem>>, vector<1x1x32xf32>
    %365 = vector.shape_cast %364 : vector<1x1x32xf32> to vector<1x32xf32>
    %366 = vector.broadcast %365 : vector<1x32xf32> to vector<16x32xf32>
    %367 = arith.addf %363, %366 : vector<16x32xf32>
    %c1_168 = arith.constant 1 : index
    %c0_169 = arith.constant 0 : index
    %c0_170 = arith.constant 0 : index
    %368 = vector.load %arg7[%c1_168, %c0_169, %c0_170] : memref<2x32x32xf32, #tpu.memory_space<vmem>>, vector<1x32x32xf32>
    %369 = vector.shape_cast %368 : vector<1x32x32xf32> to vector<32x32xf32>
    %cst_171 = arith.constant dense<0.000000e+00> : vector<16x32xf32>
    %370 = tpu.matmul %360, %369, %cst_171 {dimension_numbers = #tpu.dot_dimension_numbers<[1], [0], [0], [1], [0, 0, 1, 1], [], []>} : vector<16x32xf32>, vector<32x32xf32>, vector<16x32xf32> -> vector<16x32xf32>
    %c1_172 = arith.constant 1 : index
    %c0_173 = arith.constant 0 : index
    %c0_174 = arith.constant 0 : index
    %371 = vector.load %arg8[%c1_172, %c0_173, %c0_174] : memref<2x1x32xf32, #tpu.memory_space<vmem>>, vector<1x1x32xf32>
    %372 = vector.shape_cast %371 : vector<1x1x32xf32> to vector<1x32xf32>
    %373 = vector.broadcast %372 : vector<1x32xf32> to vector<16x32xf32>
    %374 = arith.addf %370, %373 : vector<16x32xf32>
    %c1_175 = arith.constant 1 : index
    %c0_176 = arith.constant 0 : index
    %c0_177 = arith.constant 0 : index
    %375 = vector.load %arg9[%c1_175, %c0_176, %c0_177] : memref<2x32x32xf32, #tpu.memory_space<vmem>>, vector<1x32x32xf32>
    %376 = vector.shape_cast %375 : vector<1x32x32xf32> to vector<32x32xf32>
    %cst_178 = arith.constant dense<0.000000e+00> : vector<16x32xf32>
    %377 = tpu.matmul %360, %376, %cst_178 {dimension_numbers = #tpu.dot_dimension_numbers<[1], [0], [0], [1], [0, 0, 1, 1], [], []>} : vector<16x32xf32>, vector<32x32xf32>, vector<16x32xf32> -> vector<16x32xf32>
    %c1_179 = arith.constant 1 : index
    %c0_180 = arith.constant 0 : index
    %c0_181 = arith.constant 0 : index
    %378 = vector.load %arg10[%c1_179, %c0_180, %c0_181] : memref<2x1x32xf32, #tpu.memory_space<vmem>>, vector<1x1x32xf32>
    %379 = vector.shape_cast %378 : vector<1x1x32xf32> to vector<1x32xf32>
    %380 = vector.broadcast %379 : vector<1x32xf32> to vector<16x32xf32>
    %381 = arith.addf %377, %380 : vector<16x32xf32>
    %c1_182 = arith.constant 1 : index
    %c0_183 = arith.constant 0 : index
    %c0_184 = arith.constant 0 : index
    %382 = vector.load %arg11[%c1_182, %c0_183, %c0_184] : memref<2x32x32xf32, #tpu.memory_space<vmem>>, vector<1x32x32xf32>
    %383 = vector.shape_cast %382 : vector<1x32x32xf32> to vector<32x32xf32>
    %384 = vector.extract_strided_slice %367 {offsets = [0, 0], sizes = [8, 8], strides = [1, 1]} : vector<16x32xf32> to vector<8x8xf32>
    %385 = vector.extract_strided_slice %374 {offsets = [0, 0], sizes = [8, 8], strides = [1, 1]} : vector<16x32xf32> to vector<8x8xf32>
    %386 = vector.extract_strided_slice %381 {offsets = [0, 0], sizes = [8, 8], strides = [1, 1]} : vector<16x32xf32> to vector<8x8xf32>
    %cst_185 = arith.constant dense<0.000000e+00> : vector<8x8xf32>
    %387 = tpu.matmul %384, %385, %cst_185 {dimension_numbers = #tpu.dot_dimension_numbers<[1], [1], [0], [0], [0, 0, 1, 0], [], []>} : vector<8x8xf32>, vector<8x8xf32>, vector<8x8xf32> -> vector<8x8xf32>
    %cst_186 = arith.constant 0.353553385 : f32
    %388 = vector.broadcast %cst_186 : f32 to vector<8x8xf32>
    %389 = arith.mulf %387, %388 : vector<8x8xf32>
    %cst_187 = arith.constant -1.000000e+30 : f32
    %390 = vector.broadcast %cst_187 : f32 to vector<8x8xf32>
    %391 = arith.select %16, %389, %390 : vector<8x8xi1>, vector<8x8xf32>
    %cst_188 = arith.constant dense<0xFF800000> : vector<8xf32>
    %392 = vector.multi_reduction <maximumf>, %391, %cst_188 [1] : vector<8x8xf32> to vector<8xf32>
    %393 = vector.shape_cast %392 : vector<8xf32> to vector<8x1xf32>
    %394 = vector.broadcast %393 : vector<8x1xf32> to vector<8x8xf32>
    %395 = arith.subf %391, %394 : vector<8x8xf32>
    %396 = math.exp %395 : vector<8x8xf32>
    %cst_189 = arith.constant dense<0.000000e+00> : vector<8xf32>
    %397 = vector.multi_reduction <add>, %396, %cst_189 [1] : vector<8x8xf32> to vector<8xf32>
    %398 = vector.shape_cast %397 : vector<8xf32> to vector<8x1xf32>
    %399 = tpu.reciprocal %398 {approx = true} : vector<8x1xf32> -> vector<8x1xf32>
    %400 = vector.broadcast %399 : vector<8x1xf32> to vector<8x8xf32>
    %401 = arith.mulf %396, %400 : vector<8x8xf32>
    %c64 = arith.constant 64 : index
    %c0_190 = arith.constant 0 : index
    %402 = vector.load %arg24[%c64, %c0_190] : memref<128x8xf32, #tpu.memory_space<vmem>>, vector<8x8xf32>
    tpu.vector_store %arg24[%c64, %c0_190], %401 {strides = array<i32>} : memref<128x8xf32, #tpu.memory_space<vmem>>, vector<8x8xf32>,
    %cst_191 = arith.constant dense<0.000000e+00> : vector<8x8xf32>
    %403 = tpu.matmul %401, %386, %cst_191 {dimension_numbers = #tpu.dot_dimension_numbers<[1], [0], [0], [1], [0, 0, 1, 1], [], []>} : vector<8x8xf32>, vector<8x8xf32>, vector<8x8xf32> -> vector<8x8xf32>
    %404 = vector.extract_strided_slice %383 {offsets = [0, 0], sizes = [8, 32], strides = [1, 1]} : vector<32x32xf32> to vector<8x32xf32>
    %cst_192 = arith.constant dense<0.000000e+00> : vector<8x32xf32>
    %405 = tpu.matmul %403, %404, %cst_192 {dimension_numbers = #tpu.dot_dimension_numbers<[1], [0], [0], [1], [0, 0, 1, 1], [], []>} : vector<8x8xf32>, vector<8x32xf32>, vector<8x32xf32> -> vector<8x32xf32>
    %406 = vector.extract_strided_slice %367 {offsets = [0, 8], sizes = [8, 8], strides = [1, 1]} : vector<16x32xf32> to vector<8x8xf32>
    %407 = vector.extract_strided_slice %374 {offsets = [0, 8], sizes = [8, 8], strides = [1, 1]} : vector<16x32xf32> to vector<8x8xf32>
    %408 = vector.extract_strided_slice %381 {offsets = [0, 8], sizes = [8, 8], strides = [1, 1]} : vector<16x32xf32> to vector<8x8xf32>
    %cst_193 = arith.constant dense<0.000000e+00> : vector<8x8xf32>
    %409 = tpu.matmul %406, %407, %cst_193 {dimension_numbers = #tpu.dot_dimension_numbers<[1], [1], [0], [0], [0, 0, 1, 0], [], []>} : vector<8x8xf32>, vector<8x8xf32>, vector<8x8xf32> -> vector<8x8xf32>
    %cst_194 = arith.constant 0.353553385 : f32
    %410 = vector.broadcast %cst_194 : f32 to vector<8x8xf32>
    %411 = arith.mulf %409, %410 : vector<8x8xf32>
    %cst_195 = arith.constant -1.000000e+30 : f32
    %412 = vector.broadcast %cst_195 : f32 to vector<8x8xf32>
    %413 = arith.select %16, %411, %412 : vector<8x8xi1>, vector<8x8xf32>
    %cst_196 = arith.constant dense<0xFF800000> : vector<8xf32>
    %414 = vector.multi_reduction <maximumf>, %413, %cst_196 [1] : vector<8x8xf32> to vector<8xf32>
    %415 = vector.shape_cast %414 : vector<8xf32> to vector<8x1xf32>
    %416 = vector.broadcast %415 : vector<8x1xf32> to vector<8x8xf32>
    %417 = arith.subf %413, %416 : vector<8x8xf32>
    %418 = math.exp %417 : vector<8x8xf32>
    %cst_197 = arith.constant dense<0.000000e+00> : vector<8xf32>
    %419 = vector.multi_reduction <add>, %418, %cst_197 [1] : vector<8x8xf32> to vector<8xf32>
    %420 = vector.shape_cast %419 : vector<8xf32> to vector<8x1xf32>
    %421 = tpu.reciprocal %420 {approx = true} : vector<8x1xf32> -> vector<8x1xf32>
    %422 = vector.broadcast %421 : vector<8x1xf32> to vector<8x8xf32>
    %423 = arith.mulf %418, %422 : vector<8x8xf32>
    %c72 = arith.constant 72 : index
    %c0_198 = arith.constant 0 : index
    %424 = vector.load %arg24[%c72, %c0_198] : memref<128x8xf32, #tpu.memory_space<vmem>>, vector<8x8xf32>
    tpu.vector_store %arg24[%c72, %c0_198], %423 {strides = array<i32>} : memref<128x8xf32, #tpu.memory_space<vmem>>, vector<8x8xf32>,
    %cst_199 = arith.constant dense<0.000000e+00> : vector<8x8xf32>
    %425 = tpu.matmul %423, %408, %cst_199 {dimension_numbers = #tpu.dot_dimension_numbers<[1], [0], [0], [1], [0, 0, 1, 1], [], []>} : vector<8x8xf32>, vector<8x8xf32>, vector<8x8xf32> -> vector<8x8xf32>
    %426 = vector.extract_strided_slice %383 {offsets = [8, 0], sizes = [8, 32], strides = [1, 1]} : vector<32x32xf32> to vector<8x32xf32>
    %cst_200 = arith.constant dense<0.000000e+00> : vector<8x32xf32>
    %427 = tpu.matmul %425, %426, %cst_200 {dimension_numbers = #tpu.dot_dimension_numbers<[1], [0], [0], [1], [0, 0, 1, 1], [], []>} : vector<8x8xf32>, vector<8x32xf32>, vector<8x32xf32> -> vector<8x32xf32>
    %428 = arith.addf %405, %427 : vector<8x32xf32>
    %429 = vector.extract_strided_slice %367 {offsets = [0, 16], sizes = [8, 8], strides = [1, 1]} : vector<16x32xf32> to vector<8x8xf32>
    %430 = vector.extract_strided_slice %374 {offsets = [0, 16], sizes = [8, 8], strides = [1, 1]} : vector<16x32xf32> to vector<8x8xf32>
    %431 = vector.extract_strided_slice %381 {offsets = [0, 16], sizes = [8, 8], strides = [1, 1]} : vector<16x32xf32> to vector<8x8xf32>
    %cst_201 = arith.constant dense<0.000000e+00> : vector<8x8xf32>
    %432 = tpu.matmul %429, %430, %cst_201 {dimension_numbers = #tpu.dot_dimension_numbers<[1], [1], [0], [0], [0, 0, 1, 0], [], []>} : vector<8x8xf32>, vector<8x8xf32>, vector<8x8xf32> -> vector<8x8xf32>
    %cst_202 = arith.constant 0.353553385 : f32
    %433 = vector.broadcast %cst_202 : f32 to vector<8x8xf32>
    %434 = arith.mulf %432, %433 : vector<8x8xf32>
    %cst_203 = arith.constant -1.000000e+30 : f32
    %435 = vector.broadcast %cst_203 : f32 to vector<8x8xf32>
    %436 = arith.select %16, %434, %435 : vector<8x8xi1>, vector<8x8xf32>
    %cst_204 = arith.constant dense<0xFF800000> : vector<8xf32>
    %437 = vector.multi_reduction <maximumf>, %436, %cst_204 [1] : vector<8x8xf32> to vector<8xf32>
    %438 = vector.shape_cast %437 : vector<8xf32> to vector<8x1xf32>
    %439 = vector.broadcast %438 : vector<8x1xf32> to vector<8x8xf32>
    %440 = arith.subf %436, %439 : vector<8x8xf32>
    %441 = math.exp %440 : vector<8x8xf32>
    %cst_205 = arith.constant dense<0.000000e+00> : vector<8xf32>
    %442 = vector.multi_reduction <add>, %441, %cst_205 [1] : vector<8x8xf32> to vector<8xf32>
    %443 = vector.shape_cast %442 : vector<8xf32> to vector<8x1xf32>
    %444 = tpu.reciprocal %443 {approx = true} : vector<8x1xf32> -> vector<8x1xf32>
    %445 = vector.broadcast %444 : vector<8x1xf32> to vector<8x8xf32>
    %446 = arith.mulf %441, %445 : vector<8x8xf32>
    %c80 = arith.constant 80 : index
    %c0_206 = arith.constant 0 : index
    %447 = vector.load %arg24[%c80, %c0_206] : memref<128x8xf32, #tpu.memory_space<vmem>>, vector<8x8xf32>
    tpu.vector_store %arg24[%c80, %c0_206], %446 {strides = array<i32>} : memref<128x8xf32, #tpu.memory_space<vmem>>, vector<8x8xf32>,
    %cst_207 = arith.constant dense<0.000000e+00> : vector<8x8xf32>
    %448 = tpu.matmul %446, %431, %cst_207 {dimension_numbers = #tpu.dot_dimension_numbers<[1], [0], [0], [1], [0, 0, 1, 1], [], []>} : vector<8x8xf32>, vector<8x8xf32>, vector<8x8xf32> -> vector<8x8xf32>
    %449 = vector.extract_strided_slice %383 {offsets = [16, 0], sizes = [8, 32], strides = [1, 1]} : vector<32x32xf32> to vector<8x32xf32>
    %cst_208 = arith.constant dense<0.000000e+00> : vector<8x32xf32>
    %450 = tpu.matmul %448, %449, %cst_208 {dimension_numbers = #tpu.dot_dimension_numbers<[1], [0], [0], [1], [0, 0, 1, 1], [], []>} : vector<8x8xf32>, vector<8x32xf32>, vector<8x32xf32> -> vector<8x32xf32>
    %451 = arith.addf %428, %450 : vector<8x32xf32>
    %452 = vector.extract_strided_slice %367 {offsets = [0, 24], sizes = [8, 8], strides = [1, 1]} : vector<16x32xf32> to vector<8x8xf32>
    %453 = vector.extract_strided_slice %374 {offsets = [0, 24], sizes = [8, 8], strides = [1, 1]} : vector<16x32xf32> to vector<8x8xf32>
    %454 = vector.extract_strided_slice %381 {offsets = [0, 24], sizes = [8, 8], strides = [1, 1]} : vector<16x32xf32> to vector<8x8xf32>
    %cst_209 = arith.constant dense<0.000000e+00> : vector<8x8xf32>
    %455 = tpu.matmul %452, %453, %cst_209 {dimension_numbers = #tpu.dot_dimension_numbers<[1], [1], [0], [0], [0, 0, 1, 0], [], []>} : vector<8x8xf32>, vector<8x8xf32>, vector<8x8xf32> -> vector<8x8xf32>
    %cst_210 = arith.constant 0.353553385 : f32
    %456 = vector.broadcast %cst_210 : f32 to vector<8x8xf32>
    %457 = arith.mulf %455, %456 : vector<8x8xf32>
    %cst_211 = arith.constant -1.000000e+30 : f32
    %458 = vector.broadcast %cst_211 : f32 to vector<8x8xf32>
    %459 = arith.select %16, %457, %458 : vector<8x8xi1>, vector<8x8xf32>
    %cst_212 = arith.constant dense<0xFF800000> : vector<8xf32>
    %460 = vector.multi_reduction <maximumf>, %459, %cst_212 [1] : vector<8x8xf32> to vector<8xf32>
    %461 = vector.shape_cast %460 : vector<8xf32> to vector<8x1xf32>
    %462 = vector.broadcast %461 : vector<8x1xf32> to vector<8x8xf32>
    %463 = arith.subf %459, %462 : vector<8x8xf32>
    %464 = math.exp %463 : vector<8x8xf32>
    %cst_213 = arith.constant dense<0.000000e+00> : vector<8xf32>
    %465 = vector.multi_reduction <add>, %464, %cst_213 [1] : vector<8x8xf32> to vector<8xf32>
    %466 = vector.shape_cast %465 : vector<8xf32> to vector<8x1xf32>
    %467 = tpu.reciprocal %466 {approx = true} : vector<8x1xf32> -> vector<8x1xf32>
    %468 = vector.broadcast %467 : vector<8x1xf32> to vector<8x8xf32>
    %469 = arith.mulf %464, %468 : vector<8x8xf32>
    %c88 = arith.constant 88 : index
    %c0_214 = arith.constant 0 : index
    %470 = vector.load %arg24[%c88, %c0_214] : memref<128x8xf32, #tpu.memory_space<vmem>>, vector<8x8xf32>
    tpu.vector_store %arg24[%c88, %c0_214], %469 {strides = array<i32>} : memref<128x8xf32, #tpu.memory_space<vmem>>, vector<8x8xf32>,
    %cst_215 = arith.constant dense<0.000000e+00> : vector<8x8xf32>
    %471 = tpu.matmul %469, %454, %cst_215 {dimension_numbers = #tpu.dot_dimension_numbers<[1], [0], [0], [1], [0, 0, 1, 1], [], []>} : vector<8x8xf32>, vector<8x8xf32>, vector<8x8xf32> -> vector<8x8xf32>
    %472 = vector.extract_strided_slice %383 {offsets = [24, 0], sizes = [8, 32], strides = [1, 1]} : vector<32x32xf32> to vector<8x32xf32>
    %cst_216 = arith.constant dense<0.000000e+00> : vector<8x32xf32>
    %473 = tpu.matmul %471, %472, %cst_216 {dimension_numbers = #tpu.dot_dimension_numbers<[1], [0], [0], [1], [0, 0, 1, 1], [], []>} : vector<8x8xf32>, vector<8x32xf32>, vector<8x32xf32> -> vector<8x32xf32>
    %474 = arith.addf %451, %473 : vector<8x32xf32>
    %475 = vector.extract_strided_slice %367 {offsets = [8, 0], sizes = [8, 8], strides = [1, 1]} : vector<16x32xf32> to vector<8x8xf32>
    %476 = vector.extract_strided_slice %374 {offsets = [8, 0], sizes = [8, 8], strides = [1, 1]} : vector<16x32xf32> to vector<8x8xf32>
    %477 = vector.extract_strided_slice %381 {offsets = [8, 0], sizes = [8, 8], strides = [1, 1]} : vector<16x32xf32> to vector<8x8xf32>
    %cst_217 = arith.constant dense<0.000000e+00> : vector<8x8xf32>
    %478 = tpu.matmul %475, %476, %cst_217 {dimension_numbers = #tpu.dot_dimension_numbers<[1], [1], [0], [0], [0, 0, 1, 0], [], []>} : vector<8x8xf32>, vector<8x8xf32>, vector<8x8xf32> -> vector<8x8xf32>
    %cst_218 = arith.constant 0.353553385 : f32
    %479 = vector.broadcast %cst_218 : f32 to vector<8x8xf32>
    %480 = arith.mulf %478, %479 : vector<8x8xf32>
    %cst_219 = arith.constant -1.000000e+30 : f32
    %481 = vector.broadcast %cst_219 : f32 to vector<8x8xf32>
    %482 = arith.select %16, %480, %481 : vector<8x8xi1>, vector<8x8xf32>
    %cst_220 = arith.constant dense<0xFF800000> : vector<8xf32>
    %483 = vector.multi_reduction <maximumf>, %482, %cst_220 [1] : vector<8x8xf32> to vector<8xf32>
    %484 = vector.shape_cast %483 : vector<8xf32> to vector<8x1xf32>
    %485 = vector.broadcast %484 : vector<8x1xf32> to vector<8x8xf32>
    %486 = arith.subf %482, %485 : vector<8x8xf32>
    %487 = math.exp %486 : vector<8x8xf32>
    %cst_221 = arith.constant dense<0.000000e+00> : vector<8xf32>
    %488 = vector.multi_reduction <add>, %487, %cst_221 [1] : vector<8x8xf32> to vector<8xf32>
    %489 = vector.shape_cast %488 : vector<8xf32> to vector<8x1xf32>
    %490 = tpu.reciprocal %489 {approx = true} : vector<8x1xf32> -> vector<8x1xf32>
    %491 = vector.broadcast %490 : vector<8x1xf32> to vector<8x8xf32>
    %492 = arith.mulf %487, %491 : vector<8x8xf32>
    %c96 = arith.constant 96 : index
    %c0_222 = arith.constant 0 : index
    %493 = vector.load %arg24[%c96, %c0_222] : memref<128x8xf32, #tpu.memory_space<vmem>>, vector<8x8xf32>
    tpu.vector_store %arg24[%c96, %c0_222], %492 {strides = array<i32>} : memref<128x8xf32, #tpu.memory_space<vmem>>, vector<8x8xf32>,
    %cst_223 = arith.constant dense<0.000000e+00> : vector<8x8xf32>
    %494 = tpu.matmul %492, %477, %cst_223 {dimension_numbers = #tpu.dot_dimension_numbers<[1], [0], [0], [1], [0, 0, 1, 1], [], []>} : vector<8x8xf32>, vector<8x8xf32>, vector<8x8xf32> -> vector<8x8xf32>
    %495 = vector.extract_strided_slice %383 {offsets = [0, 0], sizes = [8, 32], strides = [1, 1]} : vector<32x32xf32> to vector<8x32xf32>
    %cst_224 = arith.constant dense<0.000000e+00> : vector<8x32xf32>
    %496 = tpu.matmul %494, %495, %cst_224 {dimension_numbers = #tpu.dot_dimension_numbers<[1], [0], [0], [1], [0, 0, 1, 1], [], []>} : vector<8x8xf32>, vector<8x32xf32>, vector<8x32xf32> -> vector<8x32xf32>
    %497 = vector.extract_strided_slice %367 {offsets = [8, 8], sizes = [8, 8], strides = [1, 1]} : vector<16x32xf32> to vector<8x8xf32>
    %498 = vector.extract_strided_slice %374 {offsets = [8, 8], sizes = [8, 8], strides = [1, 1]} : vector<16x32xf32> to vector<8x8xf32>
    %499 = vector.extract_strided_slice %381 {offsets = [8, 8], sizes = [8, 8], strides = [1, 1]} : vector<16x32xf32> to vector<8x8xf32>
    %cst_225 = arith.constant dense<0.000000e+00> : vector<8x8xf32>
    %500 = tpu.matmul %497, %498, %cst_225 {dimension_numbers = #tpu.dot_dimension_numbers<[1], [1], [0], [0], [0, 0, 1, 0], [], []>} : vector<8x8xf32>, vector<8x8xf32>, vector<8x8xf32> -> vector<8x8xf32>
    %cst_226 = arith.constant 0.353553385 : f32
    %501 = vector.broadcast %cst_226 : f32 to vector<8x8xf32>
    %502 = arith.mulf %500, %501 : vector<8x8xf32>
    %cst_227 = arith.constant -1.000000e+30 : f32
    %503 = vector.broadcast %cst_227 : f32 to vector<8x8xf32>
    %504 = arith.select %16, %502, %503 : vector<8x8xi1>, vector<8x8xf32>
    %cst_228 = arith.constant dense<0xFF800000> : vector<8xf32>
    %505 = vector.multi_reduction <maximumf>, %504, %cst_228 [1] : vector<8x8xf32> to vector<8xf32>
    %506 = vector.shape_cast %505 : vector<8xf32> to vector<8x1xf32>
    %507 = vector.broadcast %506 : vector<8x1xf32> to vector<8x8xf32>
    %508 = arith.subf %504, %507 : vector<8x8xf32>
    %509 = math.exp %508 : vector<8x8xf32>
    %cst_229 = arith.constant dense<0.000000e+00> : vector<8xf32>
    %510 = vector.multi_reduction <add>, %509, %cst_229 [1] : vector<8x8xf32> to vector<8xf32>
    %511 = vector.shape_cast %510 : vector<8xf32> to vector<8x1xf32>
    %512 = tpu.reciprocal %511 {approx = true} : vector<8x1xf32> -> vector<8x1xf32>
    %513 = vector.broadcast %512 : vector<8x1xf32> to vector<8x8xf32>
    %514 = arith.mulf %509, %513 : vector<8x8xf32>
    %c104 = arith.constant 104 : index
    %c0_230 = arith.constant 0 : index
    %515 = vector.load %arg24[%c104, %c0_230] : memref<128x8xf32, #tpu.memory_space<vmem>>, vector<8x8xf32>
    tpu.vector_store %arg24[%c104, %c0_230], %514 {strides = array<i32>} : memref<128x8xf32, #tpu.memory_space<vmem>>, vector<8x8xf32>,
    %cst_231 = arith.constant dense<0.000000e+00> : vector<8x8xf32>
    %516 = tpu.matmul %514, %499, %cst_231 {dimension_numbers = #tpu.dot_dimension_numbers<[1], [0], [0], [1], [0, 0, 1, 1], [], []>} : vector<8x8xf32>, vector<8x8xf32>, vector<8x8xf32> -> vector<8x8xf32>
    %517 = vector.extract_strided_slice %383 {offsets = [8, 0], sizes = [8, 32], strides = [1, 1]} : vector<32x32xf32> to vector<8x32xf32>
    %cst_232 = arith.constant dense<0.000000e+00> : vector<8x32xf32>
    %518 = tpu.matmul %516, %517, %cst_232 {dimension_numbers = #tpu.dot_dimension_numbers<[1], [0], [0], [1], [0, 0, 1, 1], [], []>} : vector<8x8xf32>, vector<8x32xf32>, vector<8x32xf32> -> vector<8x32xf32>
    %519 = arith.addf %496, %518 : vector<8x32xf32>
    %520 = vector.extract_strided_slice %367 {offsets = [8, 16], sizes = [8, 8], strides = [1, 1]} : vector<16x32xf32> to vector<8x8xf32>
    %521 = vector.extract_strided_slice %374 {offsets = [8, 16], sizes = [8, 8], strides = [1, 1]} : vector<16x32xf32> to vector<8x8xf32>
    %522 = vector.extract_strided_slice %381 {offsets = [8, 16], sizes = [8, 8], strides = [1, 1]} : vector<16x32xf32> to vector<8x8xf32>
    %cst_233 = arith.constant dense<0.000000e+00> : vector<8x8xf32>
    %523 = tpu.matmul %520, %521, %cst_233 {dimension_numbers = #tpu.dot_dimension_numbers<[1], [1], [0], [0], [0, 0, 1, 0], [], []>} : vector<8x8xf32>, vector<8x8xf32>, vector<8x8xf32> -> vector<8x8xf32>
    %cst_234 = arith.constant 0.353553385 : f32
    %524 = vector.broadcast %cst_234 : f32 to vector<8x8xf32>
    %525 = arith.mulf %523, %524 : vector<8x8xf32>
    %cst_235 = arith.constant -1.000000e+30 : f32
    %526 = vector.broadcast %cst_235 : f32 to vector<8x8xf32>
    %527 = arith.select %16, %525, %526 : vector<8x8xi1>, vector<8x8xf32>
    %cst_236 = arith.constant dense<0xFF800000> : vector<8xf32>
    %528 = vector.multi_reduction <maximumf>, %527, %cst_236 [1] : vector<8x8xf32> to vector<8xf32>
    %529 = vector.shape_cast %528 : vector<8xf32> to vector<8x1xf32>
    %530 = vector.broadcast %529 : vector<8x1xf32> to vector<8x8xf32>
    %531 = arith.subf %527, %530 : vector<8x8xf32>
    %532 = math.exp %531 : vector<8x8xf32>
    %cst_237 = arith.constant dense<0.000000e+00> : vector<8xf32>
    %533 = vector.multi_reduction <add>, %532, %cst_237 [1] : vector<8x8xf32> to vector<8xf32>
    %534 = vector.shape_cast %533 : vector<8xf32> to vector<8x1xf32>
    %535 = tpu.reciprocal %534 {approx = true} : vector<8x1xf32> -> vector<8x1xf32>
    %536 = vector.broadcast %535 : vector<8x1xf32> to vector<8x8xf32>
    %537 = arith.mulf %532, %536 : vector<8x8xf32>
    %c112 = arith.constant 112 : index
    %c0_238 = arith.constant 0 : index
    %538 = vector.load %arg24[%c112, %c0_238] : memref<128x8xf32, #tpu.memory_space<vmem>>, vector<8x8xf32>
    tpu.vector_store %arg24[%c112, %c0_238], %537 {strides = array<i32>} : memref<128x8xf32, #tpu.memory_space<vmem>>, vector<8x8xf32>,
    %cst_239 = arith.constant dense<0.000000e+00> : vector<8x8xf32>
    %539 = tpu.matmul %537, %522, %cst_239 {dimension_numbers = #tpu.dot_dimension_numbers<[1], [0], [0], [1], [0, 0, 1, 1], [], []>} : vector<8x8xf32>, vector<8x8xf32>, vector<8x8xf32> -> vector<8x8xf32>
    %540 = vector.extract_strided_slice %383 {offsets = [16, 0], sizes = [8, 32], strides = [1, 1]} : vector<32x32xf32> to vector<8x32xf32>
    %cst_240 = arith.constant dense<0.000000e+00> : vector<8x32xf32>
    %541 = tpu.matmul %539, %540, %cst_240 {dimension_numbers = #tpu.dot_dimension_numbers<[1], [0], [0], [1], [0, 0, 1, 1], [], []>} : vector<8x8xf32>, vector<8x32xf32>, vector<8x32xf32> -> vector<8x32xf32>
    %542 = arith.addf %519, %541 : vector<8x32xf32>
    %543 = vector.extract_strided_slice %367 {offsets = [8, 24], sizes = [8, 8], strides = [1, 1]} : vector<16x32xf32> to vector<8x8xf32>
    %544 = vector.extract_strided_slice %374 {offsets = [8, 24], sizes = [8, 8], strides = [1, 1]} : vector<16x32xf32> to vector<8x8xf32>
    %545 = vector.extract_strided_slice %381 {offsets = [8, 24], sizes = [8, 8], strides = [1, 1]} : vector<16x32xf32> to vector<8x8xf32>
    %cst_241 = arith.constant dense<0.000000e+00> : vector<8x8xf32>
    %546 = tpu.matmul %543, %544, %cst_241 {dimension_numbers = #tpu.dot_dimension_numbers<[1], [1], [0], [0], [0, 0, 1, 0], [], []>} : vector<8x8xf32>, vector<8x8xf32>, vector<8x8xf32> -> vector<8x8xf32>
    %cst_242 = arith.constant 0.353553385 : f32
    %547 = vector.broadcast %cst_242 : f32 to vector<8x8xf32>
    %548 = arith.mulf %546, %547 : vector<8x8xf32>
    %cst_243 = arith.constant -1.000000e+30 : f32
    %549 = vector.broadcast %cst_243 : f32 to vector<8x8xf32>
    %550 = arith.select %16, %548, %549 : vector<8x8xi1>, vector<8x8xf32>
    %cst_244 = arith.constant dense<0xFF800000> : vector<8xf32>
    %551 = vector.multi_reduction <maximumf>, %550, %cst_244 [1] : vector<8x8xf32> to vector<8xf32>
    %552 = vector.shape_cast %551 : vector<8xf32> to vector<8x1xf32>
    %553 = vector.broadcast %552 : vector<8x1xf32> to vector<8x8xf32>
    %554 = arith.subf %550, %553 : vector<8x8xf32>
    %555 = math.exp %554 : vector<8x8xf32>
    %cst_245 = arith.constant dense<0.000000e+00> : vector<8xf32>
    %556 = vector.multi_reduction <add>, %555, %cst_245 [1] : vector<8x8xf32> to vector<8xf32>
    %557 = vector.shape_cast %556 : vector<8xf32> to vector<8x1xf32>
    %558 = tpu.reciprocal %557 {approx = true} : vector<8x1xf32> -> vector<8x1xf32>
    %559 = vector.broadcast %558 : vector<8x1xf32> to vector<8x8xf32>
    %560 = arith.mulf %555, %559 : vector<8x8xf32>
    %c120 = arith.constant 120 : index
    %c0_246 = arith.constant 0 : index
    %561 = vector.load %arg24[%c120, %c0_246] : memref<128x8xf32, #tpu.memory_space<vmem>>, vector<8x8xf32>
    tpu.vector_store %arg24[%c120, %c0_246], %560 {strides = array<i32>} : memref<128x8xf32, #tpu.memory_space<vmem>>, vector<8x8xf32>,
    %cst_247 = arith.constant dense<0.000000e+00> : vector<8x8xf32>
    %562 = tpu.matmul %560, %545, %cst_247 {dimension_numbers = #tpu.dot_dimension_numbers<[1], [0], [0], [1], [0, 0, 1, 1], [], []>} : vector<8x8xf32>, vector<8x8xf32>, vector<8x8xf32> -> vector<8x8xf32>
    %563 = vector.extract_strided_slice %383 {offsets = [24, 0], sizes = [8, 32], strides = [1, 1]} : vector<32x32xf32> to vector<8x32xf32>
    %cst_248 = arith.constant dense<0.000000e+00> : vector<8x32xf32>
    %564 = tpu.matmul %562, %563, %cst_248 {dimension_numbers = #tpu.dot_dimension_numbers<[1], [0], [0], [1], [0, 0, 1, 1], [], []>} : vector<8x8xf32>, vector<8x32xf32>, vector<8x32xf32> -> vector<8x32xf32>
    %565 = arith.addf %542, %564 : vector<8x32xf32>
    %566 = tpu.concatenate %474, %565 in 0 : vector<8x32xf32>, vector<8x32xf32> -> vector<16x32xf32>
    %c1_249 = arith.constant 1 : index
    %c0_250 = arith.constant 0 : index
    %c0_251 = arith.constant 0 : index
    %567 = vector.load %arg12[%c1_249, %c0_250, %c0_251] : memref<2x1x32xf32, #tpu.memory_space<vmem>>, vector<1x1x32xf32>
    %568 = vector.shape_cast %567 : vector<1x1x32xf32> to vector<1x32xf32>
    %569 = vector.broadcast %568 : vector<1x32xf32> to vector<16x32xf32>
    %570 = arith.addf %566, %569 : vector<16x32xf32>
    %571 = arith.addf %334, %570 : vector<16x32xf32>
    %c1_252 = arith.constant 1 : index
    %c0_253 = arith.constant 0 : index
    %c0_254 = arith.constant 0 : index
    %572 = vector.load %arg13[%c1_252, %c0_253, %c0_254] : memref<2x1x32xf32, #tpu.memory_space<vmem>>, vector<1x1x32xf32>
    %573 = vector.shape_cast %572 : vector<1x1x32xf32> to vector<1x32xf32>
    %c1_255 = arith.constant 1 : index
    %c0_256 = arith.constant 0 : index
    %c0_257 = arith.constant 0 : index
    %574 = vector.load %arg14[%c1_255, %c0_256, %c0_257] : memref<2x1x32xf32, #tpu.memory_space<vmem>>, vector<1x1x32xf32>
    %575 = vector.shape_cast %574 : vector<1x1x32xf32> to vector<1x32xf32>
    %cst_258 = arith.constant dense<0.000000e+00> : vector<16xf32>
    %576 = vector.multi_reduction <add>, %571, %cst_258 [1] : vector<16x32xf32> to vector<16xf32>
    %577 = vector.shape_cast %576 : vector<16xf32> to vector<16x1xf32>
    %cst_259 = arith.constant 3.200000e+01 : f32
    %578 = vector.broadcast %cst_259 : f32 to vector<16x1xf32>
    %579 = arith.divf %577, %578 : vector<16x1xf32>
    %580 = vector.broadcast %579 : vector<16x1xf32> to vector<16x32xf32>
    %581 = arith.subf %571, %580 : vector<16x32xf32>
    %582 = arith.mulf %581, %581 : vector<16x32xf32>
    %cst_260 = arith.constant dense<0.000000e+00> : vector<16xf32>
    %583 = vector.multi_reduction <add>, %582, %cst_260 [1] : vector<16x32xf32> to vector<16xf32>
    %584 = vector.shape_cast %583 : vector<16xf32> to vector<16x1xf32>
    %cst_261 = arith.constant 3.200000e+01 : f32
    %585 = vector.broadcast %cst_261 : f32 to vector<16x1xf32>
    %586 = arith.divf %584, %585 : vector<16x1xf32>
    %587 = vector.broadcast %579 : vector<16x1xf32> to vector<16x32xf32>
    %588 = arith.subf %571, %587 : vector<16x32xf32>
    %cst_262 = arith.constant 9.99999974E-6 : f32
    %589 = vector.broadcast %cst_262 : f32 to vector<16x1xf32>
    %590 = arith.addf %586, %589 : vector<16x1xf32>
    %591 = math.rsqrt %590 : vector<16x1xf32>
    %592 = vector.broadcast %591 : vector<16x1xf32> to vector<16x32xf32>
    %593 = arith.mulf %588, %592 : vector<16x32xf32>
    %594 = vector.broadcast %573 : vector<1x32xf32> to vector<16x32xf32>
    %595 = arith.mulf %593, %594 : vector<16x32xf32>
    %596 = vector.broadcast %575 : vector<1x32xf32> to vector<16x32xf32>
    %597 = arith.addf %595, %596 : vector<16x32xf32>
    %c1_263 = arith.constant 1 : index
    %c0_264 = arith.constant 0 : index
    %c0_265 = arith.constant 0 : index
    %598 = vector.load %arg15[%c1_263, %c0_264, %c0_265] : memref<2x32x64xf32, #tpu.memory_space<vmem>>, vector<1x32x64xf32>
    %599 = vector.shape_cast %598 : vector<1x32x64xf32> to vector<32x64xf32>
    %cst_266 = arith.constant dense<0.000000e+00> : vector<16x64xf32>
    %600 = tpu.matmul %597, %599, %cst_266 {dimension_numbers = #tpu.dot_dimension_numbers<[1], [0], [0], [1], [0, 0, 1, 1], [], []>} : vector<16x32xf32>, vector<32x64xf32>, vector<16x64xf32> -> vector<16x64xf32>
    %c1_267 = arith.constant 1 : index
    %c0_268 = arith.constant 0 : index
    %c0_269 = arith.constant 0 : index
    %601 = vector.load %arg16[%c1_267, %c0_268, %c0_269] : memref<2x1x64xf32, #tpu.memory_space<vmem>>, vector<1x1x64xf32>
    %602 = vector.shape_cast %601 : vector<1x1x64xf32> to vector<1x64xf32>
    %603 = vector.broadcast %602 : vector<1x64xf32> to vector<16x64xf32>
    %604 = arith.addf %600, %603 : vector<16x64xf32>
    %cst_270 = arith.constant 5.000000e-01 : f32
    %605 = vector.broadcast %cst_270 : f32 to vector<16x64xf32>
    %606 = arith.mulf %605, %604 : vector<16x64xf32>
    %cst_271 = arith.constant 0.707106769 : f32
    %607 = vector.broadcast %cst_271 : f32 to vector<16x64xf32>
    %608 = arith.mulf %604, %607 : vector<16x64xf32>
    %609 = math.absf %608 : vector<16x64xf32>
    %cst_272 = arith.constant 0.327591091 : f32
    %610 = vector.broadcast %cst_272 : f32 to vector<16x64xf32>
    %611 = arith.mulf %610, %609 : vector<16x64xf32>
    %cst_273 = arith.constant 1.000000e+00 : f32
    %612 = vector.broadcast %cst_273 : f32 to vector<16x64xf32>
    %613 = arith.addf %612, %611 : vector<16x64xf32>
    %cst_274 = arith.constant 1.000000e+00 : f32
    %614 = vector.broadcast %cst_274 : f32 to vector<16x64xf32>
    %615 = arith.divf %614, %613 : vector<16x64xf32>
    %cst_275 = arith.constant 1.06140542 : f32
    %616 = vector.broadcast %cst_275 : f32 to vector<16x64xf32>
    %617 = arith.mulf %616, %615 : vector<16x64xf32>
    %cst_276 = arith.constant 1.45315206 : f32
    %618 = vector.broadcast %cst_276 : f32 to vector<16x64xf32>
    %619 = arith.subf %617, %618 : vector<16x64xf32>
    %620 = arith.mulf %619, %615 : vector<16x64xf32>
    %cst_277 = arith.constant 1.42141378 : f32
    %621 = vector.broadcast %cst_277 : f32 to vector<16x64xf32>
    %622 = arith.addf %620, %621 : vector<16x64xf32>
    %623 = arith.mulf %622, %615 : vector<16x64xf32>
    %cst_278 = arith.constant 0.284496725 : f32
    %624 = vector.broadcast %cst_278 : f32 to vector<16x64xf32>
    %625 = arith.subf %623, %624 : vector<16x64xf32>
    %626 = arith.mulf %625, %615 : vector<16x64xf32>
    %cst_279 = arith.constant 0.254829586 : f32
    %627 = vector.broadcast %cst_279 : f32 to vector<16x64xf32>
    %628 = arith.addf %626, %627 : vector<16x64xf32>
    %629 = arith.mulf %628, %615 : vector<16x64xf32>
    %cst_280 = arith.constant 0.000000e+00 : f32
    %630 = vector.broadcast %cst_280 : f32 to vector<16x64xf32>
    %631 = arith.subf %630, %609 : vector<16x64xf32>
    %632 = arith.mulf %631, %609 : vector<16x64xf32>
    %633 = math.exp %632 : vector<16x64xf32>
    %634 = arith.mulf %629, %633 : vector<16x64xf32>
    %cst_281 = arith.constant 1.000000e+00 : f32
    %635 = vector.broadcast %cst_281 : f32 to vector<16x64xf32>
    %636 = arith.subf %635, %634 : vector<16x64xf32>
    %cst_282 = arith.constant 0.000000e+00 : f32
    %637 = vector.broadcast %cst_282 : f32 to vector<16x64xf32>
    %638 = arith.cmpf oge, %608, %637 : vector<16x64xf32>
    %cst_283 = arith.constant 0.000000e+00 : f32
    %639 = vector.broadcast %cst_283 : f32 to vector<16x64xf32>
    %640 = arith.subf %639, %636 : vector<16x64xf32>
    %641 = arith.select %638, %636, %640 : vector<16x64xi1>, vector<16x64xf32>
    %cst_284 = arith.constant 1.000000e+00 : f32
    %642 = vector.broadcast %cst_284 : f32 to vector<16x64xf32>
    %643 = arith.addf %642, %641 : vector<16x64xf32>
    %644 = arith.mulf %606, %643 : vector<16x64xf32>
    %c1_285 = arith.constant 1 : index
    %c0_286 = arith.constant 0 : index
    %c0_287 = arith.constant 0 : index
    %645 = vector.load %arg17[%c1_285, %c0_286, %c0_287] : memref<2x64x32xf32, #tpu.memory_space<vmem>>, vector<1x64x32xf32>
    %646 = vector.shape_cast %645 : vector<1x64x32xf32> to vector<64x32xf32>
    %cst_288 = arith.constant dense<0.000000e+00> : vector<16x32xf32>
    %647 = tpu.matmul %644, %646, %cst_288 {dimension_numbers = #tpu.dot_dimension_numbers<[1], [0], [0], [1], [0, 0, 1, 1], [], []>} : vector<16x64xf32>, vector<64x32xf32>, vector<16x32xf32> -> vector<16x32xf32>
    %c1_289 = arith.constant 1 : index
    %c0_290 = arith.constant 0 : index
    %c0_291 = arith.constant 0 : index
    %648 = vector.load %arg18[%c1_289, %c0_290, %c0_291] : memref<2x1x32xf32, #tpu.memory_space<vmem>>, vector<1x1x32xf32>
    %649 = vector.shape_cast %648 : vector<1x1x32xf32> to vector<1x32xf32>
    %650 = vector.broadcast %649 : vector<1x32xf32> to vector<16x32xf32>
    %651 = arith.addf %647, %650 : vector<16x32xf32>
    %652 = arith.addf %571, %651 : vector<16x32xf32>
    %c0_292 = arith.constant 0 : index
    %c0_293 = arith.constant 0 : index
    %653 = vector.load %arg19[%c0_292, %c0_293] : memref<1x32xf32, #tpu.memory_space<vmem>>, vector<1x32xf32>
    %c0_294 = arith.constant 0 : index
    %c0_295 = arith.constant 0 : index
    %654 = vector.load %arg20[%c0_294, %c0_295] : memref<1x32xf32, #tpu.memory_space<vmem>>, vector<1x32xf32>
    %cst_296 = arith.constant dense<0.000000e+00> : vector<16xf32>
    %655 = vector.multi_reduction <add>, %652, %cst_296 [1] : vector<16x32xf32> to vector<16xf32>
    %656 = vector.shape_cast %655 : vector<16xf32> to vector<16x1xf32>
    %cst_297 = arith.constant 3.200000e+01 : f32
    %657 = vector.broadcast %cst_297 : f32 to vector<16x1xf32>
    %658 = arith.divf %656, %657 : vector<16x1xf32>
    %659 = vector.broadcast %658 : vector<16x1xf32> to vector<16x32xf32>
    %660 = arith.subf %652, %659 : vector<16x32xf32>
    %661 = arith.mulf %660, %660 : vector<16x32xf32>
    %cst_298 = arith.constant dense<0.000000e+00> : vector<16xf32>
    %662 = vector.multi_reduction <add>, %661, %cst_298 [1] : vector<16x32xf32> to vector<16xf32>
    %663 = vector.shape_cast %662 : vector<16xf32> to vector<16x1xf32>
    %cst_299 = arith.constant 3.200000e+01 : f32
    %664 = vector.broadcast %cst_299 : f32 to vector<16x1xf32>
    %665 = arith.divf %663, %664 : vector<16x1xf32>
    %666 = vector.broadcast %658 : vector<16x1xf32> to vector<16x32xf32>
    %667 = arith.subf %652, %666 : vector<16x32xf32>
    %cst_300 = arith.constant 9.99999974E-6 : f32
    %668 = vector.broadcast %cst_300 : f32 to vector<16x1xf32>
    %669 = arith.addf %665, %668 : vector<16x1xf32>
    %670 = math.rsqrt %669 : vector<16x1xf32>
    %671 = vector.broadcast %670 : vector<16x1xf32> to vector<16x32xf32>
    %672 = arith.mulf %667, %671 : vector<16x32xf32>
    %673 = vector.broadcast %653 : vector<1x32xf32> to vector<16x32xf32>
    %674 = arith.mulf %672, %673 : vector<16x32xf32>
    %675 = vector.broadcast %654 : vector<1x32xf32> to vector<16x32xf32>
    %676 = arith.addf %674, %675 : vector<16x32xf32>
    %c0_301 = arith.constant 0 : index
    %c0_302 = arith.constant 0 : index
    %677 = vector.load %arg21[%c0_301, %c0_302] : memref<32x16xf32, #tpu.memory_space<vmem>>, vector<32x16xf32>
    %cst_303 = arith.constant dense<0.000000e+00> : vector<16x16xf32>
    %678 = tpu.matmul %676, %677, %cst_303 {dimension_numbers = #tpu.dot_dimension_numbers<[1], [0], [0], [1], [0, 0, 1, 1], [], []>} : vector<16x32xf32>, vector<32x16xf32>, vector<16x16xf32> -> vector<16x16xf32>
    %c0_304 = arith.constant 0 : index
    %c0_305 = arith.constant 0 : index
    %679 = vector.load %arg22[%c0_304, %c0_305] : memref<1x16xf32, #tpu.memory_space<vmem>>, vector<1x16xf32>
    %680 = vector.broadcast %679 : vector<1x16xf32> to vector<16x16xf32>
    %681 = arith.addf %678, %680 : vector<16x16xf32>
    %c0_306 = arith.constant 0 : index
    %c0_307 = arith.constant 0 : index
    %682 = vector.load %arg23[%c0_306, %c0_307] : memref<16x16xf32, #tpu.memory_space<vmem>>, vector<16x16xf32>
    tpu.vector_store %arg23[%c0_306, %c0_307], %681 {strides = array<i32>} : memref<16x16xf32, #tpu.memory_space<vmem>>, vector<16x16xf32>,
    return
  }
}

</mosaic_0001>

<bundles_post_ra>
// kernel: grokk_forward.1
= control target key start
LH: loop header
LB: loop body
LE: loop exit
PB: predicated region body
PF: predicated region fallthrough
CT: control target
= control target key end

     0   :  { %s8103_s0 = inlined_call_operand.vmem [shape: s32[16,1], index: 0, kind: input, shape index: {}]   ;;  %s8104_s1 = inlined_call_operand.hbm [shape: f32[16,32], index: 1, kind: input, shape index: {}]   ;;  %s8105_s2 = inlined_call_operand.hbm [shape: f32[8,32], index: 2, kind: input, shape index: {}]   ;;  %s8106_s3 = inlined_call_operand.vmem [shape: f32[2,1,32], index: 3, kind: input, shape index: {}]   ;;  %s8107_s4 = inlined_call_operand.hbm [shape: f32[2,1,32], index: 4, kind: input, shape index: {}]   ;;  %s8108_s5 = inlined_call_operand.vmem [shape: f32[2,32,32], index: 5, kind: input, shape index: {}]   ;;  %s8109_s6 = inlined_call_operand.hbm [shape: f32[2,1,32], index: 6, kind: input, shape index: {}]   ;;  %s8110_s7 = inlined_call_operand.vmem [shape: f32[2,32,32], index: 7, kind: input, shape index: {}]   ;;  %s8111_s8 = inlined_call_operand.hbm [shape: f32[2,1,32], index: 8, kind: input, shape index: {}]   ;;  %s8112_s9 = inlined_call_operand.vmem [shape: f32[2,32,32], index: 9, kind: input, shape index: {}]   ;;  %s8113_s10 = inlined_call_operand.hbm [shape: f32[2,1,32], index: 10, kind: input, shape index: {}]   ;;  %s8114_s11 = inlined_call_operand.vmem [shape: f32[2,32,32], index: 11, kind: input, shape index: {}]   ;;  %s8115_s12 = inlined_call_operand.hbm [shape: f32[2,1,32], index: 12, kind: input, shape index: {}]   ;;  %s8116_s13 = inlined_call_operand.hbm [shape: f32[2,1,32], index: 13, kind: input, shape index: {}]   ;;  %s8117_s14 = inlined_call_operand.hbm [shape: f32[2,1,32], index: 14, kind: input, shape index: {}]   ;;  %s8118_s15 = inlined_call_operand.hbm [shape: f32[2,32,64], index: 15, kind: input, shape index: {}]   ;;  %s8119_s16 = inlined_call_operand.hbm [shape: f32[2,1,64], index: 16, kind: input, shape index: {}]   ;;  %s8120_s17 = inlined_call_operand.vmem [shape: f32[2,64,32], index: 17, kind: input, shape index: {}]   ;;  %s8121_s18 = inlined_call_operand.hbm [shape: f32[2,1,32], index: 18, kind: input, shape index: {}]   ;;  %s8122_s19 = inlined_call_operand.hbm [shape: f32[1,32], index: 19, kind: input, shape index: {}]   ;;  %s8123_s20 = inlined_call_operand.hbm [shape: f32[1,32], index: 20, kind: input, shape index: {}]   ;;  %s8124_s21 = inlined_call_operand.vmem [shape: f32[32,16], index: 21, kind: input, shape index: {}]   ;;  %s8125_s22 = inlined_call_operand.hbm [shape: f32[1,16], index: 22, kind: input, shape index: {}]   ;;  %s8126_s23 = inlined_call_operand.hbm [shape: f32[16,16], index: 23, kind: output, shape index: {0}]   ;;  %s8127_s24 = inlined_call_operand.vmem [shape: f32[128,8], index: 24, kind: output, shape index: {1}]  }
   0x1   :  { %8138 = sst [smem:[#allocation36_spill]] %s8103_s0 }
   0x2   :  { %8139 = sst [smem:[#allocation37_spill]] %s8104_s1 }
   0x3   :  { %8140 = sst [smem:[#allocation38_spill]] %s8105_s2 }
   0x4   :  { %8141 = sst [smem:[#allocation39_spill]] %s8106_s3 }
   0x5   :  { %8142 = sst [smem:[#allocation40_spill]] %s8107_s4 }
   0x6   :  { %8143 = sst [smem:[#allocation41_spill]] %s8108_s5 }
   0x7   :  { %8144 = sst [smem:[#allocation42_spill]] %s8109_s6 }
   0x8   :  { %8145 = sst [smem:[#allocation43_spill]] %s8110_s7 }
   0x9   :  { %8146 = sst [smem:[#allocation44_spill]] %s8111_s8 }
   0xa   :  { %8147 = sst [smem:[#allocation45_spill]] %s8126_s23 }
   0xb   :  { %30 = vsyncpa [#allocation3], 0 }
   0xc   :  { %31 = vsyncpa [#allocation6], 0 }
   0xd   :  { %32 = vsyncpa [#allocation9], 0 }
   0xe   :  { %33 = vsyncpa [#allocation12], 0 }
   0xf   :  { %34 = vsyncpa [#allocation15], 0 }
  0x10   :  { %35 = vsyncpa [#allocation18], 0 }
  0x11   :  { %36 = vsyncpa [#allocation21], 0 }
  0x12   :  { %37 = vsyncpa [#allocation24], 0 }
  0x13   :  { %38 = vsyncpa [#allocation4], 0  ;;  %s6941_s5 = smov [#allocation5]   ;;  %s8148_s6 = sld [smem:[#allocation38_spill]] }
  0x14   :  { %s59_s26 = sshll.u32 %s6941_s5, 4  ;;  %s60_s26 = int_to_ptr.vmem [resolvable:$true] %s59_s26 }
  0x19   :  { %s6571_s2 = scalar_lea.hbm %s8148_s6, 128 }
  0x1a   :  { %p6572_p0 = scmp.ne.s32.totalorder %s8148_s6, %s6571_s2  ;;  %p6575_p1 = scmp.lt.u32.totalorder %s6571_s2, %s8148_s6 }
  0x1c   :  { %p6577_p2 = pnand %p6575_p1, %p6572_p0 }
  0x1e   :  { %6580 = shalt.err (!%p6577_p2)
}
  0x1f   :  { %s6581_s3 = scalar_lea.vmem %s60_s26, 128  ;;  %p6586_p4 = scmp.lt.s32.totalorder %s60_s26, %s60_s26 }
  0x20   :  { %p6582_p3 = scmp.ne.s32.totalorder %s60_s26, %s6581_s3  ;;  %p6587_p5 = scmp.lt.s32.totalorder %s6581_s3, %s6581_s3 }
  0x22   :  { %p6588_p6 = por %p6587_p5, %p6586_p4 }
  0x24   :  { %p6589_p7 = pnand %p6588_p6, %p6582_p3 }
  0x26   :  { %6592 = shalt.err (!%p6589_p7)
}
  0x27   :  { %62 = dma.hbm_to_vmem [thread:$0]  %s8148_s6, 128, %s60_s26, [#allocation6]  }
  0x28   :  { %s6942_s4 = smov [#allocation8]   ;;  %s6943_s5 = smov [#allocation11]  }
  0x29   :  { %s84_s1 = sshll.u32 %s6942_s4, 4  ;;  %s112_s27 = sshll.u32 %s6943_s5, 4  ;;  %s85_s1 = int_to_ptr.vmem [resolvable:$true] %s84_s1  ;;  %s113_s27 = int_to_ptr.vmem [resolvable:$true] %s112_s27 }
  0x2a   :  { %s8149_s29 = sld [smem:[#allocation42_spill]] }
  0x30   :  { %s6593_s0 = scalar_lea.hbm %s8149_s29, 32 }
  0x31   :  { %p6594_p8 = scmp.ne.s32.totalorder %s8149_s29, %s6593_s0  ;;  %p6597_p9 = scmp.lt.u32.totalorder %s6593_s0, %s8149_s29 }
  0x33   :  { %p6599_p10 = pnand %p6597_p9, %p6594_p8 }
  0x35   :  { %6602 = shalt.err (!%p6599_p10)
}
  0x36   :  { %s6603_s26 = scalar_lea.vmem %s85_s1, 32  ;;  %p6608_p12 = scmp.lt.s32.totalorder %s85_s1, %s85_s1 }
  0x37   :  { %p6604_p11 = scmp.ne.s32.totalorder %s85_s1, %s6603_s26  ;;  %p6609_p13 = scmp.lt.s32.totalorder %s6603_s26, %s6603_s26 }
  0x39   :  { %p6610_p0 = por %p6609_p13, %p6608_p12 }
  0x3b   :  { %p6611_p1 = pnand %p6610_p0, %p6604_p11 }
  0x3d   :  { %6614 = shalt.err (!%p6611_p1)
}
  0x3e   :  { %s6944_s6 = smov 16   ;;  %s6945_s25 = smov 1  }
  0x3f   :  { %90 = dma.hbm_to_vmem [thread:$0]  %s8149_s29, 32, %s85_s1, [#allocation9], %s6944_s6, %s6944_s6, %s6945_s25  }
  0x40   :  { %s6615_s28 = scalar_lea.hbm %s8113_s10, 32 }
  0x41   :  { %p6616_p2 = scmp.ne.s32.totalorder %s8113_s10, %s6615_s28  ;;  %p6619_p3 = scmp.lt.u32.totalorder %s6615_s28, %s8113_s10 }
  0x43   :  { %p6621_p4 = pnand %p6619_p3, %p6616_p2 }
  0x45   :  { %6624 = shalt.err (!%p6621_p4)
}
  0x46   :  { %s6625_s3 = scalar_lea.vmem %s113_s27, 32  ;;  %p6630_p6 = scmp.lt.s32.totalorder %s113_s27, %s113_s27 }
  0x47   :  { %p6626_p5 = scmp.ne.s32.totalorder %s113_s27, %s6625_s3  ;;  %p6631_p7 = scmp.lt.s32.totalorder %s6625_s3, %s6625_s3 }
  0x49   :  { %p6632_p8 = por %p6631_p7, %p6630_p6 }
  0x4b   :  { %p6633_p9 = pnand %p6632_p8, %p6626_p5 }
  0x4d   :  { %6636 = shalt.err (!%p6633_p9)
}
  0x4e   :  { %118 = dma.hbm_to_vmem [thread:$0]  %s8113_s10, 32, %s113_s27, [#allocation12], %s6944_s6, %s6944_s6, %s6945_s25  }
  0x4f   :  { %s6946_s26 = smov [#allocation14]   ;;  %s6637_s5 = scalar_lea.hbm %s8116_s13, 32 }
  0x50   :  { %s138_s8 = sshll.u32 %s6946_s26, 4  ;;  %p6638_p10 = scmp.ne.s32.totalorder %s8116_s13, %s6637_s5  ;;  %s139_s8 = int_to_ptr.vmem [resolvable:$true] %s138_s8 }
  0x51   :  { %p6641_p11 = scmp.lt.u32.totalorder %s6637_s5, %s8116_s13 }
  0x53   :  { %p6643_p12 = pnand %p6641_p11, %p6638_p10 }
  0x55   :  { %6646 = shalt.err (!%p6643_p12)
}
  0x56   :  { %s6647_s30 = scalar_lea.vmem %s139_s8, 32  ;;  %p6652_p0 = scmp.lt.s32.totalorder %s139_s8, %s139_s8 }
  0x57   :  { %p6648_p13 = scmp.ne.s32.totalorder %s139_s8, %s6647_s30  ;;  %p6653_p1 = scmp.lt.s32.totalorder %s6647_s30, %s6647_s30 }
  0x59   :  { %p6654_p2 = por %p6653_p1, %p6652_p0 }
  0x5b   :  { %p6655_p3 = pnand %p6654_p2, %p6648_p13 }
  0x5d   :  { %6658 = shalt.err (!%p6655_p3)
}
  0x5e   :  { %144 = dma.hbm_to_vmem [thread:$0]  %s8116_s13, 32, %s139_s8, [#allocation15], %s6944_s6, %s6944_s6, %s6945_s25  }
  0x5f   :  { %s6947_s3 = smov [#allocation17]   ;;  %s6948_s29 = smov [#allocation20]  }
  0x60   :  { %s162_s1 = sshll.u32 %s6947_s3, 4  ;;  %s188_s26 = sshll.u32 %s6948_s29, 4  ;;  %s163_s1 = int_to_ptr.vmem [resolvable:$true] %s162_s1  ;;  %s7149_s26 = int_to_ptr.vmem [resolvable:$true] %s188_s26 }
  0x61   :  { %s6659_s5 = scalar_lea.hbm %s8118_s15, 1024 }
  0x62   :  { %p6660_p4 = scmp.ne.s32.totalorder %s8118_s15, %s6659_s5  ;;  %p6663_p5 = scmp.lt.u32.totalorder %s6659_s5, %s8118_s15 }
  0x64   :  { %p6665_p6 = pnand %p6663_p5, %p6660_p4 }
  0x66   :  { %6668 = shalt.err (!%p6665_p6)
}
  0x67   :  { %s6669_s13 = scalar_lea.vmem %s163_s1, 1024  ;;  %p6674_p8 = scmp.lt.s32.totalorder %s163_s1, %s163_s1 }
  0x68   :  { %p6670_p7 = scmp.ne.s32.totalorder %s163_s1, %s6669_s13  ;;  %p6675_p9 = scmp.lt.s32.totalorder %s6669_s13, %s6669_s13 }
  0x6a   :  { %p6676_p10 = por %p6675_p9, %p6674_p8 }
  0x6c   :  { %p6677_p11 = pnand %p6676_p10, %p6670_p7 }
  0x6e   :  { %6680 = shalt.err (!%p6677_p11)
}
  0x6f   :  { %s6949_s8 = smov 128   ;;  %s6950_s30 = smov 8  }
  0x70   :  { %168 = dma.hbm_to_vmem [thread:$0]  %s8118_s15, 1024, %s163_s1, [#allocation18], %s6949_s8, %s6949_s8, %s6950_s30  }
  0x71   :  { %s6681_s4 = scalar_lea.hbm %s8121_s18, 32 }
  0x72   :  { %p6682_p12 = scmp.ne.s32.totalorder %s8121_s18, %s6681_s4  ;;  %p6685_p13 = scmp.lt.u32.totalorder %s6681_s4, %s8121_s18 }
  0x74   :  { %p6687_p0 = pnand %p6685_p13, %p6682_p12 }
  0x76   :  { %6690 = shalt.err (!%p6687_p0)
}
  0x77   :  { %s6691_s0 = scalar_lea.vmem %s7149_s26, 32  ;;  %p6696_p2 = scmp.lt.s32.totalorder %s7149_s26, %s7149_s26 }
  0x78   :  { %p6692_p1 = scmp.ne.s32.totalorder %s7149_s26, %s6691_s0  ;;  %p6697_p3 = scmp.lt.s32.totalorder %s6691_s0, %s6691_s0 }
  0x7a   :  { %p6698_p4 = por %p6697_p3, %p6696_p2 }
  0x7c   :  { %p6699_p5 = pnand %p6698_p4, %p6692_p1 }
  0x7e   :  { %6702 = shalt.err (!%p6699_p5)
}
  0x7f   :  { %194 = dma.hbm_to_vmem [thread:$0]  %s8121_s18, 32, %s7149_s26, [#allocation21], %s6944_s6, %s6944_s6, %s6945_s25  }
  0x80   :  { %s6951_s7 = smov [#allocation23]   ;;  %s6952_s10 = smov [#allocation2]  }
  0x81   :  { %s211_s13 = sshll.u32 %s6951_s7, 4  ;;  %s46_s27 = sshll.u32 %s6952_s10, 4  ;;  %s212_s13 = int_to_ptr.vmem [resolvable:$true] %s211_s13  ;;  %s7186_s27 = int_to_ptr.vmem [resolvable:$true] %s46_s27 }
  0x82   :  { %s6703_s4 = scalar_lea.hbm %s8123_s20, 16 }
  0x83   :  { %p6704_p6 = scmp.ne.s32.totalorder %s8123_s20, %s6703_s4  ;;  %p6707_p7 = scmp.lt.u32.totalorder %s6703_s4, %s8123_s20 }
  0x85   :  { %p6709_p8 = pnand %p6707_p7, %p6704_p6 }
  0x87   :  { %6712 = shalt.err (!%p6709_p8)
}
  0x88   :  { %s6713_s18 = scalar_lea.vmem %s212_s13, 16  ;;  %s6717_s26 = scalar_lea.vmem %s212_s13, 32 }
  0x89   :  { %p6714_p9 = scmp.ne.s32.totalorder %s212_s13, %s6713_s18  ;;  %p6718_p10 = scmp.lt.s32.totalorder %s212_s13, %s212_s13 }
  0x8a   :  { %p6719_p11 = scmp.lt.s32.totalorder %s6717_s26, %s6713_s18 }
  0x8c   :  { %p6720_p12 = por %p6719_p11, %p6718_p10 }
  0x8e   :  { %p6721_p13 = pnand %p6720_p12, %p6714_p9 }
  0x90   :  { %6724 = shalt.err (!%p6721_p13)
}
  0x91   :  { %214 = dma.hbm_to_vmem [thread:$0]  %s8123_s20, 16, %s212_s13, [#allocation24]  }
  0x92   :  { %s8150_s10 = sld [smem:[#allocation37_spill]] }
  0x98   :  { %s6725_s3 = scalar_lea.hbm %s8150_s10, 256 }
  0x99   :  { %p6726_p0 = scmp.ne.s32.totalorder %s8150_s10, %s6725_s3  ;;  %p6729_p1 = scmp.lt.u32.totalorder %s6725_s3, %s8150_s10 }
  0x9b   :  { %p6731_p2 = pnand %p6729_p1, %p6726_p0 }
  0x9d   :  { %6734 = shalt.err (!%p6731_p2)
}
  0x9e   :  { %s6735_s28 = scalar_lea.vmem %s7186_s27, 256  ;;  %p6740_p4 = scmp.lt.s32.totalorder %s7186_s27, %s7186_s27 }
  0x9f   :  { %p6736_p3 = scmp.ne.s32.totalorder %s7186_s27, %s6735_s28  ;;  %p6741_p5 = scmp.lt.s32.totalorder %s6735_s28, %s6735_s28 }
  0xa1   :  { %p6742_p6 = por %p6741_p5, %p6740_p4 }
  0xa3   :  { %p6743_p7 = pnand %p6742_p6, %p6736_p3 }
  0xa5   :  { %6746 = shalt.err (!%p6743_p7)
}
  0xa6   :  { %52 = dma.hbm_to_vmem [thread:$0]  %s8150_s10, 256, %s7186_s27, [#allocation3], %s6949_s8, %s6949_s8, %s6950_s30  }
  0xa7   :  { %s6953_s2 = smov [#allocation7]   ;;  %s6954_s26 = smov [#allocation10]  }
  0xa8   :  { %s70_s18 = sshll.u32 %s6953_s2, 4  ;;  %s98_s0 = sshll.u32 %s6954_s26, 4  ;;  %s71_s18 = int_to_ptr.vmem [resolvable:$true] %s70_s18  ;;  %s7220_s0 = int_to_ptr.vmem [resolvable:$true] %s98_s0 }
  0xa9   :  { %s8151_s7 = sld [smem:[#allocation40_spill]] }
  0xaf   :  { %s6747_s3 = scalar_lea.hbm %s8151_s7, 32 }
  0xb0   :  { %p6748_p8 = scmp.ne.s32.totalorder %s8151_s7, %s6747_s3  ;;  %p6751_p9 = scmp.lt.u32.totalorder %s6747_s3, %s8151_s7 }
  0xb2   :  { %p6753_p10 = pnand %p6751_p9, %p6748_p8 }
  0xb4   :  { %6756 = shalt.err (!%p6753_p10)
}
  0xb5   :  { %s6757_s27 = scalar_lea.vmem %s71_s18, 32  ;;  %p6762_p12 = scmp.lt.s32.totalorder %s71_s18, %s71_s18 }
  0xb6   :  { %p6758_p11 = scmp.ne.s32.totalorder %s71_s18, %s6757_s27  ;;  %p6763_p13 = scmp.lt.s32.totalorder %s6757_s27, %s6757_s27 }
  0xb8   :  { %p6764_p0 = por %p6763_p13, %p6762_p12 }
  0xba   :  { %p6765_p1 = pnand %p6764_p0, %p6758_p11 }
  0xbc   :  { %6768 = shalt.err (!%p6765_p1)
}
  0xbd   :  { %76 = dma.hbm_to_vmem [thread:$0]  %s8151_s7, 32, %s71_s18, [#allocation6], %s6944_s6, %s6944_s6, %s6945_s25  }
  0xbe   :  { %s8152_s2 = sld [smem:[#allocation44_spill]] }
  0xc4   :  { %s6769_s26 = scalar_lea.hbm %s8152_s2, 32 }
  0xc5   :  { %p6770_p2 = scmp.ne.s32.totalorder %s8152_s2, %s6769_s26  ;;  %p6773_p3 = scmp.lt.u32.totalorder %s6769_s26, %s8152_s2 }
  0xc7   :  { %p6775_p4 = pnand %p6773_p3, %p6770_p2 }
  0xc9   :  { %6778 = shalt.err (!%p6775_p4)
}
  0xca   :  { %s6779_s4 = scalar_lea.vmem %s7220_s0, 32  ;;  %p6784_p6 = scmp.lt.s32.totalorder %s7220_s0, %s7220_s0 }
  0xcb   :  { %p6780_p5 = scmp.ne.s32.totalorder %s7220_s0, %s6779_s4  ;;  %p6785_p7 = scmp.lt.s32.totalorder %s6779_s4, %s6779_s4 }
  0xcd   :  { %p6786_p8 = por %p6785_p7, %p6784_p6 }
  0xcf   :  { %p6787_p9 = pnand %p6786_p8, %p6780_p5 }
  0xd1   :  { %6790 = shalt.err (!%p6787_p9)
}
  0xd2   :  { %104 = dma.hbm_to_vmem [thread:$0]  %s8152_s2, 32, %s7220_s0, [#allocation9], %s6944_s6, %s6944_s6, %s6945_s25  }
  0xd3   :  { %s6955_s23 = smov [#allocation13]   ;;  %s6956_s27 = smov [#allocation16]  }
  0xd4   :  { %s126_s5 = sshll.u32 %s6955_s23, 4  ;;  %s150_s10 = sshll.u32 %s6956_s27, 4  ;;  %s127_s5 = int_to_ptr.vmem [resolvable:$true] %s126_s5  ;;  %s7257_s10 = int_to_ptr.vmem [resolvable:$true] %s150_s10 }
  0xd5   :  { %s6791_s13 = scalar_lea.hbm %s8115_s12, 32 }
  0xd6   :  { %p6792_p10 = scmp.ne.s32.totalorder %s8115_s12, %s6791_s13  ;;  %p6795_p11 = scmp.lt.u32.totalorder %s6791_s13, %s8115_s12 }
  0xd8   :  { %p6797_p12 = pnand %p6795_p11, %p6792_p10 }
  0xda   :  { %6800 = shalt.err (!%p6797_p12)
}
  0xdb   :  { %s6801_s0 = scalar_lea.vmem %s127_s5, 32  ;;  %p6806_p0 = scmp.lt.s32.totalorder %s127_s5, %s127_s5 }
  0xdc   :  { %p6802_p13 = scmp.ne.s32.totalorder %s127_s5, %s6801_s0  ;;  %p6807_p1 = scmp.lt.s32.totalorder %s6801_s0, %s6801_s0 }
  0xde   :  { %p6808_p2 = por %p6807_p1, %p6806_p0 }
  0xe0   :  { %p6809_p3 = pnand %p6808_p2, %p6802_p13 }
  0xe2   :  { %6812 = shalt.err (!%p6809_p3)
}
  0xe3   :  { %132 = dma.hbm_to_vmem [thread:$0]  %s8115_s12, 32, %s127_s5, [#allocation12], %s6944_s6, %s6944_s6, %s6945_s25  }
  0xe4   :  { %s6813_s7 = scalar_lea.hbm %s8117_s14, 32 }
  0xe5   :  { %p6814_p4 = scmp.ne.s32.totalorder %s8117_s14, %s6813_s7  ;;  %p6817_p5 = scmp.lt.u32.totalorder %s6813_s7, %s8117_s14 }
  0xe7   :  { %p6819_p6 = pnand %p6817_p5, %p6814_p4 }
  0xe9   :  { %6822 = shalt.err (!%p6819_p6)
}
  0xea   :  { %s6823_s13 = scalar_lea.vmem %s7257_s10, 32  ;;  %p6828_p8 = scmp.lt.s32.totalorder %s7257_s10, %s7257_s10 }
  0xeb   :  { %p6824_p7 = scmp.ne.s32.totalorder %s7257_s10, %s6823_s13  ;;  %p6829_p9 = scmp.lt.s32.totalorder %s6823_s13, %s6823_s13 }
  0xed   :  { %p6830_p10 = por %p6829_p9, %p6828_p8 }
  0xef   :  { %p6831_p11 = pnand %p6830_p10, %p6824_p7 }
  0xf1   :  { %6834 = shalt.err (!%p6831_p11)
}
  0xf2   :  { %156 = dma.hbm_to_vmem [thread:$0]  %s8117_s14, 32, %s7257_s10, [#allocation15], %s6944_s6, %s6944_s6, %s6945_s25  }
  0xf3   :  { %s6957_s26 = smov [#allocation19]   ;;  %s6958_s1 = smov [#allocation22]  }
  0xf4   :  { %s174_s15 = sshll.u32 %s6957_s26, 4  ;;  %s201_s3 = sshll.u32 %s6958_s1, 4  ;;  %s175_s15 = int_to_ptr.vmem [resolvable:$true] %s174_s15  ;;  %s202_s3 = int_to_ptr.vmem [resolvable:$true] %s201_s3 }
  0xf5   :  { %s6835_s29 = scalar_lea.hbm %s8119_s16, 32 }
  0xf6   :  { %p6836_p12 = scmp.ne.s32.totalorder %s8119_s16, %s6835_s29  ;;  %p6839_p13 = scmp.lt.u32.totalorder %s6835_s29, %s8119_s16 }
  0xf8   :  { %p6841_p0 = pnand %p6839_p13, %p6836_p12 }
  0xfa   :  { %6844 = shalt.err (!%p6841_p0)
}
  0xfb   :  { %s6845_s14 = scalar_lea.vmem %s175_s15, 32  ;;  %p6850_p2 = scmp.lt.s32.totalorder %s175_s15, %s175_s15 }
  0xfc   :  { %p6846_p1 = scmp.ne.s32.totalorder %s175_s15, %s6845_s14  ;;  %p6851_p3 = scmp.lt.s32.totalorder %s6845_s14, %s6845_s14 }
  0xfe   :  { %p6852_p4 = por %p6851_p3, %p6850_p2 }
 0x100   :  { %p6853_p5 = pnand %p6852_p4, %p6846_p1 }
 0x102   :  { %6856 = shalt.err (!%p6853_p5)
}
 0x103   :  { %180 = dma.hbm_to_vmem [thread:$0]  %s8119_s16, 32, %s175_s15, [#allocation18], %s6944_s6, %s6944_s6, %s6945_s25  }
 0x104   :  { %s6857_s13 = scalar_lea.hbm %s8122_s19, 16 }
 0x105   :  { %p6858_p6 = scmp.ne.s32.totalorder %s8122_s19, %s6857_s13  ;;  %p6861_p7 = scmp.lt.u32.totalorder %s6857_s13, %s8122_s19 }
 0x107   :  { %p6863_p8 = pnand %p6861_p7, %p6858_p6 }
 0x109   :  { %6866 = shalt.err (!%p6863_p8)
}
 0x10a   :  { %s6867_s0 = scalar_lea.vmem %s202_s3, 16  ;;  %s6871_s2 = scalar_lea.vmem %s202_s3, 32 }
 0x10b   :  { %p6868_p9 = scmp.ne.s32.totalorder %s202_s3, %s6867_s0  ;;  %p6872_p10 = scmp.lt.s32.totalorder %s202_s3, %s202_s3 }
 0x10c   :  { %p6873_p11 = scmp.lt.s32.totalorder %s6871_s2, %s6867_s0 }
 0x10e   :  { %p6874_p12 = por %p6873_p11, %p6872_p10 }
 0x110   :  { %p6875_p13 = pnand %p6874_p12, %p6868_p9 }
 0x112   :  { %6878 = shalt.err (!%p6875_p13)
}
 0x113   :  { %204 = dma.hbm_to_vmem [thread:$0]  %s8122_s19, 16, %s202_s3, [#allocation21]  }
 0x114   :  { %s6959_s25 = smov [#allocation25]   ;;  %s6879_s18 = scalar_lea.hbm %s8125_s22, 16 }
 0x115   :  { %s223_s15 = sshll.u32 %s6959_s25, 4  ;;  %p6880_p0 = scmp.ne.s32.totalorder %s8125_s22, %s6879_s18  ;;  %s224_s15 = int_to_ptr.vmem [resolvable:$true] %s223_s15 }
 0x116   :  { %p6883_p1 = scmp.lt.u32.totalorder %s6879_s18, %s8125_s22 }
 0x118   :  { %p6885_p2 = pnand %p6883_p1, %p6880_p0 }
 0x11a   :  { %6888 = shalt.err (!%p6885_p2)
}
 0x11b   :  { %s6889_s27 = scalar_lea.vmem %s224_s15, 16  ;;  %s6893_s19 = scalar_lea.vmem %s224_s15, 32 }
 0x11c   :  { %p6890_p3 = scmp.ne.s32.totalorder %s224_s15, %s6889_s27  ;;  %p6894_p4 = scmp.lt.s32.totalorder %s224_s15, %s224_s15 }
 0x11d   :  { %p6895_p5 = scmp.lt.s32.totalorder %s6893_s19, %s6889_s27 }
 0x11f   :  { %p6896_p6 = por %p6895_p5, %p6894_p4 }
 0x121   :  { %p6897_p7 = pnand %p6896_p6, %p6890_p3 }
 0x123   :  { %6900 = shalt.err (!%p6897_p7)
}
 0x124   :  { %226 = dma.hbm_to_vmem [thread:$0]  %s8125_s22, 16, %s224_s15, [#allocation24]  }
 0x125   :  { %6923 = dma.done.wait [#allocation3], 256  }
 0x126   :  { %6924 = vsyncadd [#allocation3], 4294967040 }
 0x127   :  { %6925 = dma.done.wait [#allocation6], 160  }
 0x128   :  { %6926 = vsyncadd [#allocation6], 4294967136 }
 0x129   :  { %6927 = dma.done.wait [#allocation9], 64  }
 0x12a   :  { %6928 = vsyncadd [#allocation9], 4294967232 }
 0x12b   :  { %6929 = dma.done.wait [#allocation12], 64  }
 0x12c   :  { %6930 = vsyncadd [#allocation12], 4294967232 }
 0x12d   :  { %6931 = dma.done.wait [#allocation15], 64  }
 0x12e   :  { %6932 = vsyncadd [#allocation15], 4294967232 }
 0x12f   :  { %6933 = dma.done.wait [#allocation18], 1056  }
 0x130   :  { %6934 = vsyncadd [#allocation18], 4294966240 }
 0x131   :  { %6935 = dma.done.wait [#allocation21], 48  }
 0x132   :  { %6936 = vsyncadd [#allocation21], 4294967248 }
 0x133   :  { %6937 = dma.done.wait [#allocation24], 32  }
 0x134   :  { %6938 = vsyncadd [#allocation24], 4294967264  ;;  %v6960_v0 = vmov 0   ;;  %s8153_s13 = sld [smem:[#allocation36_spill]]  ;;  %v286_v2 = vld [vmem:[#allocation2] sm:$0xff]  ;;  %v287_v3 = vld [vmem:[#allocation2 + $0x8] sm:$0xff]  ;;  %v274_v6 = vlaneseq }
 0x135   :  { %6470 = vset.pattern.permute.xlu0 %v6960_v0  ;;  %v6336_v5 = vpack.c.bf16 %v287_v3, %v286_v2  ;;  %vm288_vm0 = vcmask 130048   ;;  %v6961_v9 = vmov 0.0   ;;  %v372_v14 = vld [vmem:[#allocation5] sm:$0xff]  ;;  %vm380_vm3 = vcmask 261120   ;;  %s8154_s0 = sld [smem:[#allocation41_spill]]  ;;  %s8155_s15 = sld [smem:[#allocation43_spill]] }
 0x136   :  { %v7340_v7 = vand.u32 127, %v274_v6  ;;  %v602_v44 = vld [vmem:[%s8112_s9] sm:$0xff]  ;;  %v603_v45 = vld [vmem:[%s8112_s9 + $0x8] sm:$0xff]  ;;  %s8156_s26 = sld [smem:[#allocation39_spill]]  ;;  %v5637_v56 = vld [vmem:[#allocation7] ss:$0 sm:$0xff] }
 0x137   :  { %6337 = vmatprep.subr.bf16.mxu0 %v6336_v5  ;;  %v6356_v46 = vpack.c.bf16 %v603_v45, %v602_v44  ;;  %v604_v61 = vld [vmem:[%s8112_s9 + $0x10] sm:$0xff]  ;;  %v605_v62 = vld [vmem:[%s8112_s9 + $0x18] sm:$0xff]  ;;  %vm6962_vm4 = vmmov 0   ;;  %vm692_vm5 = vcmask 64512   ;;  %s6963_s25 = smov 120   ;;  %s6964_s29 = smov 112  }
 0x138   :  { %6339 = vmatpush3.bf16.msra.mxu0 %v6336_v5  ;;  %v5638_v2 = vld [vmem:[#allocation8] ss:$0 sm:$0xff]  ;;  %v5641_v3 = vld [vmem:[#allocation10] ss:$0 sm:$0xff]  ;;  %s6965_s3 = smov 104   ;;  %vm2833_vm9 = vcmask 523264  }
 0x13a   :  { %v272_v1 = vld [vmem:[%s8153_s13] sm:$0xff]  ;;  %v273_v4 = vld [vmem:[%s8153_s13 + $0x8] sm:$0xff] }
 0x13b   :  { %277 = vperm.xlu0 %6470, %v272_v1   ;;  %v424_v32 = vld [vmem:[%s8154_s0] sm:$0xff]  ;;  %v425_v33 = vld [vmem:[%s8154_s0 + $0x8] sm:$0xff]  ;;  %v426_v37 = vld [vmem:[%s8154_s0 + $0x10] sm:$0xff]  ;;  %v6360_v1 = vpack.c.bf16 %v605_v62, %v604_v61 }
 0x13c   :  { %v516_v34 = vld [vmem:[%s8155_s15] sm:$0xff]  ;;  %v6340_v35 = vpack.c.bf16 %v425_v33, %v424_v32  ;;  %v517_v36 = vld [vmem:[%s8155_s15 + $0x8] sm:$0xff]  ;;  %v427_v38 = vld [vmem:[%s8154_s0 + $0x18] sm:$0xff] }
 0x13d   :  { %v6348_v39 = vpack.c.bf16 %v517_v36, %v516_v34  ;;  %v6344_v40 = vpack.c.bf16 %v427_v38, %v426_v37  ;;  %v518_v41 = vld [vmem:[%s8155_s15 + $0x10] sm:$0xff]  ;;  %v519_v42 = vld [vmem:[%s8155_s15 + $0x18] sm:$0xff]  ;;  %v5636_v54 = vld [vmem:[%s8156_s26] ss:$0 sm:$0xff] }
 0x13e   :  { %6341 = vmatprep.subr.bf16.mxu1 %v6340_v35  ;;  %v6352_v43 = vpack.c.bf16 %v519_v42, %v518_v41 }
 0x13f   :  { %280 = vperm.xlu0 %6470, %v273_v4   ;;  %6343 = vmatpush3.bf16.msra.mxu1 %v6340_v35 }
 0x140   :  { %6349 = vmatprep.subr.bf16.mxu0 %v6348_v39  ;;  %6345 = vmatprep.subr.bf16.mxu1 %v6344_v40 }
 0x143   :  { %6347 = vmatpush3.bf16.msra.mxu1 %v6344_v40 }
 0x144   :  { %6357 = vmatprep.subr.bf16.mxu1 %v6356_v46 }
 0x1ba   :  { %v278_v8 = vpop.permute.xlu0 %277 }
 0x1bb   :  { %vm282_vm1 = vcmp.eq.s32.totalorder %v278_v8, %v7340_v7 }
 0x1bc   :  { %v284_v10 = vsel %vm282_vm1, 1.0, %v6961_v9 }
 0x1bd   :  { %5956 = vmatprep.mubr.msk.f32.mxu0 %vm288_vm0, %v284_v10 }
 0x1be   :  { %v281_v11 = vpop.permute.xlu0 %280 }
 0x1bf   :  { %vm283_vm2 = vcmp.eq.s32.totalorder %v281_v11, %v7340_v7 }
 0x1c0   :  { %v285_v12 = vsel %vm283_vm2, 1.0, %v6961_v9 }
 0x1c1   :  { %5957 = vmatmul.mubr.msk.f32.vlgmr.msra.gmra.mrb[0].mxu0 %vm288_vm0, %v285_v12 }
 0x1c2   :  { %6351 = vmatpush3.bf16.msra.mxu0 %v6348_v39 }
 0x1c3   :  { %6353 = vmatprep.subr.bf16.mxu0 %v6352_v43 }
 0x1c6   :  { %6355 = vmatpush3.bf16.msra.mxu0 %v6352_v43 }
 0x1c7   :  { %5992 = vmatprep.subr.mxu0 %v6961_v9 }
 0x294   :  { %v5958_v13 = vpop.f32.mrb[0].mxu0 }
 0x295   :  { %v361_v15 = vpop.f32.mrb[1].mxu0  ;;  %v371_v16 = vmul.f32 5.656854, %v5958_v13 }
 0x296   :  { %v370_v17 = vmul.f32 5.656854, %v361_v15  ;;  %v5644_v15 = vld [vmem:[#allocation11] ss:$0 sm:$0xff] }
 0x297   :  { %v7350_v19 = vadd.f32 %v372_v14, %v371_v16 }
 0x298   :  { %v7348_v18 = vadd.f32 %v372_v14, %v370_v17 }
 0x299   :  { %v384_v21 = vsel %vm380_vm3, %v7350_v19, 0.0 }
 0x29a   :  { %v381_v20 = vsel %vm380_vm3, %v7348_v18, 0.0 }
 0x29b   :  { %382 = vadd.xlane.f32.xlu1 %v381_v20 }
 0x29f   :  { %385 = vadd.xlane.f32.xlu1 %v384_v21 }
 0x328   :  { %v383_v22 = vpop.xlane.xlu1 %382 }
 0x329   :  { %v388_v23 = vmul.f32 0.03125, %v383_v22 }
 0x32b   :  { %v390_v24 = vsub.f32 %v7348_v18, %v388_v23 }
 0x32c   :  { %v386_v25 = vpop.xlane.xlu1 %385 }
 0x32d   :  { %v389_v26 = vmul.f32 0.03125, %v386_v25  ;;  %v392_v27 = vmul.f32 %v390_v24, %v390_v24 }
 0x32f   :  { %v391_v28 = vsub.f32 %v7350_v19, %v389_v26  ;;  %v394_v29 = vsel %vm380_vm3, %v392_v27, 0.0 }
 0x330   :  { %395 = vadd.xlane.f32.xlu0 %v394_v29 }
 0x331   :  { %v393_v30 = vmul.f32 %v391_v28, %v391_v28 }
 0x333   :  { %v397_v31 = vsel %vm380_vm3, %v393_v30, 0.0 }
 0x334   :  { %398 = vadd.xlane.f32.xlu1 %v397_v31 }
 0x3bd   :  { %v396_v47 = vpop.xlane.xlu0 %395 }
 0x3be   :  { %v400_v48 = vmul.f32 0.03125, %v396_v47  ;;  %v7471_v47 = vld [vmem:[%s8114_s11 + $0x8] sm:$0xff] }
 0x3c0   :  { %v402_v49 = vadd.f32 1e-05, %v400_v48 }
 0x3c1   :  { %v399_v50 = vpop.xlane.xlu1 %398 }
 0x3c2   :  { %6471 = vrsqrt.f32 %v402_v49  ;;  %v401_v51 = vmul.f32 0.03125, %v399_v50 }
 0x3c4   :  { %v403_v52 = vadd.f32 1e-05, %v401_v51 }
 0x3c6   :  { %6473 = vrsqrt.f32 %v403_v52  ;;  %v7479_v52 = vld [vmem:[%s8114_s11] sm:$0xff] }
 0x3cc   :  { %v6472_v53 = vpop.eup %6471 }
 0x3cd   :  { %v406_v55 = vmul.f32 %v6472_v53, %v390_v24  ;;  %v376_v24 = vshrl.u32 %v274_v6, 7 }
 0x3cf   :  { %v414_v57 = vmul.f32 %v5636_v54, %v406_v55  ;;  %vm7443_vm6 = vcmp.le.s32.totalorder %v7340_v7, %v376_v24 }
 0x3d0   :  { %v6474_v58 = vpop.eup %6473 }
 0x3d1   :  { %v407_v59 = vmul.f32 %v6474_v58, %v391_v28  ;;  %v422_v60 = vadd.f32 %v5637_v56, %v414_v57 }
 0x3d3   :  { %v415_v63 = vmul.f32 %v5636_v54, %v407_v59  ;;  %5967 = vmatprep.mubr.msk.f32.mxu1 %vm380_vm3, %v422_v60  ;;  %5978 = vmatprep.mubr.msk.f32.mxu0 %vm380_vm3, %v422_v60 }
 0x3d5   :  { %v423_v0 = vadd.f32 %v5637_v56, %v415_v63 }
 0x3d7   :  { %5968 = vmatmul.mubr.msk.f32.vlgmr.msra.gmra.mrb[0].mxu1 %vm380_vm3, %v423_v0  ;;  %5979 = vmatmul.mubr.msk.f32.vlgmr.msra.gmra.mrb[2].mxu0 %vm380_vm3, %v423_v0 }
 0x3d8   :  { %6359 = vmatpush3.bf16.msra.mxu1 %v6356_v46  ;;  %5989 = vmatprep.mubr.msk.f32.mxu1 %vm380_vm3, %v422_v60 }
 0x3d9   :  { %6361 = vmatprep.subr.bf16.mxu1 %v6360_v1  ;;  %5994 = vmatprep.mubr.msk.f32.mxu0 %vm6962_vm4, %v6961_v9 }
 0x3dc   :  { %6363 = vmatpush3.bf16.msra.mxu1 %v6360_v1 }
 0x3dd   :  { %6002 = vmatprep.subr.mxu1 %v6961_v9 }
 0x3df   :  { %5990 = vmatmul.mubr.msk.f32.vlgmr.msra.gmra.mrb[2].mxu1 %vm380_vm3, %v423_v0 }
 0x3e0   :  { %6004 = vmatprep.mubr.msk.f32.mxu1 %vm6962_vm4, %v6961_v9 }
 0x4aa   :  { %v5969_v4 = vpop.f32.mrb[0].mxu1  ;;  %v5980_v5 = vpop.f32.mrb[2].mxu0 }
 0x4ab   :  { %v7411_v8 = vadd.f32 %v5969_v4, %v5638_v2  ;;  %v7413_v10 = vadd.f32 %v5980_v5, %v5641_v3  ;;  %v507_v11 = vpop.f32.mrb[1].mxu1  ;;  %v593_v12 = vpop.f32.mrb[3].mxu0 }
 0x4ac   :  { %v7415_v13 = vadd.f32 %v5641_v3, %v593_v12  ;;  %v7421_v14 = vadd.f32 %v5638_v2, %v507_v11 }
 0x4ae   :  { %858 = vrot.lane.b32.xlu1 %v7415_v13, %s6963_s25  ;;  %5993 = vmatpush3.xpose.msk.msra.mxu0 %vm692_vm5, %v7415_v13 }
 0x4af   :  { %5997 = vmatprep.subr.mxu0 %v6961_v9 }
 0x4b1   :  { %5995 = vmatmul.mubr.msk.f32.vlgmr.msra.gmra.mrb[4].mxu0 %vm692_vm5, %v7421_v14 }
 0x4b2   :  { %v5991_v16 = vpop.f32.mrb[2].mxu1  ;;  %856 = vrot.lane.b32.xlu1 %v7421_v14, %s6963_s25  ;;  %5999 = vmatprep.mubr.msk.f32.mxu0 %vm6962_vm4, %v6961_v9 }
 0x4b3   :  { %v7430_v17 = vadd.f32 %v5991_v16, %v5644_v15  ;;  %v679_v20 = vpop.f32.mrb[3].mxu1 }
 0x4b4   :  { %v7432_v21 = vadd.f32 %v5644_v15, %v679_v20 }
 0x4b6   :  { %5998 = vmatpush3.msra.mxu0 %v7432_v21 }
 0x4b7   :  { %6007 = vmatprep.subr.mxu0 %v6961_v9 }
 0x520   :  { %v859_v22 = vpop.permute.xlu1 %858 }
 0x521   :  { %6003 = vmatpush3.xpose.msk.msra.mxu1 %vm692_vm5, %v859_v22 }
 0x522   :  { %6012 = vmatprep.subr.mxu1 %v6961_v9 }
 0x524   :  { %v857_v23 = vpop.permute.xlu1 %856 }
 0x525   :  { %6005 = vmatmul.mubr.msk.f32.vlgmr.msra.gmra.mrb[4].mxu1 %vm692_vm5, %v857_v23 }
 0x526   :  { %6014 = vmatprep.mubr.msk.f32.mxu1 %vm6962_vm4, %v6961_v9  ;;  %6013 = vmatpush3.msra.mxu1 %v7471_v47 }
 0x527   :  { %6022 = vmatprep.subr.mxu1 %v6961_v9 }
 0x584   :  { %v765_v26 = vpop.f32.mrb[4].mxu0 }
 0x585   :  { %v769_v27 = vmul.f32 0.35355338, %v765_v26  ;;  %v5996_v28 = vpop.f32.mrb[5].mxu0  ;;  %v7529_v26 = vld [vmem:[%s8114_s11 + $0x10] sm:$0xff] }
 0x587   :  { %v770_v29 = vsel %vm7443_vm6, %v769_v27, -1e+30 }
 0x588   :  { %v771_v30 = vsel %vm692_vm5, %v770_v29, -inf }
 0x589   :  { %772 = vmax.xlane.f32.xlu1 %v771_v30 }
 0x59a   :  { %1173 = vrot.lane.b32.xlu1 %v7415_v13, %s6964_s29 }
 0x5f8   :  { %v930_v31 = vpop.f32.mrb[4].mxu1 }
 0x5f9   :  { %v934_v6 = vmul.f32 0.35355338, %v930_v31  ;;  %v6006_v32 = vpop.f32.mrb[5].mxu1 }
 0x5fb   :  { %v935_v7 = vsel %vm7443_vm6, %v934_v6, -1e+30 }
 0x5fc   :  { %v936_v33 = vsel %vm692_vm5, %v935_v7, -inf }
 0x5fd   :  { %937 = vmax.xlane.f32.xlu0 %v936_v33 }
 0x616   :  { %v773_v34 = vpop.xlane.xlu1 %772 }
 0x617   :  { %v774_v35 = vsub.f32 %v770_v29, %v773_v34 }
 0x619   :  { %v775_v36 = vmul.f32 1.442695, %v774_v35 }
 0x61a   :  { %v1174_v56 = vpop.permute.xlu1 %1173 }
 0x61b   :  { %6475 = vpow2.f32 %v775_v36 }
 0x625   :  { %v6476_v37 = vpop.eup %6475 }
 0x626   :  { %v777_v38 = vsel %vm692_vm5, %v6476_v37, 0.0 }
 0x627   :  { %778 = vadd.xlane.f32.xlu0 %v777_v38 }
 0x68a   :  { %v938_v39 = vpop.xlane.xlu0 %937 }
 0x68b   :  { %v939_v40 = vsub.f32 %v935_v7, %v938_v39 }
 0x68d   :  { %v940_v41 = vmul.f32 1.442695, %v939_v40 }
 0x68f   :  { %6477 = vpow2.f32 %v940_v41 }
 0x699   :  { %v6478_v42 = vpop.eup %6477 }
 0x69a   :  { %v942_v43 = vsel %vm692_vm5, %v6478_v42, 0.0 }
 0x69b   :  { %943 = vadd.xlane.f32.xlu0 %v942_v43 }
 0x6b1   :  { %949 = vrot.lane.b32.xlu0 %v7432_v21, %s6963_s25 }
 0x6b4   :  { %v779_v44 = vpop.xlane.xlu0 %778 }
 0x6b5   :  { %6479 = vrcp.f32 %v779_v44  ;;  %1171 = vrot.lane.b32.xlu0 %v7421_v14, %s6964_s29 }
 0x6bf   :  { %v6480_v45 = vpop.eup %6479 }
 0x6c0   :  { %v781_v46 = vmul.f32 %v6480_v45, %v6476_v37 }
 0x6c2   :  { %782 = vst.msk [vmem:[%s8127_s24] sm:$0xff] %vm692_vm5, %v781_v46  ;;  %6000 = vmatmul.mubr.msk.f32.vlgmr.msra.gmra.mrb[6].mxu0 %vm692_vm5, %v781_v46 }
 0x6c3   :  { %6009 = vmatprep.mubr.msk.f32.mxu0 %vm6962_vm4, %v6961_v9 }
 0x728   :  { %v944_v48 = vpop.xlane.xlu0 %943 }
 0x729   :  { %6481 = vrcp.f32 %v944_v48 }
 0x72c   :  { %v950_v49 = vpop.permute.xlu0 %949 }
 0x72d   :  { %6008 = vmatpush3.msra.mxu0 %v950_v49 }
 0x72e   :  { %6017 = vmatprep.subr.mxu0 %v6961_v9 }
 0x730   :  { %v1172_v58 = vpop.permute.xlu0 %1171 }
 0x733   :  { %v6482_v50 = vpop.eup %6481 }
 0x734   :  { %v946_v51 = vmul.f32 %v6482_v50, %v6478_v42 }
 0x736   :  { %947 = vst.msk [vmem:[%s8127_s24 + $0x8] sm:$0xff] %vm692_vm5, %v946_v51  ;;  %6010 = vmatmul.mubr.msk.f32.vlgmr.msra.gmra.mrb[8].mxu0 %vm692_vm5, %v946_v51 }
 0x737   :  { %6018 = vmatpush3.msra.mxu0 %v7479_v52  ;;  %6019 = vmatprep.mubr.msk.f32.mxu0 %vm6962_vm4, %v6961_v9 }
 0x738   :  { %6027 = vmatprep.subr.mxu0 %v6961_v9 }
 0x795   :  { %v852_v53 = vpop.f32.mrb[6].mxu0 }
 0x796   :  { %v6001_v54 = vpop.f32.mrb[7].mxu0  ;;  %6020 = vmatmul.mubr.msk.f32.vlgmr.msra.gmra.mrb[10].mxu0 %vm692_vm5, %v852_v53 }
 0x797   :  { %6029 = vmatprep.mubr.msk.f32.mxu0 %vm6962_vm4, %v6961_v9 }
 0x809   :  { %v1021_v55 = vpop.f32.mrb[8].mxu0 }
 0x80a   :  { %v6011_v57 = vpop.f32.mrb[9].mxu0  ;;  %6015 = vmatmul.mubr.msk.f32.vlgmr.msra.gmra.mrb[6].mxu1 %vm692_vm5, %v1021_v55 }
 0x80b   :  { %6023 = vmatpush3.xpose.msk.msra.mxu1 %vm692_vm5, %v1174_v56  ;;  %6024 = vmatprep.mubr.msk.f32.mxu1 %vm6962_vm4, %v6961_v9 }
 0x80c   :  { %6032 = vmatprep.subr.mxu1 %v6961_v9 }
 0x80e   :  { %6025 = vmatmul.mubr.msk.f32.vlgmr.msra.gmra.mrb[8].mxu1 %vm692_vm5, %v1172_v58 }
 0x80f   :  { %6034 = vmatprep.mubr.msk.f32.mxu1 %vm6962_vm4, %v6961_v9  ;;  %6033 = vmatpush3.msra.mxu1 %v7529_v26 }
 0x810   :  { %6042 = vmatprep.subr.mxu1 %v6961_v9 }
 0x869   :  { %v1167_v59 = vpop.f32.mrb[10].mxu0 }
 0x86a   :  { %v6021_v60 = vpop.f32.mrb[11].mxu0 }
 0x8dd   :  { %v1094_v61 = vpop.f32.mrb[6].mxu1 }
 0x8de   :  { %v7501_v62 = vadd.f32 %v1167_v59, %v1094_v61  ;;  %v6016_v63 = vpop.f32.mrb[7].mxu1 }
 0x8e1   :  { %v1245_v0 = vpop.f32.mrb[8].mxu1 }
 0x8e2   :  { %v1249_v1 = vmul.f32 0.35355338, %v1245_v0  ;;  %v6026_v2 = vpop.f32.mrb[9].mxu1 }
 0x8e4   :  { %v1250_v3 = vsel %vm7443_vm6, %v1249_v1, -1e+30 }
 0x8e5   :  { %v1251_v4 = vsel %vm692_vm5, %v1250_v3, -inf }
 0x8e6   :  { %1252 = vmax.xlane.f32.xlu0 %v1251_v4 }
 0x8fc   :  { %1263 = vrot.lane.b32.xlu0 %v7432_v21, %s6964_s29 }
 0x900   :  { %1413 = vrot.lane.b32.xlu0 %v7421_v14, %s6965_s3 }
 0x973   :  { %v1253_v5 = vpop.xlane.xlu0 %1252 }
 0x974   :  { %v1254_v11 = vsub.f32 %v1250_v3, %v1253_v5 }
 0x976   :  { %v1255_v12 = vmul.f32 1.442695, %v1254_v11 }
 0x977   :  { %v1264_v15 = vpop.permute.xlu0 %1263 }
 0x978   :  { %6483 = vpow2.f32 %v1255_v12  ;;  %6028 = vmatpush3.msra.mxu0 %v1264_v15 }
 0x979   :  { %6037 = vmatprep.subr.mxu0 %v6961_v9 }
 0x982   :  { %v6484_v16 = vpop.eup %6483 }
 0x983   :  { %v1257_v20 = vsel %vm692_vm5, %v6484_v16, 0.0 }
 0x984   :  { %1258 = vadd.xlane.f32.xlu1 %v1257_v20 }
 0x995   :  { %1415 = vrot.lane.b32.xlu1 %v7415_v13, %s6965_s3  ;;  %v1414_v13 = vpop.permute.xlu0 %1413 }
 0xa11   :  { %v1259_v22 = vpop.xlane.xlu1 %1258 }
 0xa12   :  { %6485 = vrcp.f32 %v1259_v22 }
 0xa15   :  { %v1416_v14 = vpop.permute.xlu1 %1415 }
 0xa1c   :  { %v6486_v23 = vpop.eup %6485 }
 0xa1d   :  { %v1261_v24 = vmul.f32 %v6486_v23, %v6484_v16 }
 0xa1f   :  { %1262 = vst.msk [vmem:[%s8127_s24 + $0x10] sm:$0xff] %vm692_vm5, %v1261_v24  ;;  %6030 = vmatmul.mubr.msk.f32.vlgmr.msra.gmra.mrb[12].mxu0 %vm692_vm5, %v1261_v24 }
 0xa20   :  { %6038 = vmatpush3.xpose.msk.msra.mxu0 %vm692_vm5, %v1416_v14  ;;  %6039 = vmatprep.mubr.msk.f32.mxu0 %vm6962_vm4, %v6961_v9 }
 0xa21   :  { %6047 = vmatprep.subr.mxu0 %v6961_v9 }
 0xa23   :  { %6040 = vmatmul.mubr.msk.f32.vlgmr.msra.gmra.mrb[14].mxu0 %vm692_vm5, %v1414_v13 }
 0xa24   :  { %6049 = vmatprep.mubr.msk.f32.mxu0 %vm6962_vm4, %v6961_v9 }
 0xaf2   :  { %v1335_v27 = vpop.f32.mrb[12].mxu0 }
 0xaf3   :  { %v6031_v28 = vpop.f32.mrb[13].mxu0  ;;  %6035 = vmatmul.mubr.msk.f32.vlgmr.msra.gmra.mrb[10].mxu1 %vm692_vm5, %v1335_v27 }
 0xaf4   :  { %6044 = vmatprep.mubr.msk.f32.mxu1 %vm6962_vm4, %v6961_v9 }
 0xaf6   :  { %v1487_v29 = vpop.f32.mrb[14].mxu0 }
 0xaf7   :  { %v1491_v30 = vmul.f32 0.35355338, %v1487_v29  ;;  %v6041_v31 = vpop.f32.mrb[15].mxu0 }
 0xaf9   :  { %v1492_v6 = vsel %vm7443_vm6, %v1491_v30, -1e+30 }
 0xafa   :  { %v1493_v32 = vsel %vm692_vm5, %v1492_v6, -inf }
 0xafb   :  { %1494 = vmax.xlane.f32.xlu0 %v1493_v32 }
 0xb11   :  { %1505 = vrot.lane.b32.xlu0 %v7432_v21, %s6965_s3  ;;  %v7550_v21 = vld [vmem:[%s8114_s11 + $0x18] sm:$0xff] }
 0xb12   :  { %6048 = vmatpush3.msra.mxu0 %v7550_v21 }
 0xb13   :  { %6057 = vmatprep.subr.mxu0 %v6961_v9 }
 0xb15   :  { %1818 = vrot.lane.b32.xlu0 %v7411_v8, %s6963_s25 }
 0xb88   :  { %v1495_v7 = vpop.xlane.xlu0 %1494 }
 0xb89   :  { %v1496_v33 = vsub.f32 %v1492_v6, %v1495_v7 }
 0xb8b   :  { %v1497_v34 = vmul.f32 1.442695, %v1496_v33 }
 0xb8c   :  { %v1506_v35 = vpop.permute.xlu0 %1505 }
 0xb8d   :  { %6487 = vpow2.f32 %v1497_v34  ;;  %6043 = vmatpush3.msra.mxu1 %v1506_v35 }
 0xb8e   :  { %6052 = vmatprep.subr.mxu1 %v6961_v9 }
 0xb90   :  { %v1819_v45 = vpop.permute.xlu0 %1818 }
 0xb97   :  { %v6488_v36 = vpop.eup %6487 }
 0xb98   :  { %v1499_v37 = vsel %vm692_vm5, %v6488_v36, 0.0 }
 0xb99   :  { %1500 = vadd.xlane.f32.xlu1 %v1499_v37 }
 0xbaa   :  { %1820 = vrot.lane.b32.xlu1 %v7413_v10, %s6963_s25 }
 0xbc6   :  { %v1408_v38 = vpop.f32.mrb[10].mxu1 }
 0xbc7   :  { %v1412_v39 = vadd.f32 %v1408_v38, %v7501_v62  ;;  %v6036_v40 = vpop.f32.mrb[11].mxu1 }
 0xc26   :  { %v1501_v41 = vpop.xlane.xlu1 %1500 }
 0xc27   :  { %6489 = vrcp.f32 %v1501_v41 }
 0xc2a   :  { %v1821_v44 = vpop.permute.xlu1 %1820 }
 0xc31   :  { %v6490_v42 = vpop.eup %6489 }
 0xc32   :  { %v1503_v43 = vmul.f32 %v6490_v42, %v6488_v36 }
 0xc34   :  { %1504 = vst.msk [vmem:[%s8127_s24 + $0x18] sm:$0xff] %vm692_vm5, %v1503_v43  ;;  %6045 = vmatmul.mubr.msk.f32.vlgmr.msra.gmra.mrb[12].mxu1 %vm692_vm5, %v1503_v43 }
 0xc35   :  { %6053 = vmatpush3.xpose.msk.msra.mxu1 %vm692_vm5, %v7413_v10  ;;  %6054 = vmatprep.mubr.msk.f32.mxu1 %vm6962_vm4, %v6961_v9 }
 0xc36   :  { %6062 = vmatprep.subr.mxu1 %v6961_v9 }
 0xc38   :  { %6055 = vmatmul.mubr.msk.f32.vlgmr.msra.gmra.mrb[14].mxu1 %vm692_vm5, %v7411_v8 }
 0xc39   :  { %6063 = vmatpush3.xpose.msk.msra.mxu1 %vm692_vm5, %v1821_v44  ;;  %6064 = vmatprep.mubr.msk.f32.mxu1 %vm6962_vm4, %v6961_v9 }
 0xc3a   :  { %6072 = vmatprep.subr.mxu1 %v6961_v9 }
 0xc3c   :  { %6065 = vmatmul.mubr.msk.f32.vlgmr.msra.gmra.mrb[16].mxu1 %vm692_vm5, %v1819_v45 }
 0xc3d   :  { %6073 = vmatpush3.msra.mxu1 %v7471_v47  ;;  %6074 = vmatprep.mubr.msk.f32.mxu1 %vm6962_vm4, %v6961_v9 }
 0xc3e   :  { %6082 = vmatprep.subr.mxu1 %v6961_v9 }
 0xd07   :  { %v1577_v46 = vpop.f32.mrb[12].mxu1 }
 0xd08   :  { %v6046_v48 = vpop.f32.mrb[13].mxu1  ;;  %6050 = vmatmul.mubr.msk.f32.vlgmr.msra.gmra.mrb[16].mxu0 %vm692_vm5, %v1577_v46 }
 0xd09   :  { %6058 = vmatpush3.msra.mxu0 %v7430_v17  ;;  %6059 = vmatprep.mubr.msk.f32.mxu0 %vm6962_vm4, %v6961_v9 }
 0xd0a   :  { %6067 = vmatprep.subr.mxu0 %v6961_v9 }
 0xd0b   :  { %v1727_v49 = vpop.f32.mrb[14].mxu1 }
 0xd0c   :  { %v1731_v50 = vmul.f32 0.35355338, %v1727_v49  ;;  %v6056_v51 = vpop.f32.mrb[15].mxu1 }
 0xd0e   :  { %v1732_v47 = vsel %vm7443_vm6, %v1731_v50, -1e+30 }
 0xd0f   :  { %v1892_v53 = vpop.f32.mrb[16].mxu1  ;;  %v1733_v54 = vsel %vm692_vm5, %v1732_v47, -inf }
 0xd10   :  { %v1896_v55 = vmul.f32 0.35355338, %v1892_v53  ;;  %1734 = vmax.xlane.f32.xlu0 %v1733_v54  ;;  %v6066_v56 = vpop.f32.mrb[17].mxu1 }
 0xd12   :  { %v1897_v57 = vsel %vm7443_vm6, %v1896_v55, -1e+30 }
 0xd13   :  { %v1898_v58 = vsel %vm692_vm5, %v1897_v57, -inf }
 0xd14   :  { %1899 = vmax.xlane.f32.xlu1 %v1898_v58  ;;  %v5679_v58 = vld [vmem:[#allocation13] ss:$0 sm:$0xff] }
 0xd25   :  { %1911 = vrot.lane.b32.xlu1 %v7430_v17, %s6963_s25 }
 0xd29   :  { %2133 = vrot.lane.b32.xlu1 %v7411_v8, %s6964_s29 }
 0xd9d   :  { %v1735_v59 = vpop.xlane.xlu0 %1734 }
 0xd9e   :  { %v1736_v60 = vsub.f32 %v1732_v47, %v1735_v59 }
 0xda0   :  { %v1737_v61 = vmul.f32 1.442695, %v1736_v60 }
 0xda1   :  { %v1900_v62 = vpop.xlane.xlu1 %1899 }
 0xda2   :  { %6491 = vpow2.f32 %v1737_v61  ;;  %v1901_v63 = vsub.f32 %v1897_v57, %v1900_v62 }
 0xda4   :  { %v1902_v0 = vmul.f32 1.442695, %v1901_v63 }
 0xda5   :  { %v1912_v23 = vpop.permute.xlu1 %1911 }
 0xda6   :  { %6493 = vpow2.f32 %v1902_v0 }
 0xdac   :  { %v6492_v1 = vpop.eup %6491 }
 0xdad   :  { %v1739_v2 = vsel %vm692_vm5, %v6492_v1, 0.0 }
 0xdae   :  { %1740 = vadd.xlane.f32.xlu0 %v1739_v2 }
 0xdb0   :  { %v6494_v3 = vpop.eup %6493 }
 0xdb1   :  { %v1904_v4 = vsel %vm692_vm5, %v6494_v3, 0.0 }
 0xdb2   :  { %1905 = vadd.xlane.f32.xlu0 %v1904_v4 }
 0xdc8   :  { %2135 = vrot.lane.b32.xlu0 %v7413_v10, %s6964_s29 }
 0xddb   :  { %v1650_v5 = vpop.f32.mrb[16].mxu0 }
 0xddc   :  { %v7595_v11 = vadd.f32 %v1650_v5, %v1412_v39  ;;  %v6051_v12 = vpop.f32.mrb[17].mxu0 }
 0xdde   :  { %v2624_v59 = vadd.f32 %v5679_v58, %v7595_v11 }
 0xde0   :  { %v7661_v61 = vadd.f32 %v2624_v59, %v7348_v18 }
 0xde2   :  { %v2630_v63 = vsel %vm380_vm3, %v7661_v61, 0.0 }
 0xe3b   :  { %v1741_v15 = vpop.xlane.xlu0 %1740 }
 0xe3c   :  { %6495 = vrcp.f32 %v1741_v15 }
 0xe3f   :  { %v1906_v16 = vpop.xlane.xlu0 %1905 }
 0xe40   :  { %6497 = vrcp.f32 %v1906_v16 }
 0xe43   :  { %v2136_v29 = vpop.permute.xlu0 %2135 }
 0xe46   :  { %v6496_v20 = vpop.eup %6495 }
 0xe47   :  { %v1743_v22 = vmul.f32 %v6496_v20, %v6492_v1 }
 0xe49   :  { %1744 = vst.msk [vmem:[%s8127_s24 + $0x20] sm:$0xff] %vm692_vm5, %v1743_v22  ;;  %6060 = vmatmul.mubr.msk.f32.vlgmr.msra.gmra.mrb[18].mxu0 %vm692_vm5, %v1743_v22 }
 0xe4a   :  { %v6498_v24 = vpop.eup %6497  ;;  %6068 = vmatpush3.msra.mxu0 %v1912_v23  ;;  %6069 = vmatprep.mubr.msk.f32.mxu0 %vm6962_vm4, %v6961_v9 }
 0xe4b   :  { %v1908_v14 = vmul.f32 %v6498_v24, %v6494_v3  ;;  %6077 = vmatprep.subr.mxu0 %v6961_v9 }
 0xe4d   :  { %1909 = vst.msk [vmem:[%s8127_s24 + $0x28] sm:$0xff] %vm692_vm5, %v1908_v14  ;;  %6070 = vmatmul.mubr.msk.f32.vlgmr.msra.gmra.mrb[20].mxu0 %vm692_vm5, %v1908_v14 }
 0xe4e   :  { %6078 = vmatpush3.msra.mxu0 %v7479_v52  ;;  %6079 = vmatprep.mubr.msk.f32.mxu0 %vm6962_vm4, %v6961_v9  ;;  %v2134_v52 = vpop.permute.xlu1 %2133 }
 0xe4f   :  { %6087 = vmatprep.subr.mxu0 %v6961_v9 }
 0xf1c   :  { %v1814_v13 = vpop.f32.mrb[18].mxu0 }
 0xf1d   :  { %v6061_v27 = vpop.f32.mrb[19].mxu0  ;;  %6080 = vmatmul.mubr.msk.f32.vlgmr.msra.gmra.mrb[22].mxu0 %vm692_vm5, %v1814_v13 }
 0xf1e   :  { %6089 = vmatprep.mubr.msk.f32.mxu0 %vm6962_vm4, %v6961_v9 }
 0xf20   :  { %v1983_v28 = vpop.f32.mrb[20].mxu0 }
 0xf21   :  { %v6071_v30 = vpop.f32.mrb[21].mxu0  ;;  %6075 = vmatmul.mubr.msk.f32.vlgmr.msra.gmra.mrb[18].mxu1 %vm692_vm5, %v1983_v28 }
 0xf22   :  { %6083 = vmatpush3.xpose.msk.msra.mxu1 %vm692_vm5, %v2136_v29  ;;  %6084 = vmatprep.mubr.msk.f32.mxu1 %vm6962_vm4, %v6961_v9 }
 0xf23   :  { %6092 = vmatprep.subr.mxu1 %v6961_v9 }
 0xf25   :  { %6085 = vmatmul.mubr.msk.f32.vlgmr.msra.gmra.mrb[20].mxu1 %vm692_vm5, %v2134_v52 }
 0xf26   :  { %6093 = vmatpush3.msra.mxu1 %v7529_v26  ;;  %6094 = vmatprep.mubr.msk.f32.mxu1 %vm6962_vm4, %v6961_v9 }
 0xf27   :  { %6102 = vmatprep.subr.mxu1 %v6961_v9 }
 0xff0   :  { %v2129_v31 = vpop.f32.mrb[22].mxu0 }
 0xff1   :  { %v6081_v6 = vpop.f32.mrb[23].mxu0 }
 0xff4   :  { %v2056_v32 = vpop.f32.mrb[18].mxu1 }
 0xff5   :  { %v2130_v7 = vadd.f32 %v2129_v31, %v2056_v32  ;;  %v6076_v33 = vpop.f32.mrb[19].mxu1 }
 0xff6   :  { %v5680_v33 = vld [vmem:[#allocation14] ss:$0 sm:$0xff] }
 0xff8   :  { %v2207_v34 = vpop.f32.mrb[20].mxu1 }
 0xff9   :  { %v2211_v35 = vmul.f32 0.35355338, %v2207_v34  ;;  %v6086_v36 = vpop.f32.mrb[21].mxu1 }
 0xffb   :  { %v2212_v37 = vsel %vm7443_vm6, %v2211_v35, -1e+30  ;;  %v5681_v35 = vld [vmem:[#allocation16] ss:$0 sm:$0xff] }
 0xffc   :  { %v2213_v38 = vsel %vm692_vm5, %v2212_v37, -inf }
 0xffd   :  { %2214 = vmax.xlane.f32.xlu1 %v2213_v38  ;;  %v2672_v38 = vld [vmem:[#allocation17] sm:$0xff] }
0x100e   :  { %2377 = vrot.lane.b32.xlu1 %v7413_v10, %s6965_s3 }
0x1012   :  { %2375 = vrot.lane.b32.xlu1 %v7411_v8, %s6965_s3 }
0x108a   :  { %v2215_v26 = vpop.xlane.xlu1 %2214 }
0x108b   :  { %v2216_v39 = vsub.f32 %v2212_v37, %v2215_v26  ;;  %v2673_v26 = vld [vmem:[#allocation17 + $0x8] sm:$0xff] }
0x108d   :  { %v2217_v40 = vmul.f32 1.442695, %v2216_v39  ;;  %v6364_v39 = vpack.c.bf16 %v2673_v26, %v2672_v38 }
0x108e   :  { %v2378_v45 = vpop.permute.xlu1 %2377 }
0x108f   :  { %6499 = vpow2.f32 %v2217_v40  ;;  %v2674_v40 = vld [vmem:[#allocation17 + $0x10] sm:$0xff] }
0x1092   :  { %v2376_v46 = vpop.permute.xlu1 %2375 }
0x1099   :  { %v6500_v41 = vpop.eup %6499 }
0x109a   :  { %v2219_v42 = vsel %vm692_vm5, %v6500_v41, 0.0 }
0x109b   :  { %2220 = vadd.xlane.f32.xlu0 %v2219_v42 }
0x10b1   :  { %2225 = vrot.lane.b32.xlu0 %v7430_v17, %s6964_s29 }
0x1128   :  { %v2221_v43 = vpop.xlane.xlu0 %2220 }
0x1129   :  { %6501 = vrcp.f32 %v2221_v43 }
0x112c   :  { %v2226_v44 = vpop.permute.xlu0 %2225 }
0x112d   :  { %6088 = vmatpush3.msra.mxu0 %v2226_v44 }
0x112e   :  { %6097 = vmatprep.subr.mxu0 %v6961_v9 }
0x1133   :  { %v6502_v10 = vpop.eup %6501 }
0x1134   :  { %v2223_v8 = vmul.f32 %v6502_v10, %v6500_v41  ;;  %v2675_v41 = vld [vmem:[#allocation17 + $0x18] sm:$0xff] }
0x1135   :  { %v6368_v42 = vpack.c.bf16 %v2675_v41, %v2674_v40 }
0x1136   :  { %2224 = vst.msk [vmem:[%s8127_s24 + $0x30] sm:$0xff] %vm692_vm5, %v2223_v8  ;;  %6090 = vmatmul.mubr.msk.f32.vlgmr.msra.gmra.mrb[24].mxu0 %vm692_vm5, %v2223_v8 }
0x1137   :  { %6098 = vmatpush3.xpose.msk.msra.mxu0 %vm692_vm5, %v2378_v45  ;;  %6099 = vmatprep.mubr.msk.f32.mxu0 %vm6962_vm4, %v6961_v9 }
0x1138   :  { %6107 = vmatprep.subr.mxu0 %v6961_v9 }
0x113a   :  { %6100 = vmatmul.mubr.msk.f32.vlgmr.msra.gmra.mrb[26].mxu0 %vm692_vm5, %v2376_v46 }
0x113b   :  { %6108 = vmatpush3.msra.mxu0 %v7550_v21  ;;  %6109 = vmatprep.mubr.msk.f32.mxu0 %vm6962_vm4, %v6961_v9 }
0x1209   :  { %v2297_v48 = vpop.f32.mrb[24].mxu0 }
0x120a   :  { %v6091_v49 = vpop.f32.mrb[25].mxu0  ;;  %6095 = vmatmul.mubr.msk.f32.vlgmr.msra.gmra.mrb[22].mxu1 %vm692_vm5, %v2297_v48 }
0x120b   :  { %6104 = vmatprep.mubr.msk.f32.mxu1 %vm6962_vm4, %v6961_v9  ;;  %v2818_v49 = vld [vmem:[%s8120_s17] sm:$0xff] }
0x120d   :  { %v2449_v50 = vpop.f32.mrb[26].mxu0 }
0x120e   :  { %v2453_v51 = vmul.f32 0.35355338, %v2449_v50  ;;  %v6101_v47 = vpop.f32.mrb[27].mxu0  ;;  %v2819_v50 = vld [vmem:[%s8120_s17 + $0x8] sm:$0xff] }
0x120f   :  { %v2820_v47 = vld [vmem:[%s8120_s17 + $0x10] sm:$0xff] }
0x1210   :  { %v2454_v53 = vsel %vm7443_vm6, %v2453_v51, -1e+30  ;;  %v6372_v51 = vpack.c.bf16 %v2819_v50, %v2818_v49 }
0x1211   :  { %v2455_v54 = vsel %vm692_vm5, %v2454_v53, -inf }
0x1212   :  { %2456 = vmax.xlane.f32.xlu0 %v2455_v54  ;;  %6373 = vmatprep.subr.bf16.mxu0 %v6372_v51 }
0x1228   :  { %2467 = vrot.lane.b32.xlu0 %v7430_v17, %s6965_s3 }
0x129f   :  { %v2457_v21 = vpop.xlane.xlu0 %2456 }
0x12a0   :  { %v2458_v55 = vsub.f32 %v2454_v53, %v2457_v21  ;;  %v2821_v53 = vld [vmem:[%s8120_s17 + $0x18] sm:$0xff]  ;;  %v2822_v21 = vld [vmem:[%s8120_s17 + $0x20] sm:$0xff] }
0x12a1   :  { %v6376_v54 = vpack.c.bf16 %v2821_v53, %v2820_v47 }
0x12a2   :  { %v2459_v56 = vmul.f32 1.442695, %v2458_v55  ;;  %v2823_v55 = vld [vmem:[%s8120_s17 + $0x28] sm:$0xff] }
0x12a3   :  { %v2468_v57 = vpop.permute.xlu0 %2467 }
0x12a4   :  { %6503 = vpow2.f32 %v2459_v56  ;;  %6103 = vmatpush3.msra.mxu1 %v2468_v57  ;;  %v6380_v56 = vpack.c.bf16 %v2823_v55, %v2822_v21  ;;  %v2824_v57 = vld [vmem:[%s8120_s17 + $0x30] sm:$0xff]  ;;  %v5689_v55 = vld [vmem:[#allocation20] ss:$0 sm:$0xff] }
0x12a5   :  { %6365 = vmatprep.subr.bf16.mxu1 %v6364_v39 }
0x12ae   :  { %v6504_v60 = vpop.eup %6503 }
0x12af   :  { %v2461_v62 = vsel %vm692_vm5, %v6504_v60, 0.0 }
0x12b0   :  { %2462 = vadd.xlane.f32.xlu1 %v2461_v62 }
0x12b4   :  { %2631 = vadd.xlane.f32.xlu1 %v2630_v63 }
0x12dd   :  { %v2370_v17 = vpop.f32.mrb[22].mxu1 }
0x12de   :  { %v2374_v0 = vadd.f32 %v2370_v17, %v2130_v7  ;;  %v6096_v1 = vpop.f32.mrb[23].mxu1 }
0x133d   :  { %v2463_v2 = vpop.xlane.xlu1 %2462 }
0x133e   :  { %6505 = vrcp.f32 %v2463_v2 }
0x1341   :  { %v2632_v11 = vpop.xlane.xlu1 %2631 }
0x1342   :  { %v2636_v12 = vmul.f32 0.03125, %v2632_v11 }
0x1344   :  { %v2638_v22 = vsub.f32 %v7661_v61, %v2636_v12 }
0x1346   :  { %v2640_v13 = vmul.f32 %v2638_v22, %v2638_v22 }
0x1348   :  { %v6506_v3 = vpop.eup %6505  ;;  %v2642_v27 = vsel %vm380_vm3, %v2640_v13, 0.0 }
0x1349   :  { %v2465_v4 = vmul.f32 %v6506_v3, %v6504_v60  ;;  %v5682_v60 = vld [vmem:[#allocation19] ss:$0 sm:$0xff] }
0x134b   :  { %2466 = vst.msk [vmem:[%s8127_s24 + $0x38] sm:$0xff] %vm692_vm5, %v2465_v4  ;;  %6105 = vmatmul.mubr.msk.f32.vlgmr.msra.gmra.mrb[24].mxu1 %vm692_vm5, %v2465_v4 }
0x134c   :  { %6367 = vmatpush3.bf16.msra.mxu1 %v6364_v39 }
0x134d   :  { %6369 = vmatprep.subr.bf16.mxu1 %v6368_v42 }
0x1350   :  { %6371 = vmatpush3.bf16.msra.mxu1 %v6368_v42 }
0x141e   :  { %v2539_v18 = vpop.f32.mrb[24].mxu1 }
0x141f   :  { %v6106_v5 = vpop.f32.mrb[25].mxu1  ;;  %6110 = vmatmul.mubr.msk.f32.vlgmr.msra.gmra.mrb[28].mxu0 %vm692_vm5, %v2539_v18 }
0x1420   :  { %6375 = vmatpush3.bf16.msra.mxu0 %v6372_v51 }
0x1421   :  { %6377 = vmatprep.subr.bf16.mxu0 %v6376_v54 }
0x1424   :  { %6379 = vmatpush3.bf16.msra.mxu0 %v6376_v54 }
0x1425   :  { %6381 = vmatprep.subr.bf16.mxu0 %v6380_v56 }
0x1428   :  { %6383 = vmatpush3.bf16.msra.mxu0 %v6380_v56 }
0x14f2   :  { %v2612_v15 = vpop.f32.mrb[28].mxu0 }
0x14f3   :  { %v2616_v16 = vadd.f32 %v2612_v15, %v2374_v0  ;;  %v6111_v20 = vpop.f32.mrb[29].mxu0 }
0x14f5   :  { %v2625_v23 = vadd.f32 %v5679_v58, %v2616_v16  ;;  %v2825_v58 = vld [vmem:[%s8120_s17 + $0x38] sm:$0xff] }
0x14f6   :  { %v6384_v59 = vpack.c.bf16 %v2825_v58, %v2824_v57 }
0x14f7   :  { %v7674_v24 = vadd.f32 %v2625_v23, %v7350_v19 }
0x14f8   :  { %6385 = vmatprep.subr.bf16.mxu0 %v6384_v59 }
0x14f9   :  { %v2633_v14 = vsel %vm380_vm3, %v7674_v24, 0.0  ;;  %6387 = vmatpush3.bf16.msra.mxu0 %v6384_v59 }
0x14fa   :  { %2634 = vadd.xlane.f32.xlu1 %v2633_v14 }
0x14fe   :  { %2643 = vadd.xlane.f32.xlu1 %v2642_v27 }
0x1587   :  { %v2635_v28 = vpop.xlane.xlu1 %2634 }
0x1588   :  { %v2637_v29 = vmul.f32 0.03125, %v2635_v28 }
0x158a   :  { %v2639_v30 = vsub.f32 %v7674_v24, %v2637_v29 }
0x158b   :  { %v2644_v52 = vpop.xlane.xlu1 %2643 }
0x158c   :  { %v2648_v31 = vmul.f32 0.03125, %v2644_v52  ;;  %v2641_v6 = vmul.f32 %v2639_v30, %v2639_v30 }
0x158e   :  { %v2650_v32 = vadd.f32 1e-05, %v2648_v31  ;;  %v2645_v7 = vsel %vm380_vm3, %v2641_v6, 0.0 }
0x158f   :  { %2646 = vadd.xlane.f32.xlu1 %v2645_v7 }
0x1590   :  { %6507 = vrsqrt.f32 %v2650_v32 }
0x159a   :  { %v6508_v19 = vpop.eup %6507 }
0x159b   :  { %v2654_v34 = vmul.f32 %v6508_v19, %v2638_v22 }
0x159d   :  { %v2662_v36 = vmul.f32 %v5680_v33, %v2654_v34 }
0x159f   :  { %v2670_v37 = vadd.f32 %v5681_v35, %v2662_v36 }
0x15a1   :  { %6120 = vmatprep.mubr.msk.f32.mxu1 %vm380_vm3, %v2670_v37 }
0x161c   :  { %v2647_v43 = vpop.xlane.xlu1 %2646 }
0x161d   :  { %v2649_v44 = vmul.f32 0.03125, %v2647_v43 }
0x161f   :  { %v2651_v10 = vadd.f32 1e-05, %v2649_v44 }
0x1621   :  { %6509 = vrsqrt.f32 %v2651_v10 }
0x162b   :  { %v6510_v45 = vpop.eup %6509 }
0x162c   :  { %v2655_v8 = vmul.f32 %v6510_v45, %v2639_v30 }
0x162e   :  { %v2663_v46 = vmul.f32 %v5680_v33, %v2655_v8 }
0x1630   :  { %v2671_v48 = vadd.f32 %v5681_v35, %v2663_v46 }
0x1632   :  { %6121 = vmatmul.mubr.msk.f32.vlgmr.msra.gmra.mrb[26].mxu1 %vm380_vm3, %v2671_v48 }
0x1705   :  { %v6122_v62 = vpop.f32.mrb[26].mxu1 }
0x1706   :  { %v2761_v63 = vadd.f32 %v6122_v62, %v5682_v60  ;;  %v2755_v17 = vpop.f32.mrb[27].mxu1 }
0x1707   :  { %v2756_v0 = vadd.f32 %v5682_v60, %v2755_v17 }
0x1708   :  { %v2767_v1 = vmul.f32 0.70710677, %v2761_v63  ;;  %v2765_v53 = vmul.f32 0.5, %v2761_v63 }
0x1709   :  { %v2766_v2 = vmul.f32 0.70710677, %v2756_v0  ;;  %v2764_v51 = vmul.f32 0.5, %v2756_v0 }
0x170a   :  { %v2769_v3 = vand.u32 2147483647, %v2767_v1  ;;  %vm2809_vm7 = vcmp.ge.f32.partialorder %v2767_v1, 0.0 }
0x170b   :  { %v2768_v4 = vand.u32 2147483647, %v2766_v2  ;;  %vm2808_vm8 = vcmp.ge.f32.partialorder %v2766_v2, 0.0 }
0x170c   :  { %v2771_v18 = vmul.f32 0.3275911, %v2769_v3  ;;  %v2797_v15 = vsub.f32 0.0, %v2769_v3 }
0x170d   :  { %v2770_v5 = vmul.f32 0.3275911, %v2768_v4  ;;  %v2796_v16 = vsub.f32 0.0, %v2768_v4 }
0x170e   :  { %v2773_v11 = vadd.f32 1.0, %v2771_v18  ;;  %v2799_v22 = vmul.f32 %v2797_v15, %v2769_v3  ;;  %v5696_v15 = vld [vmem:[%s8154_s0 + $0x28] sm:$0xff] }
0x170f   :  { %v2772_v12 = vadd.f32 1.0, %v2770_v5  ;;  %v2798_v13 = vmul.f32 %v2796_v16, %v2768_v4 }
0x1710   :  { %6511 = vrcp.f32 %v2773_v11  ;;  %v2802_v29 = vmul.f32 1.442695, %v2799_v22  ;;  %v5710_v22 = vld [vmem:[%s8112_s9 + $0x28] sm:$0xff] }
0x1711   :  { %6513 = vrcp.f32 %v2772_v12  ;;  %v2800_v31 = vmul.f32 1.442695, %v2798_v13  ;;  %v5695_v12 = vld [vmem:[%s8154_s0 + $0x20] sm:$0xff]  ;;  %v5698_v13 = vld [vmem:[%s8154_s0 + $0x38] sm:$0xff] }
0x1712   :  { %6515 = vpow2.f32 %v2802_v29  ;;  %v6388_v16 = vpack.c.bf16 %v5696_v15, %v5695_v12  ;;  %v5712_v29 = vld [vmem:[%s8112_s9 + $0x38] sm:$0xff] }
0x1713   :  { %6517 = vpow2.f32 %v2800_v31  ;;  %v5703_v31 = vld [vmem:[%s8155_s15 + $0x28] sm:$0xff] }
0x1714   :  { %6389 = vmatprep.subr.bf16.mxu1 %v6388_v16 }
0x1715   :  { %6391 = vmatpush3.bf16.msra.mxu1 %v6388_v16 }
0x171a   :  { %v6512_v20 = vpop.eup %6511 }
0x171b   :  { %v6514_v23 = vpop.eup %6513  ;;  %v2779_v14 = vmul.f32 1.0614054, %v6512_v20 }
0x171c   :  { %v2778_v27 = vmul.f32 1.0614054, %v6514_v23  ;;  %v6516_v40 = vpop.eup %6515 }
0x171d   :  { %v5686_v28 = vadd.f32 -1.4531521, %v2779_v14  ;;  %v6518_v42 = vpop.eup %6517  ;;  %v5697_v14 = vld [vmem:[%s8154_s0 + $0x30] sm:$0xff] }
0x171e   :  { %v5685_v30 = vadd.f32 -1.4531521, %v2778_v27  ;;  %v6392_v27 = vpack.c.bf16 %v5698_v13, %v5697_v14 }
0x171f   :  { %v2783_v52 = vmul.f32 %v6512_v20, %v5686_v28  ;;  %v5711_v28 = vld [vmem:[%s8112_s9 + $0x30] sm:$0xff] }
0x1720   :  { %v2782_v6 = vmul.f32 %v6514_v23, %v5685_v30  ;;  %v6408_v30 = vpack.c.bf16 %v5712_v29, %v5711_v28  ;;  %6393 = vmatprep.subr.bf16.mxu1 %v6392_v27 }
0x1721   :  { %v2785_v32 = vadd.f32 1.4214138, %v2783_v52  ;;  %6395 = vmatpush3.bf16.msra.mxu1 %v6392_v27  ;;  %v5702_v52 = vld [vmem:[%s8155_s15 + $0x20] sm:$0xff] }
0x1722   :  { %v2784_v7 = vadd.f32 1.4214138, %v2782_v6  ;;  %v6396_v6 = vpack.c.bf16 %v5703_v31, %v5702_v52 }
0x1723   :  { %v2787_v19 = vmul.f32 %v6512_v20, %v2785_v32 }
0x1724   :  { %v2786_v33 = vmul.f32 %v6514_v23, %v2784_v7  ;;  %6397 = vmatprep.subr.bf16.mxu1 %v6396_v6 }
0x1725   :  { %v5688_v34 = vadd.f32 -0.28449672, %v2787_v19 }
0x1726   :  { %v5687_v35 = vadd.f32 -0.28449672, %v2786_v33 }
0x1727   :  { %v2791_v36 = vmul.f32 %v6512_v20, %v5688_v34 }
0x1728   :  { %v2790_v37 = vmul.f32 %v6514_v23, %v5687_v35 }
0x1729   :  { %v2793_v38 = vadd.f32 0.2548296, %v2791_v36 }
0x172a   :  { %v2792_v26 = vadd.f32 0.2548296, %v2790_v37  ;;  %v5693_v37 = vld [vmem:[%s8156_s26 + $0x1] ss:$0 sm:$0xff] }
0x172b   :  { %v2795_v39 = vmul.f32 %v6512_v20, %v2793_v38  ;;  %v5709_v20 = vld [vmem:[%s8112_s9 + $0x20] sm:$0xff] }
0x172c   :  { %v2794_v41 = vmul.f32 %v6514_v23, %v2792_v26  ;;  %v6404_v23 = vpack.c.bf16 %v5710_v22, %v5709_v20  ;;  %v5694_v26 = vld [vmem:[#allocation7 + $0x1] ss:$0 sm:$0xff] }
0x172d   :  { %v2805_v43 = vmul.f32 %v6516_v40, %v2795_v39 }
0x172e   :  { %v2804_v44 = vmul.f32 %v6518_v42, %v2794_v41  ;;  %6405 = vmatprep.subr.bf16.mxu0 %v6404_v23 }
0x172f   :  { %v2807_v10 = vsub.f32 1.0, %v2805_v43  ;;  %v5704_v43 = vld [vmem:[%s8155_s15 + $0x30] sm:$0xff] }
0x1730   :  { %v2806_v45 = vsub.f32 1.0, %v2804_v44  ;;  %v5705_v44 = vld [vmem:[%s8155_s15 + $0x38] sm:$0xff] }
0x1731   :  { %v2811_v8 = vsub.f32 0.0, %v2807_v10 }
0x1732   :  { %v2810_v46 = vsub.f32 0.0, %v2806_v45 }
0x1733   :  { %v2813_v48 = vsel %vm2809_vm7, %v2807_v10, %v2811_v8  ;;  %v6400_v8 = vpack.c.bf16 %v5705_v44, %v5704_v43 }
0x1734   :  { %v2815_v49 = vadd.f32 1.0, %v2813_v48  ;;  %v2812_v50 = vsel %vm2808_vm8, %v2806_v45, %v2810_v46  ;;  %v5699_v46 = vld [vmem:[#allocation8 + $0x1] ss:$0 sm:$0xff]  ;;  %v5713_v48 = vld [vmem:[#allocation11 + $0x1] ss:$0 sm:$0xff] }
0x1735   :  { %v2814_v47 = vadd.f32 1.0, %v2812_v50 }
0x1736   :  { %v2817_v21 = vmul.f32 %v2815_v49, %v2765_v53 }
0x1737   :  { %v2816_v54 = vmul.f32 %v2814_v47, %v2764_v51 }
0x1739   :  { %6139 = vmatprep.mubr.msk.f32.mxu0 %vm2833_vm9, %v2816_v54 }
0x173a   :  { %6140 = vmatmul.mubr.msk.f32.vlgmr.msra.gmra.mrb[30].mxu0 %vm2833_vm9, %v2817_v21 }
0x173b   :  { %6407 = vmatpush3.bf16.msra.mxu0 %v6404_v23 }
0x173c   :  { %6409 = vmatprep.subr.bf16.mxu0 %v6408_v30 }
0x173f   :  { %6411 = vmatpush3.bf16.msra.mxu0 %v6408_v30 }
0x1740   :  { %6180 = vmatprep.subr.mxu0 %v6961_v9 }
0x180d   :  { %v6141_v56 = vpop.f32.mrb[30].mxu0 }
0x180e   :  { %v2912_v57 = vadd.f32 %v6141_v56, %v5689_v55  ;;  %v2906_v58 = vpop.f32.mrb[31].mxu0 }
0x180f   :  { %v2907_v59 = vadd.f32 %v5689_v55, %v2906_v58  ;;  %v5706_v55 = vld [vmem:[#allocation10 + $0x1] ss:$0 sm:$0xff] }
0x1810   :  { %v7710_v60 = vadd.f32 %v2912_v57, %v7674_v24 }
0x1811   :  { %v7713_v62 = vadd.f32 %v2907_v59, %v7661_v61 }
0x1812   :  { %v2924_v63 = vsel %vm380_vm3, %v7710_v60, 0.0 }
0x1813   :  { %2925 = vadd.xlane.f32.xlu1 %v2924_v63  ;;  %v2921_v17 = vsel %vm380_vm3, %v7713_v62, 0.0 }
0x1814   :  { %2922 = vadd.xlane.f32.xlu0 %v2921_v17 }
0x18a0   :  { %v2926_v0 = vpop.xlane.xlu1 %2925 }
0x18a1   :  { %v2928_v1 = vmul.f32 0.03125, %v2926_v0  ;;  %v2923_v2 = vpop.xlane.xlu0 %2922 }
0x18a2   :  { %v2927_v3 = vmul.f32 0.03125, %v2923_v2 }
0x18a3   :  { %v2930_v4 = vsub.f32 %v7710_v60, %v2928_v1 }
0x18a4   :  { %v2929_v24 = vsub.f32 %v7713_v62, %v2927_v3 }
0x18a5   :  { %v2932_v5 = vmul.f32 %v2930_v4, %v2930_v4 }
0x18a6   :  { %v2931_v18 = vmul.f32 %v2929_v24, %v2929_v24 }
0x18a7   :  { %v2936_v11 = vsel %vm380_vm3, %v2932_v5, 0.0 }
0x18a8   :  { %v2933_v61 = vsel %vm380_vm3, %v2931_v18, 0.0 }
0x18a9   :  { %2934 = vadd.xlane.f32.xlu1 %v2933_v61 }
0x18ad   :  { %2937 = vadd.xlane.f32.xlu1 %v2936_v11 }
0x1936   :  { %v2935_v32 = vpop.xlane.xlu1 %2934 }
0x1937   :  { %v2939_v7 = vmul.f32 0.03125, %v2935_v32 }
0x1939   :  { %v2941_v19 = vadd.f32 1e-05, %v2939_v7 }
0x193a   :  { %v2938_v33 = vpop.xlane.xlu1 %2937 }
0x193b   :  { %6519 = vrsqrt.f32 %v2941_v19  ;;  %v2940_v34 = vmul.f32 0.03125, %v2938_v33 }
0x193d   :  { %v2942_v35 = vadd.f32 1e-05, %v2940_v34  ;;  %v7836_v34 = vld [vmem:[%s8114_s11 + $0x20] sm:$0xff] }
0x193f   :  { %6521 = vrsqrt.f32 %v2942_v35 }
0x1945   :  { %v6520_v36 = vpop.eup %6519 }
0x1946   :  { %v2945_v38 = vmul.f32 %v6520_v36, %v2929_v24 }
0x1948   :  { %v2953_v39 = vmul.f32 %v5693_v37, %v2945_v38 }
0x1949   :  { %v6522_v40 = vpop.eup %6521 }
0x194a   :  { %v2946_v41 = vmul.f32 %v6522_v40, %v2930_v4  ;;  %v2961_v42 = vadd.f32 %v5694_v26, %v2953_v39 }
0x194c   :  { %v2954_v10 = vmul.f32 %v5693_v37, %v2946_v41  ;;  %6150 = vmatprep.mubr.msk.f32.mxu1 %vm380_vm3, %v2961_v42  ;;  %6172 = vmatprep.mubr.msk.f32.mxu0 %vm380_vm3, %v2961_v42 }
0x194e   :  { %v2962_v45 = vadd.f32 %v5694_v26, %v2954_v10 }
0x1950   :  { %6151 = vmatmul.mubr.msk.f32.vlgmr.msra.gmra.mrb[28].mxu1 %vm380_vm3, %v2962_v45  ;;  %6173 = vmatmul.mubr.msk.f32.vlgmr.msra.gmra.mrb[32].mxu0 %vm380_vm3, %v2962_v45 }
0x1951   :  { %6399 = vmatpush3.bf16.msra.mxu1 %v6396_v6  ;;  %6161 = vmatprep.mubr.msk.f32.mxu1 %vm380_vm3, %v2961_v42  ;;  %v7828_v6 = vld [vmem:[%s8114_s11 + $0x28] sm:$0xff] }
0x1952   :  { %6401 = vmatprep.subr.bf16.mxu1 %v6400_v8  ;;  %6182 = vmatprep.mubr.msk.f32.mxu0 %vm6962_vm4, %v6961_v9 }
0x1955   :  { %6403 = vmatpush3.bf16.msra.mxu1 %v6400_v8 }
0x1956   :  { %6175 = vmatprep.subr.mxu1 %v6961_v9 }
0x1958   :  { %6162 = vmatmul.mubr.msk.f32.vlgmr.msra.gmra.mrb[30].mxu1 %vm380_vm3, %v2962_v45 }
0x1959   :  { %6177 = vmatprep.mubr.msk.f32.mxu1 %vm6962_vm4, %v6961_v9 }
0x1a23   :  { %v6152_v49 = vpop.f32.mrb[28].mxu1  ;;  %v6174_v50 = vpop.f32.mrb[32].mxu0 }
0x1a24   :  { %v7774_v51 = vadd.f32 %v6152_v49, %v5699_v46  ;;  %v7776_v47 = vadd.f32 %v6174_v50, %v5713_v48  ;;  %v3048_v53 = vpop.f32.mrb[29].mxu1  ;;  %v3224_v54 = vpop.f32.mrb[33].mxu0 }
0x1a25   :  { %v7778_v21 = vadd.f32 %v5713_v48, %v3224_v54  ;;  %v7790_v63 = vadd.f32 %v5699_v46, %v3048_v53 }
0x1a27   :  { %6181 = vmatpush3.msra.mxu0 %v7778_v21 }
0x1a28   :  { %6190 = vmatprep.subr.mxu0 %v6961_v9 }
0x1a2b   :  { %v6163_v56 = vpop.f32.mrb[30].mxu1 }
0x1a2c   :  { %v7782_v57 = vadd.f32 %v6163_v56, %v5706_v55  ;;  %v3136_v58 = vpop.f32.mrb[31].mxu1 }
0x1a2d   :  { %v7784_v59 = vadd.f32 %v5706_v55, %v3136_v58  ;;  %v7876_v58 = vld [vmem:[%s8114_s11 + $0x30] sm:$0xff] }
0x1a2f   :  { %3403 = vrot.lane.b32.xlu1 %v7784_v59, %s6963_s25  ;;  %6176 = vmatpush3.xpose.msk.msra.mxu1 %vm692_vm5, %v7784_v59 }
0x1a30   :  { %6185 = vmatprep.subr.mxu1 %v6961_v9 }
0x1a32   :  { %6178 = vmatmul.mubr.msk.f32.vlgmr.msra.gmra.mrb[32].mxu1 %vm692_vm5, %v7790_v63 }
0x1a33   :  { %3401 = vrot.lane.b32.xlu1 %v7790_v63, %s6963_s25  ;;  %6187 = vmatprep.mubr.msk.f32.mxu1 %vm6962_vm4, %v6961_v9 }
0x1aa1   :  { %v3404_v17 = vpop.permute.xlu1 %3403 }
0x1aa2   :  { %6186 = vmatpush3.xpose.msk.msra.mxu1 %vm692_vm5, %v3404_v17 }
0x1aa3   :  { %6195 = vmatprep.subr.mxu1 %v6961_v9 }
0x1aa5   :  { %v3402_v0 = vpop.permute.xlu1 %3401 }
0x1aa6   :  { %6188 = vmatmul.mubr.msk.f32.vlgmr.msra.gmra.mrb[34].mxu1 %vm692_vm5, %v3402_v0 }
0x1aa7   :  { %6197 = vmatprep.mubr.msk.f32.mxu1 %vm6962_vm4, %v6961_v9  ;;  %6196 = vmatpush3.msra.mxu1 %v7828_v6 }
0x1aa8   :  { %6205 = vmatprep.subr.mxu1 %v6961_v9 }
0x1b05   :  { %v3310_v1 = vpop.f32.mrb[32].mxu1 }
0x1b06   :  { %v3314_v2 = vmul.f32 0.35355338, %v3310_v1  ;;  %v6179_v3 = vpop.f32.mrb[33].mxu1 }
0x1b08   :  { %v3315_v4 = vsel %vm7443_vm6, %v3314_v2, -1e+30 }
0x1b09   :  { %v3316_v24 = vsel %vm692_vm5, %v3315_v4, -inf }
0x1b0a   :  { %3317 = vmax.xlane.f32.xlu0 %v3316_v24 }
0x1b79   :  { %v3475_v18 = vpop.f32.mrb[34].mxu1 }
0x1b7a   :  { %v3479_v61 = vmul.f32 0.35355338, %v3475_v18  ;;  %v6189_v5 = vpop.f32.mrb[35].mxu1 }
0x1b7c   :  { %v3480_v11 = vsel %vm7443_vm6, %v3479_v61, -1e+30 }
0x1b7d   :  { %v3481_v12 = vsel %vm692_vm5, %v3480_v11, -inf }
0x1b7e   :  { %3482 = vmax.xlane.f32.xlu1 %v3481_v12 }
0x1b97   :  { %v3318_v15 = vpop.xlane.xlu0 %3317 }
0x1b98   :  { %v3319_v16 = vsub.f32 %v3315_v4, %v3318_v15 }
0x1b9a   :  { %v3320_v20 = vmul.f32 1.442695, %v3319_v16 }
0x1b9c   :  { %6523 = vpow2.f32 %v3320_v20 }
0x1ba6   :  { %v6524_v22 = vpop.eup %6523 }
0x1ba7   :  { %v3322_v23 = vsel %vm692_vm5, %v6524_v22, 0.0 }
0x1ba8   :  { %3323 = vadd.xlane.f32.xlu0 %v3322_v23 }
0x1c0b   :  { %v3483_v14 = vpop.xlane.xlu1 %3482 }
0x1c0c   :  { %v3484_v13 = vsub.f32 %v3480_v11, %v3483_v14 }
0x1c0e   :  { %v3485_v27 = vmul.f32 1.442695, %v3484_v13 }
0x1c10   :  { %6525 = vpow2.f32 %v3485_v27 }
0x1c1a   :  { %v6526_v28 = vpop.eup %6525 }
0x1c1b   :  { %v3487_v29 = vsel %vm692_vm5, %v6526_v28, 0.0 }
0x1c1c   :  { %3488 = vadd.xlane.f32.xlu0 %v3487_v29 }
0x1c32   :  { %3494 = vrot.lane.b32.xlu0 %v7778_v21, %s6963_s25 }
0x1c35   :  { %v3324_v30 = vpop.xlane.xlu0 %3323 }
0x1c36   :  { %6527 = vrcp.f32 %v3324_v30  ;;  %3718 = vrot.lane.b32.xlu0 %v7784_v59, %s6964_s29 }
0x1c3a   :  { %3716 = vrot.lane.b32.xlu0 %v7790_v63, %s6964_s29 }
0x1c40   :  { %v6528_v52 = vpop.eup %6527 }
0x1c41   :  { %v3326_v31 = vmul.f32 %v6528_v52, %v6524_v22  ;;  %v7907_v22 = vld [vmem:[%s8114_s11 + $0x38] sm:$0xff] }
0x1c43   :  { %3327 = vst.msk [vmem:[%s8127_s24 + $0x40] sm:$0xff] %vm692_vm5, %v3326_v31  ;;  %6183 = vmatmul.mubr.msk.f32.vlgmr.msra.gmra.mrb[34].mxu0 %vm692_vm5, %v3326_v31 }
0x1c44   :  { %6192 = vmatprep.mubr.msk.f32.mxu0 %vm6962_vm4, %v6961_v9 }
0x1ca9   :  { %v3489_v32 = vpop.xlane.xlu0 %3488 }
0x1caa   :  { %6529 = vrcp.f32 %v3489_v32 }
0x1cad   :  { %v3495_v7 = vpop.permute.xlu0 %3494 }
0x1cae   :  { %6191 = vmatpush3.msra.mxu0 %v3495_v7 }
0x1caf   :  { %6200 = vmatprep.subr.mxu0 %v6961_v9 }
0x1cb1   :  { %v3719_v37 = vpop.permute.xlu0 %3718 }
0x1cb4   :  { %v6530_v19 = vpop.eup %6529 }
0x1cb5   :  { %v3491_v33 = vmul.f32 %v6530_v19, %v6526_v28  ;;  %v3717_v39 = vpop.permute.xlu0 %3716 }
0x1cb7   :  { %3492 = vst.msk [vmem:[%s8127_s24 + $0x48] sm:$0xff] %vm692_vm5, %v3491_v33  ;;  %6193 = vmatmul.mubr.msk.f32.vlgmr.msra.gmra.mrb[36].mxu0 %vm692_vm5, %v3491_v33 }
0x1cb8   :  { %6201 = vmatpush3.msra.mxu0 %v7836_v34  ;;  %6202 = vmatprep.mubr.msk.f32.mxu0 %vm6962_vm4, %v6961_v9 }
0x1cb9   :  { %6210 = vmatprep.subr.mxu0 %v6961_v9 }
0x1d16   :  { %v3397_v35 = vpop.f32.mrb[34].mxu0 }
0x1d17   :  { %v6184_v36 = vpop.f32.mrb[35].mxu0  ;;  %6203 = vmatmul.mubr.msk.f32.vlgmr.msra.gmra.mrb[38].mxu0 %vm692_vm5, %v3397_v35 }
0x1d18   :  { %6212 = vmatprep.mubr.msk.f32.mxu0 %vm6962_vm4, %v6961_v9 }
0x1d8a   :  { %v3566_v38 = vpop.f32.mrb[36].mxu0 }
0x1d8b   :  { %v6194_v26 = vpop.f32.mrb[37].mxu0  ;;  %6198 = vmatmul.mubr.msk.f32.vlgmr.msra.gmra.mrb[36].mxu1 %vm692_vm5, %v3566_v38 }
0x1d8c   :  { %6206 = vmatpush3.xpose.msk.msra.mxu1 %vm692_vm5, %v3719_v37  ;;  %6207 = vmatprep.mubr.msk.f32.mxu1 %vm6962_vm4, %v6961_v9 }
0x1d8d   :  { %6215 = vmatprep.subr.mxu1 %v6961_v9 }
0x1d8f   :  { %6208 = vmatmul.mubr.msk.f32.vlgmr.msra.gmra.mrb[38].mxu1 %vm692_vm5, %v3717_v39 }
0x1d90   :  { %6217 = vmatprep.mubr.msk.f32.mxu1 %vm6962_vm4, %v6961_v9  ;;  %6216 = vmatpush3.msra.mxu1 %v7876_v58 }
0x1d91   :  { %6225 = vmatprep.subr.mxu1 %v6961_v9 }
0x1dea   :  { %v3712_v40 = vpop.f32.mrb[38].mxu0 }
0x1deb   :  { %v6204_v41 = vpop.f32.mrb[39].mxu0 }
0x1e5e   :  { %v3639_v42 = vpop.f32.mrb[36].mxu1 }
0x1e5f   :  { %v7858_v43 = vadd.f32 %v3712_v40, %v3639_v42  ;;  %v6199_v44 = vpop.f32.mrb[37].mxu1 }
0x1e62   :  { %v3790_v10 = vpop.f32.mrb[38].mxu1 }
0x1e63   :  { %v3794_v45 = vmul.f32 0.35355338, %v3790_v10  ;;  %v6209_v8 = vpop.f32.mrb[39].mxu1 }
0x1e65   :  { %v3795_v46 = vsel %vm7443_vm6, %v3794_v45, -1e+30 }
0x1e66   :  { %v3796_v48 = vsel %vm692_vm5, %v3795_v46, -inf }
0x1e67   :  { %3797 = vmax.xlane.f32.xlu1 %v3796_v48 }
0x1e78   :  { %3808 = vrot.lane.b32.xlu1 %v7778_v21, %s6964_s29 }
0x1e7c   :  { %3960 = vrot.lane.b32.xlu1 %v7784_v59, %s6965_s3 }
0x1e80   :  { %3958 = vrot.lane.b32.xlu1 %v7790_v63, %s6965_s3 }
0x1ef4   :  { %v3798_v49 = vpop.xlane.xlu1 %3797 }
0x1ef5   :  { %v3799_v50 = vsub.f32 %v3795_v46, %v3798_v49 }
0x1ef7   :  { %v3800_v53 = vmul.f32 1.442695, %v3799_v50 }
0x1ef8   :  { %v3809_v54 = vpop.permute.xlu1 %3808 }
0x1ef9   :  { %6531 = vpow2.f32 %v3800_v53  ;;  %6211 = vmatpush3.msra.mxu0 %v3809_v54 }
0x1efa   :  { %6220 = vmatprep.subr.mxu0 %v6961_v9 }
0x1efc   :  { %v3961_v17 = vpop.permute.xlu1 %3960 }
0x1f03   :  { %v6532_v55 = vpop.eup %6531 }
0x1f04   :  { %v3802_v56 = vsel %vm692_vm5, %v6532_v55, 0.0 }
0x1f05   :  { %3803 = vadd.xlane.f32.xlu0 %v3802_v56 }
0x1f1b   :  { %4050 = vrot.lane.b32.xlu0 %v7778_v21, %s6965_s3  ;;  %v3959_v21 = vpop.permute.xlu1 %3958 }
0x1f92   :  { %v3804_v59 = vpop.xlane.xlu0 %3803 }
0x1f93   :  { %6533 = vrcp.f32 %v3804_v59 }
0x1f96   :  { %v4051_v2 = vpop.permute.xlu0 %4050 }
0x1f9d   :  { %v6534_v63 = vpop.eup %6533 }
0x1f9e   :  { %v3806_v0 = vmul.f32 %v6534_v63, %v6532_v55 }
0x1fa0   :  { %3807 = vst.msk [vmem:[%s8127_s24 + $0x50] sm:$0xff] %vm692_vm5, %v3806_v0  ;;  %6213 = vmatmul.mubr.msk.f32.vlgmr.msra.gmra.mrb[40].mxu0 %vm692_vm5, %v3806_v0 }
0x1fa1   :  { %6221 = vmatpush3.xpose.msk.msra.mxu0 %vm692_vm5, %v3961_v17  ;;  %6222 = vmatprep.mubr.msk.f32.mxu0 %vm6962_vm4, %v6961_v9 }
0x1fa2   :  { %6230 = vmatprep.subr.mxu0 %v6961_v9 }
0x1fa4   :  { %6223 = vmatmul.mubr.msk.f32.vlgmr.msra.gmra.mrb[42].mxu0 %vm692_vm5, %v3959_v21 }
0x1fa5   :  { %6232 = vmatprep.mubr.msk.f32.mxu0 %vm6962_vm4, %v6961_v9  ;;  %6231 = vmatpush3.msra.mxu0 %v7907_v22 }
0x1fa6   :  { %6240 = vmatprep.subr.mxu0 %v6961_v9 }
0x2073   :  { %v3880_v1 = vpop.f32.mrb[40].mxu0 }
0x2074   :  { %v6214_v3 = vpop.f32.mrb[41].mxu0  ;;  %6218 = vmatmul.mubr.msk.f32.vlgmr.msra.gmra.mrb[40].mxu1 %vm692_vm5, %v3880_v1 }
0x2075   :  { %6226 = vmatpush3.msra.mxu1 %v4051_v2  ;;  %6227 = vmatprep.mubr.msk.f32.mxu1 %vm6962_vm4, %v6961_v9 }
0x2076   :  { %6235 = vmatprep.subr.mxu1 %v6961_v9 }
0x2077   :  { %v4032_v4 = vpop.f32.mrb[42].mxu0 }
0x2078   :  { %v4036_v24 = vmul.f32 0.35355338, %v4032_v4  ;;  %v6224_v18 = vpop.f32.mrb[43].mxu0 }
0x207a   :  { %v4037_v61 = vsel %vm7443_vm6, %v4036_v24, -1e+30 }
0x207b   :  { %v4038_v5 = vsel %vm692_vm5, %v4037_v61, -inf }
0x207c   :  { %4039 = vmax.xlane.f32.xlu1 %v4038_v5 }
0x2109   :  { %v4040_v11 = vpop.xlane.xlu1 %4039 }
0x210a   :  { %v4041_v12 = vsub.f32 %v4037_v61, %v4040_v11 }
0x210c   :  { %v4042_v15 = vmul.f32 1.442695, %v4041_v12 }
0x210e   :  { %6535 = vpow2.f32 %v4042_v15 }
0x2118   :  { %v6536_v16 = vpop.eup %6535 }
0x2119   :  { %v4044_v20 = vsel %vm692_vm5, %v6536_v16, 0.0 }
0x211a   :  { %4045 = vadd.xlane.f32.xlu0 %v4044_v20 }
0x2130   :  { %4365 = vrot.lane.b32.xlu0 %v7782_v57, %s6963_s25 }
0x2134   :  { %4363 = vrot.lane.b32.xlu0 %v7774_v51, %s6963_s25 }
0x2147   :  { %v3953_v23 = vpop.f32.mrb[40].mxu1 }
0x2148   :  { %v3957_v14 = vadd.f32 %v3953_v23, %v7858_v43  ;;  %v6219_v13 = vpop.f32.mrb[41].mxu1 }
0x21a7   :  { %v4046_v27 = vpop.xlane.xlu0 %4045 }
0x21a8   :  { %6537 = vrcp.f32 %v4046_v27 }
0x21ab   :  { %v4366_v30 = vpop.permute.xlu0 %4365 }
0x21af   :  { %v4364_v52 = vpop.permute.xlu0 %4363 }
0x21b2   :  { %v6538_v28 = vpop.eup %6537 }
0x21b3   :  { %v4048_v29 = vmul.f32 %v6538_v28, %v6536_v16 }
0x21b5   :  { %4049 = vst.msk [vmem:[%s8127_s24 + $0x58] sm:$0xff] %vm692_vm5, %v4048_v29  ;;  %6228 = vmatmul.mubr.msk.f32.vlgmr.msra.gmra.mrb[42].mxu1 %vm692_vm5, %v4048_v29 }
0x21b6   :  { %6236 = vmatpush3.xpose.msk.msra.mxu1 %vm692_vm5, %v7782_v57  ;;  %6237 = vmatprep.mubr.msk.f32.mxu1 %vm6962_vm4, %v6961_v9 }
0x21b7   :  { %6245 = vmatprep.subr.mxu1 %v6961_v9 }
0x21b9   :  { %6238 = vmatmul.mubr.msk.f32.vlgmr.msra.gmra.mrb[44].mxu1 %vm692_vm5, %v7774_v51 }
0x21ba   :  { %6246 = vmatpush3.xpose.msk.msra.mxu1 %vm692_vm5, %v4366_v30  ;;  %6247 = vmatprep.mubr.msk.f32.mxu1 %vm6962_vm4, %v6961_v9 }
0x21bb   :  { %6255 = vmatprep.subr.mxu1 %v6961_v9 }
0x21bd   :  { %6248 = vmatmul.mubr.msk.f32.vlgmr.msra.gmra.mrb[46].mxu1 %vm692_vm5, %v4364_v52 }
0x21be   :  { %6256 = vmatpush3.msra.mxu1 %v7828_v6  ;;  %6257 = vmatprep.mubr.msk.f32.mxu1 %vm6962_vm4, %v6961_v9 }
0x21bf   :  { %6265 = vmatprep.subr.mxu1 %v6961_v9 }
0x2288   :  { %v4122_v31 = vpop.f32.mrb[42].mxu1 }
0x2289   :  { %v6229_v32 = vpop.f32.mrb[43].mxu1  ;;  %6233 = vmatmul.mubr.msk.f32.vlgmr.msra.gmra.mrb[44].mxu0 %vm692_vm5, %v4122_v31 }
0x228a   :  { %6241 = vmatpush3.msra.mxu0 %v7776_v47  ;;  %6242 = vmatprep.mubr.msk.f32.mxu0 %vm6962_vm4, %v6961_v9 }
0x228b   :  { %6250 = vmatprep.subr.mxu0 %v6961_v9 }
0x228c   :  { %v4272_v7 = vpop.f32.mrb[44].mxu1 }
0x228d   :  { %v4276_v19 = vmul.f32 0.35355338, %v4272_v7  ;;  %v6239_v33 = vpop.f32.mrb[45].mxu1 }
0x228f   :  { %v4277_v6 = vsel %vm7443_vm6, %v4276_v19, -1e+30 }
0x2290   :  { %v4437_v35 = vpop.f32.mrb[46].mxu1  ;;  %v4278_v36 = vsel %vm692_vm5, %v4277_v6, -inf }
0x2291   :  { %v4441_v37 = vmul.f32 0.35355338, %v4437_v35  ;;  %4279 = vmax.xlane.f32.xlu1 %v4278_v36  ;;  %v6249_v38 = vpop.f32.mrb[47].mxu1 }
0x2293   :  { %v4442_v26 = vsel %vm7443_vm6, %v4441_v37, -1e+30 }
0x2294   :  { %v4443_v39 = vsel %vm692_vm5, %v4442_v26, -inf }
0x2295   :  { %4444 = vmax.xlane.f32.xlu0 %v4443_v39 }
0x231e   :  { %v4280_v40 = vpop.xlane.xlu1 %4279 }
0x231f   :  { %v4281_v41 = vsub.f32 %v4277_v6, %v4280_v40 }
0x2321   :  { %v4282_v42 = vmul.f32 1.442695, %v4281_v41 }
0x2322   :  { %v4445_v43 = vpop.xlane.xlu0 %4444 }
0x2323   :  { %6539 = vpow2.f32 %v4282_v42  ;;  %v4446_v44 = vsub.f32 %v4442_v26, %v4445_v43 }
0x2325   :  { %v4447_v10 = vmul.f32 1.442695, %v4446_v44 }
0x2327   :  { %6541 = vpow2.f32 %v4447_v10 }
0x232d   :  { %v6540_v45 = vpop.eup %6539 }
0x232e   :  { %v4284_v8 = vsel %vm692_vm5, %v6540_v45, 0.0 }
0x232f   :  { %4285 = vadd.xlane.f32.xlu1 %v4284_v8 }
0x2331   :  { %v6542_v46 = vpop.eup %6541 }
0x2332   :  { %v4449_v48 = vsel %vm692_vm5, %v6542_v46, 0.0 }
0x2333   :  { %4450 = vadd.xlane.f32.xlu1 %v4449_v48 }
0x2344   :  { %4456 = vrot.lane.b32.xlu1 %v7776_v47, %s6963_s25 }
0x2348   :  { %4680 = vrot.lane.b32.xlu1 %v7782_v57, %s6964_s29 }
0x234c   :  { %4678 = vrot.lane.b32.xlu1 %v7774_v51, %s6964_s29 }
0x235c   :  { %v4195_v49 = vpop.f32.mrb[44].mxu0 }
0x235d   :  { %v7952_v50 = vadd.f32 %v4195_v49, %v3957_v14  ;;  %v6234_v53 = vpop.f32.mrb[45].mxu0 }
0x23bc   :  { %v4286_v54 = vpop.xlane.xlu1 %4285 }
0x23bd   :  { %6543 = vrcp.f32 %v4286_v54 }
0x23c0   :  { %v4451_v55 = vpop.xlane.xlu1 %4450 }
0x23c1   :  { %6545 = vrcp.f32 %v4451_v55 }
0x23c4   :  { %v4457_v63 = vpop.permute.xlu1 %4456 }
0x23c7   :  { %v6544_v56 = vpop.eup %6543 }
0x23c8   :  { %v4288_v59 = vmul.f32 %v6544_v56, %v6540_v45  ;;  %v4681_v2 = vpop.permute.xlu1 %4680 }
0x23ca   :  { %4289 = vst.msk [vmem:[%s8127_s24 + $0x60] sm:$0xff] %vm692_vm5, %v4288_v59  ;;  %6243 = vmatmul.mubr.msk.f32.vlgmr.msra.gmra.mrb[46].mxu0 %vm692_vm5, %v4288_v59 }
0x23cb   :  { %v6546_v17 = vpop.eup %6545  ;;  %6251 = vmatpush3.msra.mxu0 %v4457_v63  ;;  %6252 = vmatprep.mubr.msk.f32.mxu0 %vm6962_vm4, %v6961_v9 }
0x23cc   :  { %v4453_v0 = vmul.f32 %v6546_v17, %v6542_v46  ;;  %6260 = vmatprep.subr.mxu0 %v6961_v9 }
0x23ce   :  { %4454 = vst.msk [vmem:[%s8127_s24 + $0x68] sm:$0xff] %vm692_vm5, %v4453_v0  ;;  %6253 = vmatmul.mubr.msk.f32.vlgmr.msra.gmra.mrb[48].mxu0 %vm692_vm5, %v4453_v0 }
0x23cf   :  { %6261 = vmatpush3.msra.mxu0 %v7836_v34  ;;  %6262 = vmatprep.mubr.msk.f32.mxu0 %vm6962_vm4, %v6961_v9  ;;  %v4679_v34 = vpop.permute.xlu1 %4678 }
0x23d0   :  { %6270 = vmatprep.subr.mxu0 %v6961_v9 }
0x249d   :  { %v4359_v21 = vpop.f32.mrb[46].mxu0 }
0x249e   :  { %v6244_v1 = vpop.f32.mrb[47].mxu0  ;;  %6263 = vmatmul.mubr.msk.f32.vlgmr.msra.gmra.mrb[50].mxu0 %vm692_vm5, %v4359_v21 }
0x249f   :  { %6272 = vmatprep.mubr.msk.f32.mxu0 %vm6962_vm4, %v6961_v9 }
0x24a1   :  { %v4528_v3 = vpop.f32.mrb[48].mxu0 }
0x24a2   :  { %v6254_v4 = vpop.f32.mrb[49].mxu0  ;;  %6258 = vmatmul.mubr.msk.f32.vlgmr.msra.gmra.mrb[48].mxu1 %vm692_vm5, %v4528_v3 }
0x24a3   :  { %6266 = vmatpush3.xpose.msk.msra.mxu1 %vm692_vm5, %v4681_v2  ;;  %6267 = vmatprep.mubr.msk.f32.mxu1 %vm6962_vm4, %v6961_v9 }
0x24a4   :  { %6275 = vmatprep.subr.mxu1 %v6961_v9 }
0x24a6   :  { %6268 = vmatmul.mubr.msk.f32.vlgmr.msra.gmra.mrb[50].mxu1 %vm692_vm5, %v4679_v34 }
0x24a7   :  { %6276 = vmatpush3.msra.mxu1 %v7876_v58  ;;  %6277 = vmatprep.mubr.msk.f32.mxu1 %vm6962_vm4, %v6961_v9 }
0x24a8   :  { %6285 = vmatprep.subr.mxu1 %v6961_v9 }
0x2571   :  { %v4674_v24 = vpop.f32.mrb[50].mxu0 }
0x2572   :  { %v6264_v18 = vpop.f32.mrb[51].mxu0 }
0x2575   :  { %v4601_v61 = vpop.f32.mrb[48].mxu1 }
0x2576   :  { %v4675_v5 = vadd.f32 %v4674_v24, %v4601_v61  ;;  %v6259_v11 = vpop.f32.mrb[49].mxu1  ;;  %v5753_v61 = vld [vmem:[#allocation14 + $0x1] ss:$0 sm:$0xff] }
0x2577   :  { %v5754_v11 = vld [vmem:[#allocation16 + $0x1] ss:$0 sm:$0xff] }
0x2579   :  { %v4752_v12 = vpop.f32.mrb[50].mxu1 }
0x257a   :  { %v4756_v15 = vmul.f32 0.35355338, %v4752_v12  ;;  %v6269_v16 = vpop.f32.mrb[51].mxu1 }
0x257b   :  { %v5221_v16 = vld [vmem:[#allocation17 + $0x20] sm:$0xff] }
0x257c   :  { %v4757_v20 = vsel %vm7443_vm6, %v4756_v15, -1e+30 }
0x257d   :  { %v4758_v23 = vsel %vm692_vm5, %v4757_v20, -inf }
0x257e   :  { %4759 = vmax.xlane.f32.xlu0 %v4758_v23 }
0x2594   :  { %4770 = vrot.lane.b32.xlu0 %v7776_v47, %s6964_s29 }
0x2598   :  { %4922 = vrot.lane.b32.xlu0 %v7782_v57, %s6965_s3 }
0x259c   :  { %4920 = vrot.lane.b32.xlu0 %v7774_v51, %s6965_s3 }
0x260b   :  { %v4760_v58 = vpop.xlane.xlu0 %4759 }
0x260c   :  { %v4761_v14 = vsub.f32 %v4757_v20, %v4760_v58  ;;  %v5222_v20 = vld [vmem:[#allocation17 + $0x28] sm:$0xff]  ;;  %v5223_v58 = vld [vmem:[#allocation17 + $0x30] sm:$0xff] }
0x260d   :  { %v6412_v23 = vpack.c.bf16 %v5222_v20, %v5221_v16 }
0x260e   :  { %v4762_v13 = vmul.f32 1.442695, %v4761_v14  ;;  %v5224_v14 = vld [vmem:[#allocation17 + $0x38] sm:$0xff] }
0x260f   :  { %v4771_v27 = vpop.permute.xlu0 %4770 }
0x2610   :  { %6547 = vpow2.f32 %v4762_v13  ;;  %6271 = vmatpush3.msra.mxu0 %v4771_v27  ;;  %v6416_v13 = vpack.c.bf16 %v5224_v14, %v5223_v58 }
0x2611   :  { %6280 = vmatprep.subr.mxu0 %v6961_v9 }
0x2613   :  { %v4923_v31 = vpop.permute.xlu0 %4922 }
0x2617   :  { %v4921_v51 = vpop.permute.xlu0 %4920 }
0x261a   :  { %v6548_v28 = vpop.eup %6547 }
0x261b   :  { %v4764_v29 = vsel %vm692_vm5, %v6548_v28, 0.0 }
0x261c   :  { %4765 = vadd.xlane.f32.xlu1 %v4764_v29 }
0x26a9   :  { %v4766_v30 = vpop.xlane.xlu1 %4765 }
0x26aa   :  { %6549 = vrcp.f32 %v4766_v30 }
0x26b4   :  { %v6550_v52 = vpop.eup %6549 }
0x26b5   :  { %v4768_v57 = vmul.f32 %v6550_v52, %v6548_v28 }
0x26b7   :  { %4769 = vst.msk [vmem:[%s8127_s24 + $0x70] sm:$0xff] %vm692_vm5, %v4768_v57  ;;  %6273 = vmatmul.mubr.msk.f32.vlgmr.msra.gmra.mrb[52].mxu0 %vm692_vm5, %v4768_v57 }
0x26b8   :  { %6281 = vmatpush3.xpose.msk.msra.mxu0 %vm692_vm5, %v4923_v31  ;;  %6282 = vmatprep.mubr.msk.f32.mxu0 %vm6962_vm4, %v6961_v9 }
0x26b9   :  { %6290 = vmatprep.subr.mxu0 %v6961_v9 }
0x26bb   :  { %6283 = vmatmul.mubr.msk.f32.vlgmr.msra.gmra.mrb[54].mxu0 %vm692_vm5, %v4921_v51  ;;  %v5762_v51 = vld [vmem:[%s8120_s17 + $0x40] sm:$0xff] }
0x26bc   :  { %6291 = vmatpush3.msra.mxu0 %v7907_v22  ;;  %6292 = vmatprep.mubr.msk.f32.mxu0 %vm6962_vm4, %v6961_v9 }
0x278a   :  { %v4842_v32 = vpop.f32.mrb[52].mxu0 }
0x278b   :  { %v6274_v7 = vpop.f32.mrb[53].mxu0  ;;  %6278 = vmatmul.mubr.msk.f32.vlgmr.msra.gmra.mrb[52].mxu1 %vm692_vm5, %v4842_v32  ;;  %v5763_v32 = vld [vmem:[%s8120_s17 + $0x48] sm:$0xff] }
0x278c   :  { %6287 = vmatprep.mubr.msk.f32.mxu1 %vm6962_vm4, %v6961_v9  ;;  %v5752_v9 = vld [vmem:[#allocation13 + $0x1] ss:$0 sm:$0xff]  ;;  %v6420_v7 = vpack.c.bf16 %v5763_v32, %v5762_v51 }
0x278d   :  { %v5170_v40 = vadd.f32 %v5752_v9, %v7952_v50 }
0x278e   :  { %v4994_v19 = vpop.f32.mrb[54].mxu0  ;;  %6421 = vmatprep.subr.bf16.mxu0 %v6420_v7 }
0x278f   :  { %v4998_v33 = vmul.f32 0.35355338, %v4994_v19  ;;  %v6284_v6 = vpop.f32.mrb[55].mxu0  ;;  %v8019_v43 = vadd.f32 %v5170_v40, %v7713_v62  ;;  %v5764_v19 = vld [vmem:[%s8120_s17 + $0x50] sm:$0xff] }
0x2791   :  { %v4999_v35 = vsel %vm7443_vm6, %v4998_v33, -1e+30  ;;  %v5178_v44 = vsel %vm380_vm3, %v8019_v43, 0.0  ;;  %v5765_v33 = vld [vmem:[%s8120_s17 + $0x58] sm:$0xff] }
0x2792   :  { %v5000_v36 = vsel %vm692_vm5, %v4999_v35, -inf  ;;  %v6424_v6 = vpack.c.bf16 %v5765_v33, %v5764_v19 }
0x2793   :  { %5001 = vmax.xlane.f32.xlu0 %v5000_v36  ;;  %v5767_v36 = vld [vmem:[%s8120_s17 + $0x68] sm:$0xff] }
0x2820   :  { %v5002_v22 = vpop.xlane.xlu0 %5001 }
0x2821   :  { %v5003_v37 = vsub.f32 %v4999_v35, %v5002_v22  ;;  %v5766_v35 = vld [vmem:[%s8120_s17 + $0x60] sm:$0xff] }
0x2822   :  { %v6428_v22 = vpack.c.bf16 %v5767_v36, %v5766_v35 }
0x2823   :  { %v5004_v38 = vmul.f32 1.442695, %v5003_v37  ;;  %v5768_v37 = vld [vmem:[%s8120_s17 + $0x70] sm:$0xff] }
0x2825   :  { %6551 = vpow2.f32 %v5004_v38  ;;  %v5769_v38 = vld [vmem:[%s8120_s17 + $0x78] sm:$0xff] }
0x282f   :  { %v6552_v26 = vpop.eup %6551 }
0x2830   :  { %v5006_v39 = vsel %vm692_vm5, %v6552_v26, 0.0 }
0x2831   :  { %5007 = vadd.xlane.f32.xlu1 %v5006_v39  ;;  %v5755_v39 = vld [vmem:[#allocation19 + $0x1] ss:$0 sm:$0xff] }
0x2842   :  { %5012 = vrot.lane.b32.xlu1 %v7776_v47, %s6965_s3 }
0x285e   :  { %v4915_v41 = vpop.f32.mrb[52].mxu1 }
0x285f   :  { %v4919_v25 = vadd.f32 %v4915_v41, %v4675_v5  ;;  %v6279_v42 = vpop.f32.mrb[53].mxu1 }
0x2866   :  { %5179 = vadd.xlane.f32.xlu1 %v5178_v44 }
0x28be   :  { %v5008_v10 = vpop.xlane.xlu1 %5007 }
0x28bf   :  { %6553 = vrcp.f32 %v5008_v10 }
0x28c2   :  { %v5013_v45 = vpop.permute.xlu1 %5012 }
0x28c3   :  { %6286 = vmatpush3.msra.mxu1 %v5013_v45 }
0x28c4   :  { %6413 = vmatprep.subr.bf16.mxu1 %v6412_v23 }
0x28c9   :  { %v6554_v8 = vpop.eup %6553 }
0x28ca   :  { %v5010_v46 = vmul.f32 %v6554_v8, %v6552_v26  ;;  %v6432_v26 = vpack.c.bf16 %v5769_v38, %v5768_v37 }
0x28cc   :  { %5011 = vst.msk [vmem:[%s8127_s24 + $0x78] sm:$0xff] %vm692_vm5, %v5010_v46  ;;  %6288 = vmatmul.mubr.msk.f32.vlgmr.msra.gmra.mrb[54].mxu1 %vm692_vm5, %v5010_v46 }
0x28cd   :  { %6415 = vmatpush3.bf16.msra.mxu1 %v6412_v23 }
0x28ce   :  { %6417 = vmatprep.subr.bf16.mxu1 %v6416_v13 }
0x28d1   :  { %6419 = vmatpush3.bf16.msra.mxu1 %v6416_v13 }
0x28f3   :  { %v5180_v48 = vpop.xlane.xlu1 %5179 }
0x28f4   :  { %v5184_v49 = vmul.f32 0.03125, %v5180_v48 }
0x28f6   :  { %v5186_v55 = vsub.f32 %v8019_v43, %v5184_v49 }
0x28f8   :  { %v5188_v17 = vmul.f32 %v5186_v55, %v5186_v55 }
0x28fa   :  { %v5190_v0 = vsel %vm380_vm3, %v5188_v17, 0.0 }
0x299f   :  { %v5084_v47 = vpop.f32.mrb[54].mxu1 }
0x29a0   :  { %v6289_v62 = vpop.f32.mrb[55].mxu1  ;;  %6293 = vmatmul.mubr.msk.f32.vlgmr.msra.gmra.mrb[56].mxu0 %vm692_vm5, %v5084_v47 }
0x29a1   :  { %6423 = vmatpush3.bf16.msra.mxu0 %v6420_v7 }
0x29a2   :  { %6425 = vmatprep.subr.bf16.mxu0 %v6424_v6 }
0x29a5   :  { %6427 = vmatpush3.bf16.msra.mxu0 %v6424_v6  ;;  %v5770_v6 = vld [vmem:[#allocation20 + $0x1] ss:$0 sm:$0xff] }
0x29a6   :  { %6429 = vmatprep.subr.bf16.mxu0 %v6428_v22 }
0x29a9   :  { %6431 = vmatpush3.bf16.msra.mxu0 %v6428_v22 }
0x29aa   :  { %6433 = vmatprep.subr.bf16.mxu0 %v6432_v26 }
0x29ad   :  { %6435 = vmatpush3.bf16.msra.mxu0 %v6432_v26 }
0x2a73   :  { %v5157_v50 = vpop.f32.mrb[56].mxu0 }
0x2a74   :  { %v5161_v53 = vadd.f32 %v5157_v50, %v4919_v25  ;;  %v6294_v54 = vpop.f32.mrb[57].mxu0 }
0x2a76   :  { %v5171_v56 = vadd.f32 %v5752_v9, %v5161_v53 }
0x2a78   :  { %v8031_v59 = vadd.f32 %v5171_v56, %v7710_v60 }
0x2a7a   :  { %v5181_v63 = vsel %vm380_vm3, %v8031_v59, 0.0 }
0x2a7b   :  { %5182 = vadd.xlane.f32.xlu0 %v5181_v63 }
0x2a7f   :  { %5191 = vadd.xlane.f32.xlu0 %v5190_v0 }
0x2b08   :  { %v5183_v21 = vpop.xlane.xlu0 %5182 }
0x2b09   :  { %v5185_v1 = vmul.f32 0.03125, %v5183_v21 }
0x2b0b   :  { %v5187_v2 = vsub.f32 %v8031_v59, %v5185_v1 }
0x2b0c   :  { %v5192_v3 = vpop.xlane.xlu0 %5191 }
0x2b0d   :  { %v5196_v4 = vmul.f32 0.03125, %v5192_v3  ;;  %v5189_v34 = vmul.f32 %v5187_v2, %v5187_v2 }
0x2b0f   :  { %v5198_v24 = vadd.f32 1e-05, %v5196_v4  ;;  %v5193_v18 = vsel %vm380_vm3, %v5189_v34, 0.0 }
0x2b10   :  { %5194 = vadd.xlane.f32.xlu0 %v5193_v18 }
0x2b11   :  { %6555 = vrsqrt.f32 %v5198_v24 }
0x2b1b   :  { %v6556_v60 = vpop.eup %6555 }
0x2b1c   :  { %v5202_v5 = vmul.f32 %v6556_v60, %v5186_v55 }
0x2b1e   :  { %v5210_v12 = vmul.f32 %v5753_v61, %v5202_v5 }
0x2b20   :  { %v5218_v15 = vadd.f32 %v5754_v11, %v5210_v12 }
0x2b22   :  { %6303 = vmatprep.mubr.msk.f32.mxu1 %vm380_vm3, %v5218_v15 }
0x2b9d   :  { %v5195_v27 = vpop.xlane.xlu0 %5194 }
0x2b9e   :  { %v5197_v28 = vmul.f32 0.03125, %v5195_v27 }
0x2ba0   :  { %v5199_v29 = vadd.f32 1e-05, %v5197_v28 }
0x2ba2   :  { %6557 = vrsqrt.f32 %v5199_v29 }
0x2bac   :  { %v6558_v30 = vpop.eup %6557 }
0x2bad   :  { %v5203_v52 = vmul.f32 %v6558_v30, %v5187_v2 }
0x2baf   :  { %v5211_v31 = vmul.f32 %v5753_v61, %v5203_v52 }
0x2bb1   :  { %v5219_v57 = vadd.f32 %v5754_v11, %v5211_v31 }
0x2bb3   :  { %6304 = vmatmul.mubr.msk.f32.vlgmr.msra.gmra.mrb[56].mxu1 %vm380_vm3, %v5219_v57 }
0x2c86   :  { %v6305_v9 = vpop.f32.mrb[56].mxu1 }
0x2c87   :  { %v5311_v40 = vadd.f32 %v6305_v9, %v5755_v39  ;;  %v5305_v41 = vpop.f32.mrb[57].mxu1 }
0x2c88   :  { %v5306_v25 = vadd.f32 %v5755_v39, %v5305_v41 }
0x2c89   :  { %v5317_v42 = vmul.f32 0.70710677, %v5311_v40  ;;  %v5315_v7 = vmul.f32 0.5, %v5311_v40 }
0x2c8a   :  { %v5316_v44 = vmul.f32 0.70710677, %v5306_v25  ;;  %v5314_v51 = vmul.f32 0.5, %v5306_v25 }
0x2c8b   :  { %v5319_v10 = vand.u32 2147483647, %v5317_v42  ;;  %vm5359_vm10 = vcmp.ge.f32.partialorder %v5317_v42, 0.0 }
0x2c8c   :  { %v5318_v45 = vand.u32 2147483647, %v5316_v44  ;;  %vm5358_vm11 = vcmp.ge.f32.partialorder %v5316_v44, 0.0 }
0x2c8d   :  { %v5321_v8 = vmul.f32 0.3275911, %v5319_v10  ;;  %v5347_v48 = vsub.f32 0.0, %v5319_v10 }
0x2c8e   :  { %v5320_v46 = vmul.f32 0.3275911, %v5318_v45  ;;  %v5346_v49 = vsub.f32 0.0, %v5318_v45 }
0x2c8f   :  { %v5323_v47 = vadd.f32 1.0, %v5321_v8  ;;  %v5349_v53 = vmul.f32 %v5347_v48, %v5319_v10  ;;  %v5514_v48 = vld [vmem:[%s8124_s21 + $0x10] sm:$0xff] }
0x2c90   :  { %v5322_v62 = vadd.f32 1.0, %v5320_v46  ;;  %v5348_v56 = vmul.f32 %v5346_v49, %v5318_v45  ;;  %v5515_v49 = vld [vmem:[%s8124_s21 + $0x18] sm:$0xff] }
0x2c91   :  { %6559 = vrcp.f32 %v5323_v47  ;;  %v5352_v0 = vmul.f32 1.442695, %v5349_v53  ;;  %v5513_v47 = vld [vmem:[%s8124_s21 + $0x8] sm:$0xff] }
0x2c92   :  { %6561 = vrcp.f32 %v5322_v62  ;;  %v5350_v2 = vmul.f32 1.442695, %v5348_v56 }
0x2c93   :  { %6563 = vpow2.f32 %v5352_v0 }
0x2c94   :  { %6565 = vpow2.f32 %v5350_v2  ;;  %v5774_v2 = vld [vmem:[#allocation23] ss:$0 sm:$0xff] }
0x2c9b   :  { %v6560_v50 = vpop.eup %6559 }
0x2c9c   :  { %v6562_v54 = vpop.eup %6561  ;;  %v5329_v55 = vmul.f32 1.0614054, %v6560_v50 }
0x2c9d   :  { %v5328_v63 = vmul.f32 1.0614054, %v6562_v54  ;;  %v6564_v20 = vpop.eup %6563 }
0x2c9e   :  { %v5759_v17 = vadd.f32 -1.4531521, %v5329_v55  ;;  %v6566_v58 = vpop.eup %6565 }
0x2c9f   :  { %v5758_v21 = vadd.f32 -1.4531521, %v5328_v63 }
0x2ca0   :  { %v5333_v1 = vmul.f32 %v6560_v50, %v5759_v17 }
0x2ca1   :  { %v5332_v3 = vmul.f32 %v6562_v54, %v5758_v21  ;;  %v5773_v21 = vld [vmem:[#allocation22] ss:$0 sm:$0xff] }
0x2ca2   :  { %v5335_v4 = vadd.f32 1.4214138, %v5333_v1 }
0x2ca3   :  { %v5334_v34 = vadd.f32 1.4214138, %v5332_v3 }
0x2ca4   :  { %v5337_v24 = vmul.f32 %v6560_v50, %v5335_v4 }
0x2ca5   :  { %v5336_v18 = vmul.f32 %v6562_v54, %v5334_v34 }
0x2ca6   :  { %v5761_v60 = vadd.f32 -0.28449672, %v5337_v24 }
0x2ca7   :  { %v5760_v61 = vadd.f32 -0.28449672, %v5336_v18 }
0x2ca8   :  { %v5341_v5 = vmul.f32 %v6560_v50, %v5761_v60 }
0x2ca9   :  { %v5340_v11 = vmul.f32 %v6562_v54, %v5760_v61  ;;  %v5775_v61 = vld [vmem:[#allocation25] ss:$0 sm:$0xff] }
0x2caa   :  { %v5343_v12 = vadd.f32 0.2548296, %v5341_v5 }
0x2cab   :  { %v5342_v15 = vadd.f32 0.2548296, %v5340_v11 }
0x2cac   :  { %v5345_v16 = vmul.f32 %v6560_v50, %v5343_v12  ;;  %v6440_v50 = vpack.c.bf16 %v5515_v49, %v5514_v48 }
0x2cad   :  { %v5344_v23 = vmul.f32 %v6562_v54, %v5342_v15 }
0x2cae   :  { %v5355_v14 = vmul.f32 %v6564_v20, %v5345_v16 }
0x2caf   :  { %v5354_v13 = vmul.f32 %v6566_v58, %v5344_v23 }
0x2cb0   :  { %v5357_v27 = vsub.f32 1.0, %v5355_v14 }
0x2cb1   :  { %v5356_v28 = vsub.f32 1.0, %v5354_v13 }
0x2cb2   :  { %v5361_v29 = vsub.f32 0.0, %v5357_v27 }
0x2cb3   :  { %v5360_v30 = vsub.f32 0.0, %v5356_v28 }
0x2cb4   :  { %v5363_v52 = vsel %vm5359_vm10, %v5357_v27, %v5361_v29 }
0x2cb5   :  { %v5365_v31 = vadd.f32 1.0, %v5363_v52  ;;  %v5362_v57 = vsel %vm5358_vm11, %v5356_v28, %v5360_v30 }
0x2cb6   :  { %v5364_v32 = vadd.f32 1.0, %v5362_v57 }
0x2cb7   :  { %v5367_v33 = vmul.f32 %v5365_v31, %v5315_v7 }
0x2cb8   :  { %v5366_v19 = vmul.f32 %v5364_v32, %v5314_v51 }
0x2cba   :  { %6322 = vmatprep.mubr.msk.f32.mxu0 %vm2833_vm9, %v5366_v19 }
0x2cbb   :  { %6323 = vmatmul.mubr.msk.f32.vlgmr.msra.gmra.mrb[58].mxu0 %vm2833_vm9, %v5367_v33 }
0x2d8e   :  { %v6324_v35 = vpop.f32.mrb[58].mxu0 }
0x2d8f   :  { %v5457_v36 = vpop.f32.mrb[59].mxu0  ;;  %v5463_v22 = vadd.f32 %v6324_v35, %v5770_v6 }
0x2d90   :  { %v5458_v37 = vadd.f32 %v5770_v6, %v5457_v36 }
0x2d91   :  { %v5467_v39 = vadd.f32 %v5463_v22, %v8031_v59  ;;  %v5512_v59 = vld [vmem:[%s8124_s21] sm:$0xff]  ;;  %s6966_s21 = smov [#allocation26]  }
0x2d92   :  { %v5466_v38 = vadd.f32 %v5458_v37, %v8019_v43  ;;  %v6436_v62 = vpack.c.bf16 %v5513_v47, %v5512_v59  ;;  %s5611_s29 = sshll.u32 %s6966_s21, 4  ;;  %s5612_s29 = int_to_ptr.vmem [resolvable:$true] %s5611_s29 }
0x2d93   :  { %v5473_v9 = vsel %vm380_vm3, %v5467_v39, 0.0  ;;  %s6901_s27 = scalar_lea.vmem %s5612_s29, 256  ;;  %p6906_p9 = scmp.lt.s32.totalorder %s5612_s29, %s5612_s29 }
0x2d94   :  { %v5470_v26 = vsel %vm380_vm3, %v5466_v38, 0.0  ;;  %6437 = vmatprep.subr.bf16.mxu1 %v6436_v62  ;;  %p6902_p8 = scmp.ne.s32.totalorder %s5612_s29, %s6901_s27  ;;  %p6907_p10 = scmp.lt.s32.totalorder %s6901_s27, %s6901_s27 }
0x2d95   :  { %5471 = vadd.xlane.f32.xlu0 %v5470_v26  ;;  %6439 = vmatpush3.bf16.msra.mxu1 %v6436_v62 }
0x2d96   :  { %6441 = vmatprep.subr.bf16.mxu1 %v6440_v50  ;;  %p6908_p11 = por %p6907_p10, %p6906_p9 }
0x2d98   :  { %p6909_p12 = pnand %p6908_p11, %p6902_p8 }
0x2d99   :  { %5474 = vadd.xlane.f32.xlu0 %v5473_v9  ;;  %6443 = vmatpush3.bf16.msra.mxu1 %v6440_v50 }
0x2e22   :  { %v5472_v40 = vpop.xlane.xlu0 %5471 }
0x2e23   :  { %v5476_v41 = vmul.f32 0.03125, %v5472_v40 }
0x2e25   :  { %v5478_v25 = vsub.f32 %v5466_v38, %v5476_v41 }
0x2e26   :  { %v5475_v42 = vpop.xlane.xlu0 %5474 }
0x2e27   :  { %v5477_v44 = vmul.f32 0.03125, %v5475_v42  ;;  %v5480_v10 = vmul.f32 %v5478_v25, %v5478_v25 }
0x2e29   :  { %v5479_v45 = vsub.f32 %v5467_v39, %v5477_v44  ;;  %v5482_v8 = vsel %vm380_vm3, %v5480_v10, 0.0 }
0x2e2a   :  { %5483 = vadd.xlane.f32.xlu0 %v5482_v8 }
0x2e2b   :  { %v5481_v46 = vmul.f32 %v5479_v45, %v5479_v45 }
0x2e2d   :  { %v5485_v43 = vsel %vm380_vm3, %v5481_v46, 0.0 }
0x2e2e   :  { %5486 = vadd.xlane.f32.xlu0 %v5485_v43 }
0x2eb7   :  { %v5484_v53 = vpop.xlane.xlu0 %5483 }
0x2eb8   :  { %v5488_v54 = vmul.f32 0.03125, %v5484_v53 }
0x2eba   :  { %v5490_v55 = vadd.f32 1e-05, %v5488_v54 }
0x2ebb   :  { %v5487_v56 = vpop.xlane.xlu0 %5486 }
0x2ebc   :  { %6567 = vrsqrt.f32 %v5490_v55  ;;  %v5489_v63 = vmul.f32 0.03125, %v5487_v56 }
0x2ebe   :  { %v5491_v17 = vadd.f32 1e-05, %v5489_v63 }
0x2ec0   :  { %6569 = vrsqrt.f32 %v5491_v17 }
0x2ec6   :  { %v6568_v0 = vpop.eup %6567 }
0x2ec7   :  { %v5494_v1 = vmul.f32 %v6568_v0, %v5478_v25 }
0x2ec9   :  { %v5502_v3 = vmul.f32 %v5773_v21, %v5494_v1 }
0x2eca   :  { %v6570_v4 = vpop.eup %6569 }
0x2ecb   :  { %v5495_v34 = vmul.f32 %v6570_v4, %v5479_v45  ;;  %v5510_v24 = vadd.f32 %v5774_v2, %v5502_v3 }
0x2ecd   :  { %v5503_v18 = vmul.f32 %v5773_v21, %v5495_v34  ;;  %6333 = vmatprep.mubr.msk.f32.mxu1 %vm380_vm3, %v5510_v24 }
0x2ecf   :  { %v5511_v60 = vadd.f32 %v5774_v2, %v5503_v18 }
0x2ed1   :  { %6334 = vmatmul.mubr.msk.f32.vlgmr.msra.gmra.mrb[58].mxu1 %vm380_vm3, %v5511_v60 }
0x2fa4   :  { %v6335_v5 = vpop.f32.mrb[58].mxu1 }
0x2fa5   :  { %v5601_v11 = vadd.f32 %v6335_v5, %v5775_v61  ;;  %v5595_v12 = vpop.f32.mrb[59].mxu1 }
0x2fa6   :  { %v5596_v15 = vadd.f32 %v5775_v61, %v5595_v12 }
0x2fa7   :  { %5605 = vst.msk [vmem:[#allocation26 + $0x8] sm:$0xff] %vm288_vm0, %v5601_v11 }
0x2fa8   :  { %5604 = vst.msk [vmem:[#allocation26] sm:$0xff] %vm288_vm0, %v5596_v15 }
0x2fa9   :  { %6912 = shalt.err (!%p6909_p12)
}
0x2faa   :  { %s8159_s24 = sld [smem:[#allocation45_spill]] }
0x2fb0   :  { %s6913_s28 = scalar_lea.hbm %s8159_s24, 256 }
0x2fb1   :  { %p6914_p13 = scmp.ne.s32.totalorder %s8159_s24, %s6913_s28  ;;  %p6917_p0 = scmp.lt.u32.totalorder %s6913_s28, %s8159_s24 }
0x2fb3   :  { %p6919_p1 = pnand %p6917_p0, %p6914_p13 }
0x2fb5   :  { %6922 = shalt.err (!%p6919_p1)
}
0x2fb6   :  { %5617 = dma.vmem_to_hbm [thread:$0]  %s5612_s29, 256, %s8159_s24, [#allocation4], %s6949_s8, %s6949_s8, %s6950_s30  }
0x2fb7   :  { %6939 = dma.done.wait [#allocation4], 256  }
0x2fb8   :  { %6940 = vsyncadd [#allocation4], 4294967040 }
0x2fb9   :  { %5625 = vsyncpa [#allocation3], 1 }
0x2fba   :  { %5626 = vsyncpa [#allocation6], 1 }
0x2fbb   :  { %5627 = vsyncpa [#allocation9], 1 }
0x2fbc   :  { %5628 = vsyncpa [#allocation12], 1 }
0x2fbd   :  { %5629 = vsyncpa [#allocation15], 1 }
0x2fbe   :  { %5630 = vsyncpa [#allocation18], 1 }
0x2fbf   :  { %5631 = vsyncpa [#allocation21], 1 }
0x2fc0   :  { %5632 = vsyncpa [#allocation24], 1 }
0x2fc1   :  { %5633 = vsyncpa [#allocation4], 1 }

</bundles_post_ra>
